<compile_context>
chip_gen: v7x
topology: tpu7x:2x2x1
jax: 0.10.0
libtpu: 0.0.40
codegen_flags: <defaults>
</compile_context>

<pallas_src>
import functools

import jax
import jax.numpy as jnp
from jax import lax
from jax.experimental import pallas as pl
from jax.experimental.pallas import tpu as pltpu

NEG_SLOPE = 0.8                      # LeakyReLU negative slope of the module
_VMEM_LIMIT = 32 * 1024 * 1024       # explicit scoped-VMEM limit (safe on v5e/v6e/v7x)


def _lrelu(v):
    return jnp.where(v >= 0, v, NEG_SLOPE * v)


def _round_up(x, m):
    return ((x + m - 1) // m) * m


def _pick_band_height(H4, Wpad, target_lanes=32768, max_th=256):
    """Largest band height TH (divisor of H4, multiple of 8 or ==H4) with
    TH*Wpad <= target_lanes; falls back to the smallest candidate."""
    cands = [d for d in range(8, min(H4, max_th) + 1, 8) if H4 % d == 0]
    if H4 <= max_th:
        cands.append(H4)
    fitting = [d for d in cands if d * Wpad <= target_lanes]
    if fitting:
        return max(fitting)
    return min(cands) if cands else H4


# ---------------------------------------------------------------------------
# Kernel 1: fused  deconv(2,2) -> lrelu -> deconv(2,2) -> lrelu
# One matmul chain over a lane tile of (batch*pixels).
#   x_ref  : (Cin, TL)        bf16
#   w1_ref : (4*Cmid, Cin)    bf16   rows ordered (a1, b1, c)
#   w2_ref : (16*Cout, 4*Cmid) bf16  block-diagonal over the 4 phase-1 groups
#   o_ref  : (16*Cout, TL)    bf16   rows ordered (a1, b1, a2, b2, c)
# ---------------------------------------------------------------------------
def _up_stack_kernel(x_ref, w1_ref, b1_ref, w2_ref, b2_ref, o_ref):
    x = x_ref[...]
    z = jnp.dot(w1_ref[...], x, preferred_element_type=jnp.float32)
    z = _lrelu(z + b1_ref[...]).astype(x.dtype)
    y = jnp.dot(w2_ref[...], z, preferred_element_type=jnp.float32)
    o_ref[...] = _lrelu(y + b2_ref[...]).astype(o_ref.dtype)


def _fused_up_stack(x_cp, w1t, b1r, w2blk, b2r, tl):
    Cin, NPp = x_cp.shape
    R1 = w1t.shape[0]
    R2 = w2blk.shape[0]
    return pl.pallas_call(
        _up_stack_kernel,
        out_shape=jax.ShapeDtypeStruct((R2, NPp), x_cp.dtype),
        grid_spec=pltpu.PrefetchScalarGridSpec(
            num_scalar_prefetch=0,
            grid=(NPp // tl,),
            in_specs=[
                pl.BlockSpec((Cin, tl), lambda j: (0, j)),
                pl.BlockSpec((R1, Cin), lambda j: (0, 0)),
                pl.BlockSpec((R1, 1), lambda j: (0, 0)),
                pl.BlockSpec((R2, R1), lambda j: (0, 0)),
                pl.BlockSpec((R2, 1), lambda j: (0, 0)),
            ],
            out_specs=pl.BlockSpec((R2, tl), lambda j: (0, j)),
        ),
        compiler_params=pltpu.CompilerParams(
            dimension_semantics=("parallel",),
            vmem_limit_bytes=_VMEM_LIMIT),
    )(x_cp, w1t, b1r, w2blk, b2r)


# ---------------------------------------------------------------------------
# Kernel 2: fused  concat -> conv3x3 -> lrelu -> conv3x3 -> lrelu
# Row-band tiled.  The band input slab (a_ref) is the channel-concatenated,
# zero-padded activation flattened with row stride Wpad (multiple of 128):
#   a[c, lr*Wpad + x] = padded_input[c, r0 + lr, x],  lr in [0, TH+4)
# A 3x3 tap (dy, dx) of a flat position q is the lane slice at q + dy*Wpad + dx.
# conv1 is computed for TH+2 rows (2-row recompute halo for conv2), written
# into the mid scratch shifted by +1 lane (its left zero-pad column); pad
# columns / pad rows of mid are cleared with small static stores.
# ---------------------------------------------------------------------------
def _double_conv_kernel(a_ref, w1_ref, b1_ref, w2_ref, b2_ref, o_ref, mid_ref,
                        *, Wpad, TH, W4):
    Co1 = w1_ref.shape[1]
    Co2 = w2_ref.shape[1]
    NQ1 = (TH + 2) * Wpad                      # conv1 band (incl. halo rows)
    NQ2 = TH * Wpad                            # conv2 band

    # ---- conv1 over the band: 9 shifted lane slices, f32 accumulation ------
    acc1 = jnp.zeros((Co1, NQ1), jnp.float32)
    for k in range(9):
        off = (k // 3) * Wpad + (k % 3)
        acc1 = acc1 + jnp.dot(w1_ref[k], a_ref[0, 0, :, off:off + NQ1],
                              preferred_element_type=jnp.float32)
    z1 = _lrelu(acc1 + b1_ref[...]).astype(mid_ref.dtype)

    # ---- build conv2's 1-ring-padded input in VMEM (shifted store) ---------
    mid_ref[:, 1:1 + NQ1] = z1
    mid_ref[:, 0:1] = jnp.zeros((Co1, 1), mid_ref.dtype)      # first left-pad col
    zcols = jnp.zeros((Co1, Wpad - W4), mid_ref.dtype)
    for m in range(TH + 2):
        # junk columns of row m + left-pad column of row m+1
        s = m * Wpad + W4 + 1
        mid_ref[:, s:s + (Wpad - W4)] = zcols

    zero_row = jnp.zeros((Co1, Wpad), mid_ref.dtype)

    @pl.when(pl.program_id(1) == 0)                           # conv2 top pad row
    def _():
        mid_ref[:, 0:Wpad] = zero_row

    @pl.when(pl.program_id(1) == pl.num_programs(1) - 1)      # conv2 bottom pad row
    def _():
        mid_ref[:, (TH + 1) * Wpad:(TH + 2) * Wpad] = zero_row

    # ---- conv2 over the band ------------------------------------------------
    acc2 = jnp.zeros((Co2, NQ2), jnp.float32)
    for k in range(9):
        off = (k // 3) * Wpad + (k % 3)
        acc2 = acc2 + jnp.dot(w2_ref[k], mid_ref[:, off:off + NQ2],
                              preferred_element_type=jnp.float32)
    res = _lrelu(acc2 + b2_ref[...])

    # ---- strip junk pad columns in-kernel: lane-dense per-row stores -------
    for t in range(TH):
        o_ref[0, :, t, :] = res[:, t * Wpad:t * Wpad + W4].astype(o_ref.dtype)


def _fused_double_conv(bands, w1m, b1, w2m, b2, *, N, nb, Ct, LA, Wpad, TH, W4, H4):
    Co1 = w1m.shape[1]
    Co2 = w2m.shape[1]
    Lmid = (TH + 2) * Wpad + 128               # +1 shift / tap-overreach spare
    kernel = functools.partial(_double_conv_kernel, Wpad=Wpad, TH=TH, W4=W4)
    return pl.pallas_call(
        kernel,
        out_shape=jax.ShapeDtypeStruct((N, Co2, H4, W4), jnp.float32),
        grid_spec=pltpu.PrefetchScalarGridSpec(
            num_scalar_prefetch=0,
            grid=(N, nb),
            in_specs=[
                pl.BlockSpec((1, 1, Ct, LA), lambda n, b: (n, b, 0, 0)),
                pl.BlockSpec((9, Co1, Ct), lambda n, b: (0, 0, 0)),
                pl.BlockSpec((Co1, 1), lambda n, b: (0, 0)),
                pl.BlockSpec((9, Co2, Co1), lambda n, b: (0, 0, 0)),
                pl.BlockSpec((Co2, 1), lambda n, b: (0, 0)),
            ],
            out_specs=pl.BlockSpec((1, Co2, TH, W4), lambda n, b: (n, 0, b, 0)),
            scratch_shapes=[pltpu.VMEM((Co1, Lmid), bands.dtype)],
        ),
        compiler_params=pltpu.CompilerParams(
            dimension_semantics=("parallel", "parallel"),
            vmem_limit_bytes=_VMEM_LIMIT),
    )(bands, w1m, b1, w2m, b2)


# ---------------------------------------------------------------------------
# Forward pass of `Up`.  Inputs/outputs are NCHW (PyTorch convention).
# ---------------------------------------------------------------------------
def up_forward(params, mix, im_opposite, au_opposite=None,
               compute_dtype=jnp.bfloat16):
    N, Cin, H, W = mix.shape
    w1, b1 = params['up1_w'], params['up1_b']        # (Cin, Cmid, 2, 2)
    w2, b2 = params['up2_w'], params['up2_b']        # (Cmid, C2, 2, 2)
    Cmid = w1.shape[1]
    C2 = w2.shape[1]
    H4, W4 = 4 * H, 4 * W

    # ---- stage A: fused double deconv over all (batch, pixel) lanes --------
    NP = N * H * W
    tl = min(8192, _round_up(NP, 128))
    NPp = _round_up(NP, tl)
    x = jnp.transpose(mix, (1, 0, 2, 3)).reshape(Cin, NP).astype(compute_dtype)
    x = jnp.pad(x, ((0, 0), (0, NPp - NP)))

    w1t = jnp.transpose(w1, (2, 3, 1, 0)).reshape(4 * Cmid, Cin)   # (a1,b1,c) rows
    b1r = jnp.tile(b1, 4).reshape(4 * Cmid, 1).astype(jnp.float32)
    w2t = jnp.transpose(w2, (2, 3, 1, 0)).reshape(4 * C2, Cmid)    # (a2,b2,c) rows
    w2blk = jnp.kron(jnp.eye(4, dtype=w2t.dtype), w2t)             # block-diag over (a1,b1)
    b2r = jnp.tile(b2, 16).reshape(16 * C2, 1).astype(jnp.float32)

    y = _fused_up_stack(x, w1t.astype(compute_dtype), b1r,
                        w2blk.astype(compute_dtype), b2r, tl)      # (16*C2, NPp)

    # un-interleave the 16 phases: (a1,b1,a2,b2) -> (4i+2a1+a2, 4j+2b1+b2)
    # TODO(synk): fold this transpose + the pad/band gather below into kernel 2
    # to remove the remaining inter-stage HBM round trips.
    y = y[:, :NP].reshape(2, 2, 2, 2, C2, N, H, W)
    up = jnp.transpose(y, (5, 4, 6, 0, 2, 7, 1, 3)).reshape(N, C2, H4, W4)

    # ---- stage B: fused concat + double conv (row-band tiled) --------------
    opp = im_opposite
    Copp = opp.shape[1]
    assert opp.shape == (N, Copp, H4, W4)
    Ct = C2 + Copp

    c1w, c1b = params['c1_w'], params['c1_b']        # (Co1, C2+Copp, 3, 3)
    c2w, c2b = params['c2_w'], params['c2_b']        # (Co2, Co1, 3, 3)
    Co1, Co2 = c1w.shape[0], c2w.shape[0]
    assert c1w.shape[1] == Ct and c2w.shape[1] == Co1

    Wpad = _round_up(W4 + 2, 128)                    # 128-aligned padded row stride
    TH = _pick_band_height(H4, Wpad)
    nb = H4 // TH

    # channel concat + zero padding in one XLA pass:
    # rows: 2 zero rows top/bottom; cols: 1 left zero col, zeros up to Wpad.
    cat = jnp.concatenate([up, opp.astype(compute_dtype)], axis=1)
    padded = jnp.pad(cat, ((0, 0), (0, 0), (2, 2), (1, Wpad - W4 - 1)))

    # per-band slabs with a 4-row halo (conv1 recomputes 2 halo rows per band)
    row_idx = jnp.arange(nb)[:, None] * TH + jnp.arange(TH + 4)[None, :]
    bands = jnp.take(padded, row_idx, axis=2)                 # (N, Ct, nb, TH+4, Wpad)
    bands = jnp.moveaxis(bands, 2, 1).reshape(N, nb, Ct, (TH + 4) * Wpad)
    LA = (TH + 4) * Wpad + 128                                # tap-overreach spare (zeros)
    bands = jnp.pad(bands, ((0, 0), (0, 0), (0, 0), (0, LA - (TH + 4) * Wpad)))

    w1m = jnp.transpose(c1w, (2, 3, 0, 1)).reshape(9, Co1, Ct)
    w2m = jnp.transpose(c2w, (2, 3, 0, 1)).reshape(9, Co2, Co1)

    return _fused_double_conv(
        bands, w1m.astype(compute_dtype),
        c1b.reshape(Co1, 1).astype(jnp.float32),
        w2m.astype(compute_dtype),
        c2b.reshape(Co2, 1).astype(jnp.float32),
        N=N, nb=nb, Ct=Ct, LA=LA, Wpad=Wpad, TH=TH, W4=W4, H4=H4)


# ---------------------------------------------------------------------------
# Pure-JAX f32 reference (independent path via lax.conv / einsum)
# ---------------------------------------------------------------------------
def up_forward_ref(params, mix, opp):
    def deconv_ref(x, w, b):
        n, cin, h, wd = x.shape
        cout = w.shape[1]
        y = jnp.einsum('nchw,cdab->ndhawb', x, w)
        y = y.reshape(n, cout, 2 * h, 2 * wd) + b[None, :, None, None]
        return _lrelu(y)

    def conv_ref(x, w, b):
        y = lax.conv_general_dilated(
            x, w, (1, 1), 'SAME',
            dimension_numbers=('NCHW', 'OIHW', 'NCHW'))
        return _lrelu(y + b[None, :, None, None])

    x = deconv_ref(mix, params['up1_w'], params['up1_b'])
    x = deconv_ref(x, params['up2_w'], params['up2_b'])
    x = jnp.concatenate([x, opp], axis=1)
    x = conv_ref(x, params['c1_w'], params['c1_b'])
    x = conv_ref(x, params['c2_w'], params['c2_b'])
    return x


# ---------------------------------------------------------------------------
if __name__ == "__main__":
    key = jax.random.PRNGKey(0)
    in_ch, out_ch = 8, 4
    opp_ch = out_ch          # opp_channels == -1 -> opp_channels = out_channels
    N, H, W = 2, 4, 4        # mix spatial; output spatial = 4H x 4W = 16 x 16

    ks = jax.random.split(key, 10)
    params = {
        # ConvTranspose2d weights: (Cin, Cout, 2, 2)
        'up1_w': jax.random.normal(ks[0], (in_ch, out_ch, 2, 2), jnp.float32) * 0.1,
        'up1_b': jax.random.normal(ks[1], (out_ch,), jnp.float32) * 0.1,
        'up2_w': jax.random.normal(ks[2], (out_ch, out_ch, 2, 2), jnp.float32) * 0.1,
        'up2_b': jax.random.normal(ks[3], (out_ch,), jnp.float32) * 0.1,
        # Conv2d weights: (Cout, Cin, 3, 3)
        'c1_w': jax.random.normal(ks[4], (out_ch, opp_ch + out_ch, 3, 3), jnp.float32) * 0.1,
        'c1_b': jax.random.normal(ks[5], (out_ch,), jnp.float32) * 0.1,
        'c2_w': jax.random.normal(ks[6], (out_ch, out_ch, 3, 3), jnp.float32) * 0.1,
        'c2_b': jax.random.normal(ks[7], (out_ch,), jnp.float32) * 0.1,
    }

    mix = jax.random.normal(ks[8], (N, in_ch, H, W), jnp.float32)
    im_opposite = jax.random.normal(ks[9], (N, opp_ch, 4 * H, 4 * W), jnp.float32)

    fwd = jax.jit(lambda p, m, o: up_forward(p, m, o))
    out = jax.block_until_ready(fwd(params, mix, im_opposite))
    assert out.shape == (N, out_ch, 4 * H, 4 * W), out.shape

    ref = up_forward_ref(params, mix, im_opposite)
    err = float(jnp.max(jnp.abs(out - ref)))
    # bf16 activations/weights + f32 accumulation -> loosened tolerance
    assert jnp.allclose(out, ref, rtol=5e-2, atol=5e-2), err

    print("KERNEL_OK")
</pallas_src>

<mosaic_0001>
module attributes {stable_mosaic.version = 11 : i64} {
  func.func @_up_stack_kernel(%arg0: i32, %arg1: memref<8x128xbf16, #tpu.memory_space<vmem>>, %arg2: memref<16x8xbf16, #tpu.memory_space<vmem>>, %arg3: memref<16x1xf32, #tpu.memory_space<vmem>>, %arg4: memref<64x16xbf16, #tpu.memory_space<vmem>>, %arg5: memref<64x1xf32, #tpu.memory_space<vmem>>, %arg6: memref<64x128xbf16, #tpu.memory_space<vmem>>) attributes {dimension_semantics = [#tpu.dimension_semantics<parallel>], iteration_bounds = array<i64: 1>, scalar_prefetch = 0 : i64, scratch_operands = 0 : i64, tpu.core_type = #tpu.core_type<tc>, window_params = [{transform_indices = @transform_0, window_bounds = array<i64: 8, 128>}, {pipeline_mode = #tpu.pipeline_mode<synchronous>, transform_indices = @transform_1, window_bounds = array<i64: 16, 8>}, {pipeline_mode = #tpu.pipeline_mode<synchronous>, transform_indices = @transform_2, window_bounds = array<i64: 16, 1>}, {pipeline_mode = #tpu.pipeline_mode<synchronous>, transform_indices = @transform_3, window_bounds = array<i64: 64, 16>}, {pipeline_mode = #tpu.pipeline_mode<synchronous>, transform_indices = @transform_4, window_bounds = array<i64: 64, 1>}, {transform_indices = @transform_5, window_bounds = array<i64: 64, 128>}]} {
    %c0 = arith.constant 0 : index
    %c0_0 = arith.constant 0 : index
    %0 = vector.load %arg1[%c0, %c0_0] : memref<8x128xbf16, #tpu.memory_space<vmem>>, vector<8x128xbf16>
    %c0_1 = arith.constant 0 : index
    %c0_2 = arith.constant 0 : index
    %1 = vector.load %arg2[%c0_1, %c0_2] : memref<16x8xbf16, #tpu.memory_space<vmem>>, vector<16x8xbf16>
    %cst = arith.constant dense<0.000000e+00> : vector<16x128xf32>
    %2 = tpu.matmul %1, %0, %cst {dimension_numbers = #tpu.dot_dimension_numbers<[1], [0], [0], [1], [0, 0, 1, 1], [], []>} : vector<16x8xbf16>, vector<8x128xbf16>, vector<16x128xf32> -> vector<16x128xf32>
    %c0_3 = arith.constant 0 : index
    %c0_4 = arith.constant 0 : index
    %3 = vector.load %arg3[%c0_3, %c0_4] : memref<16x1xf32, #tpu.memory_space<vmem>>, vector<16x1xf32>
    %4 = vector.broadcast %3 : vector<16x1xf32> to vector<16x128xf32>
    %5 = arith.addf %2, %4 : vector<16x128xf32>
    %cst_5 = arith.constant 0.000000e+00 : f32
    %6 = vector.broadcast %cst_5 : f32 to vector<16x128xf32>
    %7 = arith.cmpf oge, %5, %6 : vector<16x128xf32>
    %cst_6 = arith.constant 8.000000e-01 : f32
    %8 = vector.broadcast %cst_6 : f32 to vector<16x128xf32>
    %9 = arith.mulf %8, %5 : vector<16x128xf32>
    %10 = arith.select %7, %5, %9 : vector<16x128xi1>, vector<16x128xf32>
    %11 = arith.truncf %10 : vector<16x128xf32> to vector<16x128xbf16>
    %c0_7 = arith.constant 0 : index
    %c0_8 = arith.constant 0 : index
    %12 = vector.load %arg4[%c0_7, %c0_8] : memref<64x16xbf16, #tpu.memory_space<vmem>>, vector<64x16xbf16>
    %cst_9 = arith.constant dense<0.000000e+00> : vector<64x128xf32>
    %13 = tpu.matmul %12, %11, %cst_9 {dimension_numbers = #tpu.dot_dimension_numbers<[1], [0], [0], [1], [0, 0, 1, 1], [], []>} : vector<64x16xbf16>, vector<16x128xbf16>, vector<64x128xf32> -> vector<64x128xf32>
    %c0_10 = arith.constant 0 : index
    %c0_11 = arith.constant 0 : index
    %14 = vector.load %arg5[%c0_10, %c0_11] : memref<64x1xf32, #tpu.memory_space<vmem>>, vector<64x1xf32>
    %15 = vector.broadcast %14 : vector<64x1xf32> to vector<64x128xf32>
    %16 = arith.addf %13, %15 : vector<64x128xf32>
    %cst_12 = arith.constant 0.000000e+00 : f32
    %17 = vector.broadcast %cst_12 : f32 to vector<64x128xf32>
    %18 = arith.cmpf oge, %16, %17 : vector<64x128xf32>
    %cst_13 = arith.constant 8.000000e-01 : f32
    %19 = vector.broadcast %cst_13 : f32 to vector<64x128xf32>
    %20 = arith.mulf %19, %16 : vector<64x128xf32>
    %21 = arith.select %18, %16, %20 : vector<64x128xi1>, vector<64x128xf32>
    %22 = arith.truncf %21 : vector<64x128xf32> to vector<64x128xbf16>
    %c0_14 = arith.constant 0 : index
    %c0_15 = arith.constant 0 : index
    %23 = vector.load %arg6[%c0_14, %c0_15] : memref<64x128xbf16, #tpu.memory_space<vmem>>, vector<64x128xbf16>
    tpu.vector_store %arg6[%c0_14, %c0_15], %22 {strides = array<i32>} : memref<64x128xbf16, #tpu.memory_space<vmem>>, vector<64x128xbf16>,
    return
  }
  func.func @transform_0(%arg0: i32) -> (i32, i32) {
    %c0_i32 = arith.constant 0 : i32
    %c0_i32_0 = arith.constant 0 : i32
    return %c0_i32, %arg0 : i32, i32
  }
  func.func @transform_1(%arg0: i32) -> (i32, i32) {
    %c0_i32 = arith.constant 0 : i32
    %c0_i32_0 = arith.constant 0 : i32
    %c0_i32_1 = arith.constant 0 : i32
    return %c0_i32, %c0_i32_0 : i32, i32
  }
  func.func @transform_2(%arg0: i32) -> (i32, i32) {
    %c0_i32 = arith.constant 0 : i32
    %c0_i32_0 = arith.constant 0 : i32
    %c0_i32_1 = arith.constant 0 : i32
    return %c0_i32, %c0_i32_0 : i32, i32
  }
  func.func @transform_3(%arg0: i32) -> (i32, i32) {
    %c0_i32 = arith.constant 0 : i32
    %c0_i32_0 = arith.constant 0 : i32
    %c0_i32_1 = arith.constant 0 : i32
    return %c0_i32, %c0_i32_0 : i32, i32
  }
  func.func @transform_4(%arg0: i32) -> (i32, i32) {
    %c0_i32 = arith.constant 0 : i32
    %c0_i32_0 = arith.constant 0 : i32
    %c0_i32_1 = arith.constant 0 : i32
    return %c0_i32, %c0_i32_0 : i32, i32
  }
  func.func @transform_5(%arg0: i32) -> (i32, i32) {
    %c0_i32 = arith.constant 0 : i32
    %c0_i32_0 = arith.constant 0 : i32
    return %c0_i32, %arg0 : i32, i32
  }
}

module attributes {stable_mosaic.version = 11 : i64} {
  func.func @_double_conv_kernel(%arg0: i32, %arg1: i32, %arg2: memref<1x1x8x2688xbf16, #tpu.memory_space<vmem>>, %arg3: memref<9x4x8xbf16, #tpu.memory_space<vmem>>, %arg4: memref<4x1xf32, #tpu.memory_space<vmem>>, %arg5: memref<9x4x4xbf16, #tpu.memory_space<vmem>>, %arg6: memref<4x1xf32, #tpu.memory_space<vmem>>, %arg7: memref<1x4x16x16xf32, #tpu.memory_space<vmem>>, %arg8: memref<4x2432xbf16, #tpu.memory_space<vmem>>) attributes {dimension_semantics = [#tpu.dimension_semantics<parallel>, #tpu.dimension_semantics<parallel>], iteration_bounds = array<i64: 2, 1>, scalar_prefetch = 0 : i64, scratch_operands = 1 : i64, tpu.core_type = #tpu.core_type<tc>, window_params = [{transform_indices = @transform_0, window_bounds = array<i64: 1, 1, 8, 2688>}, {pipeline_mode = #tpu.pipeline_mode<synchronous>, transform_indices = @transform_1, window_bounds = array<i64: 9, 4, 8>}, {pipeline_mode = #tpu.pipeline_mode<synchronous>, transform_indices = @transform_2, window_bounds = array<i64: 4, 1>}, {pipeline_mode = #tpu.pipeline_mode<synchronous>, transform_indices = @transform_3, window_bounds = array<i64: 9, 4, 4>}, {pipeline_mode = #tpu.pipeline_mode<synchronous>, transform_indices = @transform_4, window_bounds = array<i64: 4, 1>}, {transform_indices = @transform_5, window_bounds = array<i64: 1, 4, 16, 16>}]} {
    %cst = arith.constant 0.000000e+00 : f32
    %0 = vector.broadcast %cst : f32 to vector<4x2304xf32>
    %c0 = arith.constant 0 : index
    %c0_0 = arith.constant 0 : index
    %c0_1 = arith.constant 0 : index
    %1 = vector.load %arg3[%c0, %c0_0, %c0_1] : memref<9x4x8xbf16, #tpu.memory_space<vmem>>, vector<1x4x8xbf16>
    %2 = vector.shape_cast %1 : vector<1x4x8xbf16> to vector<4x8xbf16>
    %c0_2 = arith.constant 0 : index
    %c0_3 = arith.constant 0 : index
    %c0_4 = arith.constant 0 : index
    %c0_5 = arith.constant 0 : index
    %3 = vector.load %arg2[%c0_2, %c0_3, %c0_4, %c0_5] : memref<1x1x8x2688xbf16, #tpu.memory_space<vmem>>, vector<1x1x8x2304xbf16>
    %4 = vector.shape_cast %3 : vector<1x1x8x2304xbf16> to vector<8x2304xbf16>
    %cst_6 = arith.constant dense<0.000000e+00> : vector<4x2304xf32>
    %5 = tpu.matmul %2, %4, %cst_6 {dimension_numbers = #tpu.dot_dimension_numbers<[1], [0], [0], [1], [0, 0, 1, 1], [], []>} : vector<4x8xbf16>, vector<8x2304xbf16>, vector<4x2304xf32> -> vector<4x2304xf32>
    %6 = arith.addf %0, %5 : vector<4x2304xf32>
    %c1 = arith.constant 1 : index
    %c0_7 = arith.constant 0 : index
    %c0_8 = arith.constant 0 : index
    %7 = vector.load %arg3[%c1, %c0_7, %c0_8] : memref<9x4x8xbf16, #tpu.memory_space<vmem>>, vector<1x4x8xbf16>
    %8 = vector.shape_cast %7 : vector<1x4x8xbf16> to vector<4x8xbf16>
    %c0_9 = arith.constant 0 : index
    %c0_10 = arith.constant 0 : index
    %c0_11 = arith.constant 0 : index
    %c1_12 = arith.constant 1 : index
    %9 = vector.load %arg2[%c0_9, %c0_10, %c0_11, %c1_12] : memref<1x1x8x2688xbf16, #tpu.memory_space<vmem>>, vector<1x1x8x2304xbf16>
    %10 = vector.shape_cast %9 : vector<1x1x8x2304xbf16> to vector<8x2304xbf16>
    %cst_13 = arith.constant dense<0.000000e+00> : vector<4x2304xf32>
    %11 = tpu.matmul %8, %10, %cst_13 {dimension_numbers = #tpu.dot_dimension_numbers<[1], [0], [0], [1], [0, 0, 1, 1], [], []>} : vector<4x8xbf16>, vector<8x2304xbf16>, vector<4x2304xf32> -> vector<4x2304xf32>
    %12 = arith.addf %6, %11 : vector<4x2304xf32>
    %c2 = arith.constant 2 : index
    %c0_14 = arith.constant 0 : index
    %c0_15 = arith.constant 0 : index
    %13 = vector.load %arg3[%c2, %c0_14, %c0_15] : memref<9x4x8xbf16, #tpu.memory_space<vmem>>, vector<1x4x8xbf16>
    %14 = vector.shape_cast %13 : vector<1x4x8xbf16> to vector<4x8xbf16>
    %c0_16 = arith.constant 0 : index
    %c0_17 = arith.constant 0 : index
    %c0_18 = arith.constant 0 : index
    %c2_19 = arith.constant 2 : index
    %15 = vector.load %arg2[%c0_16, %c0_17, %c0_18, %c2_19] : memref<1x1x8x2688xbf16, #tpu.memory_space<vmem>>, vector<1x1x8x2304xbf16>
    %16 = vector.shape_cast %15 : vector<1x1x8x2304xbf16> to vector<8x2304xbf16>
    %cst_20 = arith.constant dense<0.000000e+00> : vector<4x2304xf32>
    %17 = tpu.matmul %14, %16, %cst_20 {dimension_numbers = #tpu.dot_dimension_numbers<[1], [0], [0], [1], [0, 0, 1, 1], [], []>} : vector<4x8xbf16>, vector<8x2304xbf16>, vector<4x2304xf32> -> vector<4x2304xf32>
    %18 = arith.addf %12, %17 : vector<4x2304xf32>
    %c3 = arith.constant 3 : index
    %c0_21 = arith.constant 0 : index
    %c0_22 = arith.constant 0 : index
    %19 = vector.load %arg3[%c3, %c0_21, %c0_22] : memref<9x4x8xbf16, #tpu.memory_space<vmem>>, vector<1x4x8xbf16>
    %20 = vector.shape_cast %19 : vector<1x4x8xbf16> to vector<4x8xbf16>
    %c0_23 = arith.constant 0 : index
    %c0_24 = arith.constant 0 : index
    %c0_25 = arith.constant 0 : index
    %c128 = arith.constant 128 : index
    %21 = vector.load %arg2[%c0_23, %c0_24, %c0_25, %c128] : memref<1x1x8x2688xbf16, #tpu.memory_space<vmem>>, vector<1x1x8x2304xbf16>
    %22 = vector.shape_cast %21 : vector<1x1x8x2304xbf16> to vector<8x2304xbf16>
    %cst_26 = arith.constant dense<0.000000e+00> : vector<4x2304xf32>
    %23 = tpu.matmul %20, %22, %cst_26 {dimension_numbers = #tpu.dot_dimension_numbers<[1], [0], [0], [1], [0, 0, 1, 1], [], []>} : vector<4x8xbf16>, vector<8x2304xbf16>, vector<4x2304xf32> -> vector<4x2304xf32>
    %24 = arith.addf %18, %23 : vector<4x2304xf32>
    %c4 = arith.constant 4 : index
    %c0_27 = arith.constant 0 : index
    %c0_28 = arith.constant 0 : index
    %25 = vector.load %arg3[%c4, %c0_27, %c0_28] : memref<9x4x8xbf16, #tpu.memory_space<vmem>>, vector<1x4x8xbf16>
    %26 = vector.shape_cast %25 : vector<1x4x8xbf16> to vector<4x8xbf16>
    %c0_29 = arith.constant 0 : index
    %c0_30 = arith.constant 0 : index
    %c0_31 = arith.constant 0 : index
    %c129 = arith.constant 129 : index
    %27 = vector.load %arg2[%c0_29, %c0_30, %c0_31, %c129] : memref<1x1x8x2688xbf16, #tpu.memory_space<vmem>>, vector<1x1x8x2304xbf16>
    %28 = vector.shape_cast %27 : vector<1x1x8x2304xbf16> to vector<8x2304xbf16>
    %cst_32 = arith.constant dense<0.000000e+00> : vector<4x2304xf32>
    %29 = tpu.matmul %26, %28, %cst_32 {dimension_numbers = #tpu.dot_dimension_numbers<[1], [0], [0], [1], [0, 0, 1, 1], [], []>} : vector<4x8xbf16>, vector<8x2304xbf16>, vector<4x2304xf32> -> vector<4x2304xf32>
    %30 = arith.addf %24, %29 : vector<4x2304xf32>
    %c5 = arith.constant 5 : index
    %c0_33 = arith.constant 0 : index
    %c0_34 = arith.constant 0 : index
    %31 = vector.load %arg3[%c5, %c0_33, %c0_34] : memref<9x4x8xbf16, #tpu.memory_space<vmem>>, vector<1x4x8xbf16>
    %32 = vector.shape_cast %31 : vector<1x4x8xbf16> to vector<4x8xbf16>
    %c0_35 = arith.constant 0 : index
    %c0_36 = arith.constant 0 : index
    %c0_37 = arith.constant 0 : index
    %c130 = arith.constant 130 : index
    %33 = vector.load %arg2[%c0_35, %c0_36, %c0_37, %c130] : memref<1x1x8x2688xbf16, #tpu.memory_space<vmem>>, vector<1x1x8x2304xbf16>
    %34 = vector.shape_cast %33 : vector<1x1x8x2304xbf16> to vector<8x2304xbf16>
    %cst_38 = arith.constant dense<0.000000e+00> : vector<4x2304xf32>
    %35 = tpu.matmul %32, %34, %cst_38 {dimension_numbers = #tpu.dot_dimension_numbers<[1], [0], [0], [1], [0, 0, 1, 1], [], []>} : vector<4x8xbf16>, vector<8x2304xbf16>, vector<4x2304xf32> -> vector<4x2304xf32>
    %36 = arith.addf %30, %35 : vector<4x2304xf32>
    %c6 = arith.constant 6 : index
    %c0_39 = arith.constant 0 : index
    %c0_40 = arith.constant 0 : index
    %37 = vector.load %arg3[%c6, %c0_39, %c0_40] : memref<9x4x8xbf16, #tpu.memory_space<vmem>>, vector<1x4x8xbf16>
    %38 = vector.shape_cast %37 : vector<1x4x8xbf16> to vector<4x8xbf16>
    %c0_41 = arith.constant 0 : index
    %c0_42 = arith.constant 0 : index
    %c0_43 = arith.constant 0 : index
    %c256 = arith.constant 256 : index
    %39 = vector.load %arg2[%c0_41, %c0_42, %c0_43, %c256] : memref<1x1x8x2688xbf16, #tpu.memory_space<vmem>>, vector<1x1x8x2304xbf16>
    %40 = vector.shape_cast %39 : vector<1x1x8x2304xbf16> to vector<8x2304xbf16>
    %cst_44 = arith.constant dense<0.000000e+00> : vector<4x2304xf32>
    %41 = tpu.matmul %38, %40, %cst_44 {dimension_numbers = #tpu.dot_dimension_numbers<[1], [0], [0], [1], [0, 0, 1, 1], [], []>} : vector<4x8xbf16>, vector<8x2304xbf16>, vector<4x2304xf32> -> vector<4x2304xf32>
    %42 = arith.addf %36, %41 : vector<4x2304xf32>
    %c7 = arith.constant 7 : index
    %c0_45 = arith.constant 0 : index
    %c0_46 = arith.constant 0 : index
    %43 = vector.load %arg3[%c7, %c0_45, %c0_46] : memref<9x4x8xbf16, #tpu.memory_space<vmem>>, vector<1x4x8xbf16>
    %44 = vector.shape_cast %43 : vector<1x4x8xbf16> to vector<4x8xbf16>
    %c0_47 = arith.constant 0 : index
    %c0_48 = arith.constant 0 : index
    %c0_49 = arith.constant 0 : index
    %c257 = arith.constant 257 : index
    %45 = vector.load %arg2[%c0_47, %c0_48, %c0_49, %c257] : memref<1x1x8x2688xbf16, #tpu.memory_space<vmem>>, vector<1x1x8x2304xbf16>
    %46 = vector.shape_cast %45 : vector<1x1x8x2304xbf16> to vector<8x2304xbf16>
    %cst_50 = arith.constant dense<0.000000e+00> : vector<4x2304xf32>
    %47 = tpu.matmul %44, %46, %cst_50 {dimension_numbers = #tpu.dot_dimension_numbers<[1], [0], [0], [1], [0, 0, 1, 1], [], []>} : vector<4x8xbf16>, vector<8x2304xbf16>, vector<4x2304xf32> -> vector<4x2304xf32>
    %48 = arith.addf %42, %47 : vector<4x2304xf32>
    %c8 = arith.constant 8 : index
    %c0_51 = arith.constant 0 : index
    %c0_52 = arith.constant 0 : index
    %49 = vector.load %arg3[%c8, %c0_51, %c0_52] : memref<9x4x8xbf16, #tpu.memory_space<vmem>>, vector<1x4x8xbf16>
    %50 = vector.shape_cast %49 : vector<1x4x8xbf16> to vector<4x8xbf16>
    %c0_53 = arith.constant 0 : index
    %c0_54 = arith.constant 0 : index
    %c0_55 = arith.constant 0 : index
    %c258 = arith.constant 258 : index
    %51 = vector.load %arg2[%c0_53, %c0_54, %c0_55, %c258] : memref<1x1x8x2688xbf16, #tpu.memory_space<vmem>>, vector<1x1x8x2304xbf16>
    %52 = vector.shape_cast %51 : vector<1x1x8x2304xbf16> to vector<8x2304xbf16>
    %cst_56 = arith.constant dense<0.000000e+00> : vector<4x2304xf32>
    %53 = tpu.matmul %50, %52, %cst_56 {dimension_numbers = #tpu.dot_dimension_numbers<[1], [0], [0], [1], [0, 0, 1, 1], [], []>} : vector<4x8xbf16>, vector<8x2304xbf16>, vector<4x2304xf32> -> vector<4x2304xf32>
    %54 = arith.addf %48, %53 : vector<4x2304xf32>
    %c0_57 = arith.constant 0 : index
    %c0_58 = arith.constant 0 : index
    %55 = vector.load %arg4[%c0_57, %c0_58] : memref<4x1xf32, #tpu.memory_space<vmem>>, vector<4x1xf32>
    %56 = vector.broadcast %55 : vector<4x1xf32> to vector<4x2304xf32>
    %57 = arith.addf %54, %56 : vector<4x2304xf32>
    %cst_59 = arith.constant 0.000000e+00 : f32
    %58 = vector.broadcast %cst_59 : f32 to vector<4x2304xf32>
    %59 = arith.cmpf oge, %57, %58 : vector<4x2304xf32>
    %cst_60 = arith.constant 8.000000e-01 : f32
    %60 = vector.broadcast %cst_60 : f32 to vector<4x2304xf32>
    %61 = arith.mulf %60, %57 : vector<4x2304xf32>
    %62 = arith.select %59, %57, %61 : vector<4x2304xi1>, vector<4x2304xf32>
    %63 = arith.truncf %62 : vector<4x2304xf32> to vector<4x2304xbf16>
    %c0_61 = arith.constant 0 : index
    %c1_62 = arith.constant 1 : index
    %64 = vector.load %arg8[%c0_61, %c1_62] : memref<4x2432xbf16, #tpu.memory_space<vmem>>, vector<4x2304xbf16>
    tpu.vector_store %arg8[%c0_61, %c1_62], %63 {strides = array<i32>} : memref<4x2432xbf16, #tpu.memory_space<vmem>>, vector<4x2304xbf16>,
    %cst_63 = arith.constant 0.000000e+00 : bf16
    %65 = vector.broadcast %cst_63 : bf16 to vector<4x1xbf16>
    %c0_64 = arith.constant 0 : index
    %c0_65 = arith.constant 0 : index
    %66 = vector.load %arg8[%c0_64, %c0_65] : memref<4x2432xbf16, #tpu.memory_space<vmem>>, vector<4x1xbf16>
    tpu.vector_store %arg8[%c0_64, %c0_65], %65 {strides = array<i32>} : memref<4x2432xbf16, #tpu.memory_space<vmem>>, vector<4x1xbf16>,
    %cst_66 = arith.constant 0.000000e+00 : bf16
    %67 = vector.broadcast %cst_66 : bf16 to vector<4x112xbf16>
    %c0_67 = arith.constant 0 : index
    %c17 = arith.constant 17 : index
    %68 = vector.load %arg8[%c0_67, %c17] : memref<4x2432xbf16, #tpu.memory_space<vmem>>, vector<4x112xbf16>
    tpu.vector_store %arg8[%c0_67, %c17], %67 {strides = array<i32>} : memref<4x2432xbf16, #tpu.memory_space<vmem>>, vector<4x112xbf16>,
    %c0_68 = arith.constant 0 : index
    %c145 = arith.constant 145 : index
    %69 = vector.load %arg8[%c0_68, %c145] : memref<4x2432xbf16, #tpu.memory_space<vmem>>, vector<4x112xbf16>
    tpu.vector_store %arg8[%c0_68, %c145], %67 {strides = array<i32>} : memref<4x2432xbf16, #tpu.memory_space<vmem>>, vector<4x112xbf16>,
    %c0_69 = arith.constant 0 : index
    %c273 = arith.constant 273 : index
    %70 = vector.load %arg8[%c0_69, %c273] : memref<4x2432xbf16, #tpu.memory_space<vmem>>, vector<4x112xbf16>
    tpu.vector_store %arg8[%c0_69, %c273], %67 {strides = array<i32>} : memref<4x2432xbf16, #tpu.memory_space<vmem>>, vector<4x112xbf16>,
    %c0_70 = arith.constant 0 : index
    %c401 = arith.constant 401 : index
    %71 = vector.load %arg8[%c0_70, %c401] : memref<4x2432xbf16, #tpu.memory_space<vmem>>, vector<4x112xbf16>
    tpu.vector_store %arg8[%c0_70, %c401], %67 {strides = array<i32>} : memref<4x2432xbf16, #tpu.memory_space<vmem>>, vector<4x112xbf16>,
    %c0_71 = arith.constant 0 : index
    %c529 = arith.constant 529 : index
    %72 = vector.load %arg8[%c0_71, %c529] : memref<4x2432xbf16, #tpu.memory_space<vmem>>, vector<4x112xbf16>
    tpu.vector_store %arg8[%c0_71, %c529], %67 {strides = array<i32>} : memref<4x2432xbf16, #tpu.memory_space<vmem>>, vector<4x112xbf16>,
    %c0_72 = arith.constant 0 : index
    %c657 = arith.constant 657 : index
    %73 = vector.load %arg8[%c0_72, %c657] : memref<4x2432xbf16, #tpu.memory_space<vmem>>, vector<4x112xbf16>
    tpu.vector_store %arg8[%c0_72, %c657], %67 {strides = array<i32>} : memref<4x2432xbf16, #tpu.memory_space<vmem>>, vector<4x112xbf16>,
    %c0_73 = arith.constant 0 : index
    %c785 = arith.constant 785 : index
    %74 = vector.load %arg8[%c0_73, %c785] : memref<4x2432xbf16, #tpu.memory_space<vmem>>, vector<4x112xbf16>
    tpu.vector_store %arg8[%c0_73, %c785], %67 {strides = array<i32>} : memref<4x2432xbf16, #tpu.memory_space<vmem>>, vector<4x112xbf16>,
    %c0_74 = arith.constant 0 : index
    %c913 = arith.constant 913 : index
    %75 = vector.load %arg8[%c0_74, %c913] : memref<4x2432xbf16, #tpu.memory_space<vmem>>, vector<4x112xbf16>
    tpu.vector_store %arg8[%c0_74, %c913], %67 {strides = array<i32>} : memref<4x2432xbf16, #tpu.memory_space<vmem>>, vector<4x112xbf16>,
    %c0_75 = arith.constant 0 : index
    %c1041 = arith.constant 1041 : index
    %76 = vector.load %arg8[%c0_75, %c1041] : memref<4x2432xbf16, #tpu.memory_space<vmem>>, vector<4x112xbf16>
    tpu.vector_store %arg8[%c0_75, %c1041], %67 {strides = array<i32>} : memref<4x2432xbf16, #tpu.memory_space<vmem>>, vector<4x112xbf16>,
    %c0_76 = arith.constant 0 : index
    %c1169 = arith.constant 1169 : index
    %77 = vector.load %arg8[%c0_76, %c1169] : memref<4x2432xbf16, #tpu.memory_space<vmem>>, vector<4x112xbf16>
    tpu.vector_store %arg8[%c0_76, %c1169], %67 {strides = array<i32>} : memref<4x2432xbf16, #tpu.memory_space<vmem>>, vector<4x112xbf16>,
    %c0_77 = arith.constant 0 : index
    %c1297 = arith.constant 1297 : index
    %78 = vector.load %arg8[%c0_77, %c1297] : memref<4x2432xbf16, #tpu.memory_space<vmem>>, vector<4x112xbf16>
    tpu.vector_store %arg8[%c0_77, %c1297], %67 {strides = array<i32>} : memref<4x2432xbf16, #tpu.memory_space<vmem>>, vector<4x112xbf16>,
    %c0_78 = arith.constant 0 : index
    %c1425 = arith.constant 1425 : index
    %79 = vector.load %arg8[%c0_78, %c1425] : memref<4x2432xbf16, #tpu.memory_space<vmem>>, vector<4x112xbf16>
    tpu.vector_store %arg8[%c0_78, %c1425], %67 {strides = array<i32>} : memref<4x2432xbf16, #tpu.memory_space<vmem>>, vector<4x112xbf16>,
    %c0_79 = arith.constant 0 : index
    %c1553 = arith.constant 1553 : index
    %80 = vector.load %arg8[%c0_79, %c1553] : memref<4x2432xbf16, #tpu.memory_space<vmem>>, vector<4x112xbf16>
    tpu.vector_store %arg8[%c0_79, %c1553], %67 {strides = array<i32>} : memref<4x2432xbf16, #tpu.memory_space<vmem>>, vector<4x112xbf16>,
    %c0_80 = arith.constant 0 : index
    %c1681 = arith.constant 1681 : index
    %81 = vector.load %arg8[%c0_80, %c1681] : memref<4x2432xbf16, #tpu.memory_space<vmem>>, vector<4x112xbf16>
    tpu.vector_store %arg8[%c0_80, %c1681], %67 {strides = array<i32>} : memref<4x2432xbf16, #tpu.memory_space<vmem>>, vector<4x112xbf16>,
    %c0_81 = arith.constant 0 : index
    %c1809 = arith.constant 1809 : index
    %82 = vector.load %arg8[%c0_81, %c1809] : memref<4x2432xbf16, #tpu.memory_space<vmem>>, vector<4x112xbf16>
    tpu.vector_store %arg8[%c0_81, %c1809], %67 {strides = array<i32>} : memref<4x2432xbf16, #tpu.memory_space<vmem>>, vector<4x112xbf16>,
    %c0_82 = arith.constant 0 : index
    %c1937 = arith.constant 1937 : index
    %83 = vector.load %arg8[%c0_82, %c1937] : memref<4x2432xbf16, #tpu.memory_space<vmem>>, vector<4x112xbf16>
    tpu.vector_store %arg8[%c0_82, %c1937], %67 {strides = array<i32>} : memref<4x2432xbf16, #tpu.memory_space<vmem>>, vector<4x112xbf16>,
    %c0_83 = arith.constant 0 : index
    %c2065 = arith.constant 2065 : index
    %84 = vector.load %arg8[%c0_83, %c2065] : memref<4x2432xbf16, #tpu.memory_space<vmem>>, vector<4x112xbf16>
    tpu.vector_store %arg8[%c0_83, %c2065], %67 {strides = array<i32>} : memref<4x2432xbf16, #tpu.memory_space<vmem>>, vector<4x112xbf16>,
    %c0_84 = arith.constant 0 : index
    %c2193 = arith.constant 2193 : index
    %85 = vector.load %arg8[%c0_84, %c2193] : memref<4x2432xbf16, #tpu.memory_space<vmem>>, vector<4x112xbf16>
    tpu.vector_store %arg8[%c0_84, %c2193], %67 {strides = array<i32>} : memref<4x2432xbf16, #tpu.memory_space<vmem>>, vector<4x112xbf16>,
    %cst_85 = arith.constant 0.000000e+00 : bf16
    %86 = vector.broadcast %cst_85 : bf16 to vector<4x128xbf16>
    %c0_i32 = arith.constant 0 : i32
    %87 = arith.cmpi eq, %arg1, %c0_i32 : i32
    %88 = arith.extui %87 : i1 to i32
    %c0_i32_86 = arith.constant 0 : i32
    %89 = arith.cmpi ne, %88, %c0_i32_86 : i32
    scf.if %89 {
      %c0_205 = arith.constant 0 : index
      %c0_206 = arith.constant 0 : index
      %211 = vector.load %arg8[%c0_205, %c0_206] : memref<4x2432xbf16, #tpu.memory_space<vmem>>, vector<4x128xbf16>
      tpu.vector_store %arg8[%c0_205, %c0_206], %86 {strides = array<i32>} : memref<4x2432xbf16, #tpu.memory_space<vmem>>, vector<4x128xbf16>,
    } else {
    }
    %c0_i32_87 = arith.constant 0 : i32
    %90 = arith.cmpi eq, %arg1, %c0_i32_87 : i32
    %91 = arith.extui %90 : i1 to i32
    %c0_i32_88 = arith.constant 0 : i32
    %92 = arith.cmpi ne, %91, %c0_i32_88 : i32
    scf.if %92 {
      %c0_205 = arith.constant 0 : index
      %c2176 = arith.constant 2176 : index
      %211 = vector.load %arg8[%c0_205, %c2176] : memref<4x2432xbf16, #tpu.memory_space<vmem>>, vector<4x128xbf16>
      tpu.vector_store %arg8[%c0_205, %c2176], %86 {strides = array<i32>} : memref<4x2432xbf16, #tpu.memory_space<vmem>>, vector<4x128xbf16>,
    } else {
    }
    %cst_89 = arith.constant 0.000000e+00 : f32
    %93 = vector.broadcast %cst_89 : f32 to vector<4x2048xf32>
    %c0_90 = arith.constant 0 : index
    %c0_91 = arith.constant 0 : index
    %c0_92 = arith.constant 0 : index
    %94 = vector.load %arg5[%c0_90, %c0_91, %c0_92] : memref<9x4x4xbf16, #tpu.memory_space<vmem>>, vector<1x4x4xbf16>
    %95 = vector.shape_cast %94 : vector<1x4x4xbf16> to vector<4x4xbf16>
    %c0_93 = arith.constant 0 : index
    %c0_94 = arith.constant 0 : index
    %96 = vector.load %arg8[%c0_93, %c0_94] : memref<4x2432xbf16, #tpu.memory_space<vmem>>, vector<4x2048xbf16>
    %cst_95 = arith.constant dense<0.000000e+00> : vector<4x2048xf32>
    %97 = tpu.matmul %95, %96, %cst_95 {dimension_numbers = #tpu.dot_dimension_numbers<[1], [0], [0], [1], [0, 0, 1, 1], [], []>} : vector<4x4xbf16>, vector<4x2048xbf16>, vector<4x2048xf32> -> vector<4x2048xf32>
    %98 = arith.addf %93, %97 : vector<4x2048xf32>
    %c1_96 = arith.constant 1 : index
    %c0_97 = arith.constant 0 : index
    %c0_98 = arith.constant 0 : index
    %99 = vector.load %arg5[%c1_96, %c0_97, %c0_98] : memref<9x4x4xbf16, #tpu.memory_space<vmem>>, vector<1x4x4xbf16>
    %100 = vector.shape_cast %99 : vector<1x4x4xbf16> to vector<4x4xbf16>
    %c0_99 = arith.constant 0 : index
    %c1_100 = arith.constant 1 : index
    %101 = vector.load %arg8[%c0_99, %c1_100] : memref<4x2432xbf16, #tpu.memory_space<vmem>>, vector<4x2048xbf16>
    %cst_101 = arith.constant dense<0.000000e+00> : vector<4x2048xf32>
    %102 = tpu.matmul %100, %101, %cst_101 {dimension_numbers = #tpu.dot_dimension_numbers<[1], [0], [0], [1], [0, 0, 1, 1], [], []>} : vector<4x4xbf16>, vector<4x2048xbf16>, vector<4x2048xf32> -> vector<4x2048xf32>
    %103 = arith.addf %98, %102 : vector<4x2048xf32>
    %c2_102 = arith.constant 2 : index
    %c0_103 = arith.constant 0 : index
    %c0_104 = arith.constant 0 : index
    %104 = vector.load %arg5[%c2_102, %c0_103, %c0_104] : memref<9x4x4xbf16, #tpu.memory_space<vmem>>, vector<1x4x4xbf16>
    %105 = vector.shape_cast %104 : vector<1x4x4xbf16> to vector<4x4xbf16>
    %c0_105 = arith.constant 0 : index
    %c2_106 = arith.constant 2 : index
    %106 = vector.load %arg8[%c0_105, %c2_106] : memref<4x2432xbf16, #tpu.memory_space<vmem>>, vector<4x2048xbf16>
    %cst_107 = arith.constant dense<0.000000e+00> : vector<4x2048xf32>
    %107 = tpu.matmul %105, %106, %cst_107 {dimension_numbers = #tpu.dot_dimension_numbers<[1], [0], [0], [1], [0, 0, 1, 1], [], []>} : vector<4x4xbf16>, vector<4x2048xbf16>, vector<4x2048xf32> -> vector<4x2048xf32>
    %108 = arith.addf %103, %107 : vector<4x2048xf32>
    %c3_108 = arith.constant 3 : index
    %c0_109 = arith.constant 0 : index
    %c0_110 = arith.constant 0 : index
    %109 = vector.load %arg5[%c3_108, %c0_109, %c0_110] : memref<9x4x4xbf16, #tpu.memory_space<vmem>>, vector<1x4x4xbf16>
    %110 = vector.shape_cast %109 : vector<1x4x4xbf16> to vector<4x4xbf16>
    %c0_111 = arith.constant 0 : index
    %c128_112 = arith.constant 128 : index
    %111 = vector.load %arg8[%c0_111, %c128_112] : memref<4x2432xbf16, #tpu.memory_space<vmem>>, vector<4x2048xbf16>
    %cst_113 = arith.constant dense<0.000000e+00> : vector<4x2048xf32>
    %112 = tpu.matmul %110, %111, %cst_113 {dimension_numbers = #tpu.dot_dimension_numbers<[1], [0], [0], [1], [0, 0, 1, 1], [], []>} : vector<4x4xbf16>, vector<4x2048xbf16>, vector<4x2048xf32> -> vector<4x2048xf32>
    %113 = arith.addf %108, %112 : vector<4x2048xf32>
    %c4_114 = arith.constant 4 : index
    %c0_115 = arith.constant 0 : index
    %c0_116 = arith.constant 0 : index
    %114 = vector.load %arg5[%c4_114, %c0_115, %c0_116] : memref<9x4x4xbf16, #tpu.memory_space<vmem>>, vector<1x4x4xbf16>
    %115 = vector.shape_cast %114 : vector<1x4x4xbf16> to vector<4x4xbf16>
    %c0_117 = arith.constant 0 : index
    %c129_118 = arith.constant 129 : index
    %116 = vector.load %arg8[%c0_117, %c129_118] : memref<4x2432xbf16, #tpu.memory_space<vmem>>, vector<4x2048xbf16>
    %cst_119 = arith.constant dense<0.000000e+00> : vector<4x2048xf32>
    %117 = tpu.matmul %115, %116, %cst_119 {dimension_numbers = #tpu.dot_dimension_numbers<[1], [0], [0], [1], [0, 0, 1, 1], [], []>} : vector<4x4xbf16>, vector<4x2048xbf16>, vector<4x2048xf32> -> vector<4x2048xf32>
    %118 = arith.addf %113, %117 : vector<4x2048xf32>
    %c5_120 = arith.constant 5 : index
    %c0_121 = arith.constant 0 : index
    %c0_122 = arith.constant 0 : index
    %119 = vector.load %arg5[%c5_120, %c0_121, %c0_122] : memref<9x4x4xbf16, #tpu.memory_space<vmem>>, vector<1x4x4xbf16>
    %120 = vector.shape_cast %119 : vector<1x4x4xbf16> to vector<4x4xbf16>
    %c0_123 = arith.constant 0 : index
    %c130_124 = arith.constant 130 : index
    %121 = vector.load %arg8[%c0_123, %c130_124] : memref<4x2432xbf16, #tpu.memory_space<vmem>>, vector<4x2048xbf16>
    %cst_125 = arith.constant dense<0.000000e+00> : vector<4x2048xf32>
    %122 = tpu.matmul %120, %121, %cst_125 {dimension_numbers = #tpu.dot_dimension_numbers<[1], [0], [0], [1], [0, 0, 1, 1], [], []>} : vector<4x4xbf16>, vector<4x2048xbf16>, vector<4x2048xf32> -> vector<4x2048xf32>
    %123 = arith.addf %118, %122 : vector<4x2048xf32>
    %c6_126 = arith.constant 6 : index
    %c0_127 = arith.constant 0 : index
    %c0_128 = arith.constant 0 : index
    %124 = vector.load %arg5[%c6_126, %c0_127, %c0_128] : memref<9x4x4xbf16, #tpu.memory_space<vmem>>, vector<1x4x4xbf16>
    %125 = vector.shape_cast %124 : vector<1x4x4xbf16> to vector<4x4xbf16>
    %c0_129 = arith.constant 0 : index
    %c256_130 = arith.constant 256 : index
    %126 = vector.load %arg8[%c0_129, %c256_130] : memref<4x2432xbf16, #tpu.memory_space<vmem>>, vector<4x2048xbf16>
    %cst_131 = arith.constant dense<0.000000e+00> : vector<4x2048xf32>
    %127 = tpu.matmul %125, %126, %cst_131 {dimension_numbers = #tpu.dot_dimension_numbers<[1], [0], [0], [1], [0, 0, 1, 1], [], []>} : vector<4x4xbf16>, vector<4x2048xbf16>, vector<4x2048xf32> -> vector<4x2048xf32>
    %128 = arith.addf %123, %127 : vector<4x2048xf32>
    %c7_132 = arith.constant 7 : index
    %c0_133 = arith.constant 0 : index
    %c0_134 = arith.constant 0 : index
    %129 = vector.load %arg5[%c7_132, %c0_133, %c0_134] : memref<9x4x4xbf16, #tpu.memory_space<vmem>>, vector<1x4x4xbf16>
    %130 = vector.shape_cast %129 : vector<1x4x4xbf16> to vector<4x4xbf16>
    %c0_135 = arith.constant 0 : index
    %c257_136 = arith.constant 257 : index
    %131 = vector.load %arg8[%c0_135, %c257_136] : memref<4x2432xbf16, #tpu.memory_space<vmem>>, vector<4x2048xbf16>
    %cst_137 = arith.constant dense<0.000000e+00> : vector<4x2048xf32>
    %132 = tpu.matmul %130, %131, %cst_137 {dimension_numbers = #tpu.dot_dimension_numbers<[1], [0], [0], [1], [0, 0, 1, 1], [], []>} : vector<4x4xbf16>, vector<4x2048xbf16>, vector<4x2048xf32> -> vector<4x2048xf32>
    %133 = arith.addf %128, %132 : vector<4x2048xf32>
    %c8_138 = arith.constant 8 : index
    %c0_139 = arith.constant 0 : index
    %c0_140 = arith.constant 0 : index
    %134 = vector.load %arg5[%c8_138, %c0_139, %c0_140] : memref<9x4x4xbf16, #tpu.memory_space<vmem>>, vector<1x4x4xbf16>
    %135 = vector.shape_cast %134 : vector<1x4x4xbf16> to vector<4x4xbf16>
    %c0_141 = arith.constant 0 : index
    %c258_142 = arith.constant 258 : index
    %136 = vector.load %arg8[%c0_141, %c258_142] : memref<4x2432xbf16, #tpu.memory_space<vmem>>, vector<4x2048xbf16>
    %cst_143 = arith.constant dense<0.000000e+00> : vector<4x2048xf32>
    %137 = tpu.matmul %135, %136, %cst_143 {dimension_numbers = #tpu.dot_dimension_numbers<[1], [0], [0], [1], [0, 0, 1, 1], [], []>} : vector<4x4xbf16>, vector<4x2048xbf16>, vector<4x2048xf32> -> vector<4x2048xf32>
    %138 = arith.addf %133, %137 : vector<4x2048xf32>
    %c0_144 = arith.constant 0 : index
    %c0_145 = arith.constant 0 : index
    %139 = vector.load %arg6[%c0_144, %c0_145] : memref<4x1xf32, #tpu.memory_space<vmem>>, vector<4x1xf32>
    %140 = vector.broadcast %139 : vector<4x1xf32> to vector<4x2048xf32>
    %141 = arith.addf %138, %140 : vector<4x2048xf32>
    %cst_146 = arith.constant 0.000000e+00 : f32
    %142 = vector.broadcast %cst_146 : f32 to vector<4x2048xf32>
    %143 = arith.cmpf oge, %141, %142 : vector<4x2048xf32>
    %cst_147 = arith.constant 8.000000e-01 : f32
    %144 = vector.broadcast %cst_147 : f32 to vector<4x2048xf32>
    %145 = arith.mulf %144, %141 : vector<4x2048xf32>
    %146 = arith.select %143, %141, %145 : vector<4x2048xi1>, vector<4x2048xf32>
    %147 = vector.extract_strided_slice %146 {offsets = [0, 0], sizes = [4, 16], strides = [1, 1]} : vector<4x2048xf32> to vector<4x16xf32>
    %c0_148 = arith.constant 0 : index
    %c0_149 = arith.constant 0 : index
    %c0_150 = arith.constant 0 : index
    %c0_151 = arith.constant 0 : index
    %148 = vector.load %arg7[%c0_148, %c0_149, %c0_150, %c0_151] : memref<1x4x16x16xf32, #tpu.memory_space<vmem>>, vector<1x4x1x16xf32>
    %149 = vector.shape_cast %148 : vector<1x4x1x16xf32> to vector<4x16xf32>
    %150 = vector.shape_cast %147 : vector<4x16xf32> to vector<1x4x1x16xf32>
    tpu.vector_store %arg7[%c0_148, %c0_149, %c0_150, %c0_151], %150 {strides = array<i32>} : memref<1x4x16x16xf32, #tpu.memory_space<vmem>>, vector<1x4x1x16xf32>,
    %151 = vector.extract_strided_slice %146 {offsets = [0, 128], sizes = [4, 16], strides = [1, 1]} : vector<4x2048xf32> to vector<4x16xf32>
    %c0_152 = arith.constant 0 : index
    %c0_153 = arith.constant 0 : index
    %c1_154 = arith.constant 1 : index
    %c0_155 = arith.constant 0 : index
    %152 = vector.load %arg7[%c0_152, %c0_153, %c1_154, %c0_155] : memref<1x4x16x16xf32, #tpu.memory_space<vmem>>, vector<1x4x1x16xf32>
    %153 = vector.shape_cast %152 : vector<1x4x1x16xf32> to vector<4x16xf32>
    %154 = vector.shape_cast %151 : vector<4x16xf32> to vector<1x4x1x16xf32>
    tpu.vector_store %arg7[%c0_152, %c0_153, %c1_154, %c0_155], %154 {strides = array<i32>} : memref<1x4x16x16xf32, #tpu.memory_space<vmem>>, vector<1x4x1x16xf32>,
    %155 = vector.extract_strided_slice %146 {offsets = [0, 256], sizes = [4, 16], strides = [1, 1]} : vector<4x2048xf32> to vector<4x16xf32>
    %c0_156 = arith.constant 0 : index
    %c0_157 = arith.constant 0 : index
    %c2_158 = arith.constant 2 : index
    %c0_159 = arith.constant 0 : index
    %156 = vector.load %arg7[%c0_156, %c0_157, %c2_158, %c0_159] : memref<1x4x16x16xf32, #tpu.memory_space<vmem>>, vector<1x4x1x16xf32>
    %157 = vector.shape_cast %156 : vector<1x4x1x16xf32> to vector<4x16xf32>
    %158 = vector.shape_cast %155 : vector<4x16xf32> to vector<1x4x1x16xf32>
    tpu.vector_store %arg7[%c0_156, %c0_157, %c2_158, %c0_159], %158 {strides = array<i32>} : memref<1x4x16x16xf32, #tpu.memory_space<vmem>>, vector<1x4x1x16xf32>,
    %159 = vector.extract_strided_slice %146 {offsets = [0, 384], sizes = [4, 16], strides = [1, 1]} : vector<4x2048xf32> to vector<4x16xf32>
    %c0_160 = arith.constant 0 : index
    %c0_161 = arith.constant 0 : index
    %c3_162 = arith.constant 3 : index
    %c0_163 = arith.constant 0 : index
    %160 = vector.load %arg7[%c0_160, %c0_161, %c3_162, %c0_163] : memref<1x4x16x16xf32, #tpu.memory_space<vmem>>, vector<1x4x1x16xf32>
    %161 = vector.shape_cast %160 : vector<1x4x1x16xf32> to vector<4x16xf32>
    %162 = vector.shape_cast %159 : vector<4x16xf32> to vector<1x4x1x16xf32>
    tpu.vector_store %arg7[%c0_160, %c0_161, %c3_162, %c0_163], %162 {strides = array<i32>} : memref<1x4x16x16xf32, #tpu.memory_space<vmem>>, vector<1x4x1x16xf32>,
    %163 = vector.extract_strided_slice %146 {offsets = [0, 512], sizes = [4, 16], strides = [1, 1]} : vector<4x2048xf32> to vector<4x16xf32>
    %c0_164 = arith.constant 0 : index
    %c0_165 = arith.constant 0 : index
    %c4_166 = arith.constant 4 : index
    %c0_167 = arith.constant 0 : index
    %164 = vector.load %arg7[%c0_164, %c0_165, %c4_166, %c0_167] : memref<1x4x16x16xf32, #tpu.memory_space<vmem>>, vector<1x4x1x16xf32>
    %165 = vector.shape_cast %164 : vector<1x4x1x16xf32> to vector<4x16xf32>
    %166 = vector.shape_cast %163 : vector<4x16xf32> to vector<1x4x1x16xf32>
    tpu.vector_store %arg7[%c0_164, %c0_165, %c4_166, %c0_167], %166 {strides = array<i32>} : memref<1x4x16x16xf32, #tpu.memory_space<vmem>>, vector<1x4x1x16xf32>,
    %167 = vector.extract_strided_slice %146 {offsets = [0, 640], sizes = [4, 16], strides = [1, 1]} : vector<4x2048xf32> to vector<4x16xf32>
    %c0_168 = arith.constant 0 : index
    %c0_169 = arith.constant 0 : index
    %c5_170 = arith.constant 5 : index
    %c0_171 = arith.constant 0 : index
    %168 = vector.load %arg7[%c0_168, %c0_169, %c5_170, %c0_171] : memref<1x4x16x16xf32, #tpu.memory_space<vmem>>, vector<1x4x1x16xf32>
    %169 = vector.shape_cast %168 : vector<1x4x1x16xf32> to vector<4x16xf32>
    %170 = vector.shape_cast %167 : vector<4x16xf32> to vector<1x4x1x16xf32>
    tpu.vector_store %arg7[%c0_168, %c0_169, %c5_170, %c0_171], %170 {strides = array<i32>} : memref<1x4x16x16xf32, #tpu.memory_space<vmem>>, vector<1x4x1x16xf32>,
    %171 = vector.extract_strided_slice %146 {offsets = [0, 768], sizes = [4, 16], strides = [1, 1]} : vector<4x2048xf32> to vector<4x16xf32>
    %c0_172 = arith.constant 0 : index
    %c0_173 = arith.constant 0 : index
    %c6_174 = arith.constant 6 : index
    %c0_175 = arith.constant 0 : index
    %172 = vector.load %arg7[%c0_172, %c0_173, %c6_174, %c0_175] : memref<1x4x16x16xf32, #tpu.memory_space<vmem>>, vector<1x4x1x16xf32>
    %173 = vector.shape_cast %172 : vector<1x4x1x16xf32> to vector<4x16xf32>
    %174 = vector.shape_cast %171 : vector<4x16xf32> to vector<1x4x1x16xf32>
    tpu.vector_store %arg7[%c0_172, %c0_173, %c6_174, %c0_175], %174 {strides = array<i32>} : memref<1x4x16x16xf32, #tpu.memory_space<vmem>>, vector<1x4x1x16xf32>,
    %175 = vector.extract_strided_slice %146 {offsets = [0, 896], sizes = [4, 16], strides = [1, 1]} : vector<4x2048xf32> to vector<4x16xf32>
    %c0_176 = arith.constant 0 : index
    %c0_177 = arith.constant 0 : index
    %c7_178 = arith.constant 7 : index
    %c0_179 = arith.constant 0 : index
    %176 = vector.load %arg7[%c0_176, %c0_177, %c7_178, %c0_179] : memref<1x4x16x16xf32, #tpu.memory_space<vmem>>, vector<1x4x1x16xf32>
    %177 = vector.shape_cast %176 : vector<1x4x1x16xf32> to vector<4x16xf32>
    %178 = vector.shape_cast %175 : vector<4x16xf32> to vector<1x4x1x16xf32>
    tpu.vector_store %arg7[%c0_176, %c0_177, %c7_178, %c0_179], %178 {strides = array<i32>} : memref<1x4x16x16xf32, #tpu.memory_space<vmem>>, vector<1x4x1x16xf32>,
    %179 = vector.extract_strided_slice %146 {offsets = [0, 1024], sizes = [4, 16], strides = [1, 1]} : vector<4x2048xf32> to vector<4x16xf32>
    %c0_180 = arith.constant 0 : index
    %c0_181 = arith.constant 0 : index
    %c8_182 = arith.constant 8 : index
    %c0_183 = arith.constant 0 : index
    %180 = vector.load %arg7[%c0_180, %c0_181, %c8_182, %c0_183] : memref<1x4x16x16xf32, #tpu.memory_space<vmem>>, vector<1x4x1x16xf32>
    %181 = vector.shape_cast %180 : vector<1x4x1x16xf32> to vector<4x16xf32>
    %182 = vector.shape_cast %179 : vector<4x16xf32> to vector<1x4x1x16xf32>
    tpu.vector_store %arg7[%c0_180, %c0_181, %c8_182, %c0_183], %182 {strides = array<i32>} : memref<1x4x16x16xf32, #tpu.memory_space<vmem>>, vector<1x4x1x16xf32>,
    %183 = vector.extract_strided_slice %146 {offsets = [0, 1152], sizes = [4, 16], strides = [1, 1]} : vector<4x2048xf32> to vector<4x16xf32>
    %c0_184 = arith.constant 0 : index
    %c0_185 = arith.constant 0 : index
    %c9 = arith.constant 9 : index
    %c0_186 = arith.constant 0 : index
    %184 = vector.load %arg7[%c0_184, %c0_185, %c9, %c0_186] : memref<1x4x16x16xf32, #tpu.memory_space<vmem>>, vector<1x4x1x16xf32>
    %185 = vector.shape_cast %184 : vector<1x4x1x16xf32> to vector<4x16xf32>
    %186 = vector.shape_cast %183 : vector<4x16xf32> to vector<1x4x1x16xf32>
    tpu.vector_store %arg7[%c0_184, %c0_185, %c9, %c0_186], %186 {strides = array<i32>} : memref<1x4x16x16xf32, #tpu.memory_space<vmem>>, vector<1x4x1x16xf32>,
    %187 = vector.extract_strided_slice %146 {offsets = [0, 1280], sizes = [4, 16], strides = [1, 1]} : vector<4x2048xf32> to vector<4x16xf32>
    %c0_187 = arith.constant 0 : index
    %c0_188 = arith.constant 0 : index
    %c10 = arith.constant 10 : index
    %c0_189 = arith.constant 0 : index
    %188 = vector.load %arg7[%c0_187, %c0_188, %c10, %c0_189] : memref<1x4x16x16xf32, #tpu.memory_space<vmem>>, vector<1x4x1x16xf32>
    %189 = vector.shape_cast %188 : vector<1x4x1x16xf32> to vector<4x16xf32>
    %190 = vector.shape_cast %187 : vector<4x16xf32> to vector<1x4x1x16xf32>
    tpu.vector_store %arg7[%c0_187, %c0_188, %c10, %c0_189], %190 {strides = array<i32>} : memref<1x4x16x16xf32, #tpu.memory_space<vmem>>, vector<1x4x1x16xf32>,
    %191 = vector.extract_strided_slice %146 {offsets = [0, 1408], sizes = [4, 16], strides = [1, 1]} : vector<4x2048xf32> to vector<4x16xf32>
    %c0_190 = arith.constant 0 : index
    %c0_191 = arith.constant 0 : index
    %c11 = arith.constant 11 : index
    %c0_192 = arith.constant 0 : index
    %192 = vector.load %arg7[%c0_190, %c0_191, %c11, %c0_192] : memref<1x4x16x16xf32, #tpu.memory_space<vmem>>, vector<1x4x1x16xf32>
    %193 = vector.shape_cast %192 : vector<1x4x1x16xf32> to vector<4x16xf32>
    %194 = vector.shape_cast %191 : vector<4x16xf32> to vector<1x4x1x16xf32>
    tpu.vector_store %arg7[%c0_190, %c0_191, %c11, %c0_192], %194 {strides = array<i32>} : memref<1x4x16x16xf32, #tpu.memory_space<vmem>>, vector<1x4x1x16xf32>,
    %195 = vector.extract_strided_slice %146 {offsets = [0, 1536], sizes = [4, 16], strides = [1, 1]} : vector<4x2048xf32> to vector<4x16xf32>
    %c0_193 = arith.constant 0 : index
    %c0_194 = arith.constant 0 : index
    %c12 = arith.constant 12 : index
    %c0_195 = arith.constant 0 : index
    %196 = vector.load %arg7[%c0_193, %c0_194, %c12, %c0_195] : memref<1x4x16x16xf32, #tpu.memory_space<vmem>>, vector<1x4x1x16xf32>
    %197 = vector.shape_cast %196 : vector<1x4x1x16xf32> to vector<4x16xf32>
    %198 = vector.shape_cast %195 : vector<4x16xf32> to vector<1x4x1x16xf32>
    tpu.vector_store %arg7[%c0_193, %c0_194, %c12, %c0_195], %198 {strides = array<i32>} : memref<1x4x16x16xf32, #tpu.memory_space<vmem>>, vector<1x4x1x16xf32>,
    %199 = vector.extract_strided_slice %146 {offsets = [0, 1664], sizes = [4, 16], strides = [1, 1]} : vector<4x2048xf32> to vector<4x16xf32>
    %c0_196 = arith.constant 0 : index
    %c0_197 = arith.constant 0 : index
    %c13 = arith.constant 13 : index
    %c0_198 = arith.constant 0 : index
    %200 = vector.load %arg7[%c0_196, %c0_197, %c13, %c0_198] : memref<1x4x16x16xf32, #tpu.memory_space<vmem>>, vector<1x4x1x16xf32>
    %201 = vector.shape_cast %200 : vector<1x4x1x16xf32> to vector<4x16xf32>
    %202 = vector.shape_cast %199 : vector<4x16xf32> to vector<1x4x1x16xf32>
    tpu.vector_store %arg7[%c0_196, %c0_197, %c13, %c0_198], %202 {strides = array<i32>} : memref<1x4x16x16xf32, #tpu.memory_space<vmem>>, vector<1x4x1x16xf32>,
    %203 = vector.extract_strided_slice %146 {offsets = [0, 1792], sizes = [4, 16], strides = [1, 1]} : vector<4x2048xf32> to vector<4x16xf32>
    %c0_199 = arith.constant 0 : index
    %c0_200 = arith.constant 0 : index
    %c14 = arith.constant 14 : index
    %c0_201 = arith.constant 0 : index
    %204 = vector.load %arg7[%c0_199, %c0_200, %c14, %c0_201] : memref<1x4x16x16xf32, #tpu.memory_space<vmem>>, vector<1x4x1x16xf32>
    %205 = vector.shape_cast %204 : vector<1x4x1x16xf32> to vector<4x16xf32>
    %206 = vector.shape_cast %203 : vector<4x16xf32> to vector<1x4x1x16xf32>
    tpu.vector_store %arg7[%c0_199, %c0_200, %c14, %c0_201], %206 {strides = array<i32>} : memref<1x4x16x16xf32, #tpu.memory_space<vmem>>, vector<1x4x1x16xf32>,
    %207 = vector.extract_strided_slice %146 {offsets = [0, 1920], sizes = [4, 16], strides = [1, 1]} : vector<4x2048xf32> to vector<4x16xf32>
    %c0_202 = arith.constant 0 : index
    %c0_203 = arith.constant 0 : index
    %c15 = arith.constant 15 : index
    %c0_204 = arith.constant 0 : index
    %208 = vector.load %arg7[%c0_202, %c0_203, %c15, %c0_204] : memref<1x4x16x16xf32, #tpu.memory_space<vmem>>, vector<1x4x1x16xf32>
    %209 = vector.shape_cast %208 : vector<1x4x1x16xf32> to vector<4x16xf32>
    %210 = vector.shape_cast %207 : vector<4x16xf32> to vector<1x4x1x16xf32>
    tpu.vector_store %arg7[%c0_202, %c0_203, %c15, %c0_204], %210 {strides = array<i32>} : memref<1x4x16x16xf32, #tpu.memory_space<vmem>>, vector<1x4x1x16xf32>,
    return
  }
  func.func @transform_0(%arg0: i32, %arg1: i32) -> (i32, i32, i32, i32) {
    %c0_i32 = arith.constant 0 : i32
    %c0_i32_0 = arith.constant 0 : i32
    %c0_i32_1 = arith.constant 0 : i32
    return %arg0, %arg1, %c0_i32, %c0_i32_0 : i32, i32, i32, i32
  }
  func.func @transform_1(%arg0: i32, %arg1: i32) -> (i32, i32, i32) {
    %c0_i32 = arith.constant 0 : i32
    %c0_i32_0 = arith.constant 0 : i32
    %c0_i32_1 = arith.constant 0 : i32
    %c0_i32_2 = arith.constant 0 : i32
    return %c0_i32, %c0_i32_0, %c0_i32_1 : i32, i32, i32
  }
  func.func @transform_2(%arg0: i32, %arg1: i32) -> (i32, i32) {
    %c0_i32 = arith.constant 0 : i32
    %c0_i32_0 = arith.constant 0 : i32
    %c0_i32_1 = arith.constant 0 : i32
    return %c0_i32, %c0_i32_0 : i32, i32
  }
  func.func @transform_3(%arg0: i32, %arg1: i32) -> (i32, i32, i32) {
    %c0_i32 = arith.constant 0 : i32
    %c0_i32_0 = arith.constant 0 : i32
    %c0_i32_1 = arith.constant 0 : i32
    %c0_i32_2 = arith.constant 0 : i32
    return %c0_i32, %c0_i32_0, %c0_i32_1 : i32, i32, i32
  }
  func.func @transform_4(%arg0: i32, %arg1: i32) -> (i32, i32) {
    %c0_i32 = arith.constant 0 : i32
    %c0_i32_0 = arith.constant 0 : i32
    %c0_i32_1 = arith.constant 0 : i32
    return %c0_i32, %c0_i32_0 : i32, i32
  }
  func.func @transform_5(%arg0: i32, %arg1: i32) -> (i32, i32, i32, i32) {
    %c0_i32 = arith.constant 0 : i32
    %c0_i32_0 = arith.constant 0 : i32
    %c0_i32_1 = arith.constant 0 : i32
    return %arg0, %c0_i32, %arg1, %c0_i32_0 : i32, i32, i32, i32
  }
}

</mosaic_0001>

<bundles_post_ra>
// kernel: mul.4
= control target key start
LH: loop header
LB: loop body
LE: loop exit
PB: predicated region body
PF: predicated region fallthrough
CT: control target
= control target key end

     0   :  { %s52_s22 = smov 12  ;;  %s61_s23 = smov 3  ;;  %vm44_vm0 = vcmask 1043458   ;;  %vm46_vm1 = vcmask 31744   ;;  %vm58_vm2 = vcmask 130144   ;;  %vm70_vm3 = vcmask 97344   ;;  %s150_s0 = inlined_call_operand.vmem [shape: f32[2,2,4,4], index: 0, kind: input, shape index: {}]   ;;  %s151_s1 = inlined_call_operand.vmem [shape: f32[16,4], index: 1, kind: output, shape index: {}]  }
   0x1   :  { %v96_v0 = vld [vmem:[%s150_s0 + $0xe] sm:$0x3]  ;;  %v98_v1 = vld [vmem:[%s150_s0 + $0xa] sm:$0x3]  ;;  %v100_v2 = vld [vmem:[%s150_s0 + $0x6] sm:$0x3] }
   0x2   :  { %8 = vst [vmem:[#allocation1 + $0x38] sm:$0x3] %v96_v0  ;;  %18 = vst [vmem:[#allocation1 + $0x28] sm:$0x3] %v98_v1  ;;  %v102_v3 = vld [vmem:[%s150_s0 + $0x2] sm:$0x3] }
   0x3   :  { %28 = vst [vmem:[#allocation1 + $0x18] sm:$0x3] %v100_v2  ;;  %37 = vst [vmem:[#allocation1 + $0x8] sm:$0x3] %v102_v3  ;;  %v97_v4 = vld [vmem:[%s150_s0 + $0xc] sm:$0x3] }
   0x4   :  { %v99_v5 = vld [vmem:[%s150_s0 + $0x8] sm:$0x3]  ;;  %13 = vst [vmem:[#allocation1 + $0x30] sm:$0x3] %v97_v4  ;;  %v101_v6 = vld [vmem:[%s150_s0 + $0x4] sm:$0x3] }
   0x5   :  { %23 = vst [vmem:[#allocation1 + $0x20] sm:$0x3] %v99_v5  ;;  %v38_v7 = vld [vmem:[%s150_s0] sm:$0x3]  ;;  %s49_s0 = smov 3  ;;  %s64_s24 = smov 12 }
   0x6   :  { %33 = vst [vmem:[#allocation1 + $0x10] sm:$0x3] %v101_v6  ;;  %39 = vst [vmem:[#allocation1] sm:$0x3] %v38_v7  ;;  %s73_s25 = smov 3  ;;  %s76_s26 = smov 12 }
   0x7   :  { %s40_s27 = smov 3  ;;  %s42_s28 = smov 12  ;;  %vm82_vm4 = vcmask 64544  }
   0x8   :  { %s106_s29 = smov 12   ;;  %s107_s30 = smov 4  }
   0x9   :  { %s108_s2 = smov 8  }
   0xa   :  { %v50_v8 = vld [vmem:[#allocation1 + $0x9] ss:$16 sm:%s49_s0]   ;;  %v62_v10 = vld [vmem:[#allocation1 + $0x8] ss:$16 sm:%s61_s23]  }
   0xb   :  { %v53_v9 = vld [vmem:[#allocation1 + $0x9] ss:$16 sm:%s52_s22]   ;;  %v65_v12 = vld [vmem:[#allocation1 + $0x8] ss:$16 sm:%s64_s24]  }
   0xc   :  { %v55_v11 = vsel %vm44_vm0, %v53_v9, %v50_v8  ;;  %v67_v16 = vsel %vm44_vm0, %v65_v12, %v62_v10 }
   0xd   :  { %56 = vrot.lane.b32.xlu0 %v55_v11, %s106_s29  ;;  %v74_v13 = vld [vmem:[#allocation1 + $0x1] ss:$16 sm:%s73_s25]   ;;  %v41_v15 = vld [vmem:[#allocation1] ss:$16 sm:%s40_s27]  }
   0xe   :  { %v77_v14 = vld [vmem:[#allocation1 + $0x1] ss:$16 sm:%s76_s26]   ;;  %v43_v18 = vld [vmem:[#allocation1] ss:$16 sm:%s42_s28]  }
   0xf   :  { %v79_v17 = vsel %vm44_vm0, %v77_v14, %v74_v13  ;;  %v45_v19 = vsel %vm44_vm0, %v43_v18, %v41_v15 }
  0x10   :  { %80 = vrot.lane.b32.xlu1 %v79_v17, %s107_s30  ;;  %47 = vst.msk [vmem:[#allocation0] sm:$0xf] %vm46_vm1, %v45_v19  }
  0x11   :  { %68 = vrot.lane.b32.xlu0 %v67_v16, %s108_s2 }
  0x7f   :  { %v57_v20 = vpop.permute.xlu0 %56  }
  0x80   :  { %59 = vst.msk [vmem:[#allocation0] sm:$0xf] %vm58_vm2, %v57_v20  }
  0x82   :  { %v81_v21 = vpop.permute.xlu1 %80  }
  0x83   :  { %v69_v22 = vpop.permute.xlu0 %68  }
  0x84   :  { %71 = vst.msk [vmem:[#allocation0] sm:$0xf] %vm70_vm3, %v69_v22  }
  0x85   :  { %83 = vst.msk [vmem:[#allocation0] sm:$0xf] %vm82_vm4, %v81_v21  }
  0x8c   :  { %v87_v23 = vld [vmem:[#allocation0] sm:$0xf] }
  0x8d   :  { %89 = vst [vmem:[%s151_s1] sm:$0xf] %v87_v23 }

// kernel: tile.1
= control target key start
LH: loop header
LB: loop body
LE: loop exit
PB: predicated region body
PF: predicated region fallthrough
CT: control target
= control target key end

     0   :  { %vm3_vm0 = vcmask 7168   ;;  %s64_s10 = smov 127   ;;  %s65_s15 = smov 125   ;;  %s114_s0 = inlined_call_operand.vmem [shape: f32[16,4], index: 0, kind: input, shape index: {}]   ;;  %s115_s1 = inlined_call_operand.vmem [shape: f32[64,1], index: 1, kind: output, shape index: {}]  }
   0x1   :  { %v23_v0 = vld [vmem:[%s114_s0] sm:$0xff]   ;;  %v49_v1 = vld [vmem:[%s114_s0 + $0x8] sm:$0xff]   ;;  %s63_s0 = smov 126  }
   0x2   :  { %24 = vrot.lane.b32.xlu1 %v23_v0, %s63_s0  ;;  %11 = vrot.lane.b32.xlu0 %v23_v0, %s64_s10  ;;  %4 = vst.msk [vmem:[%s115_s1] ss:$4 sm:$0xff] %vm3_vm0, %v23_v0   ;;  %50 = vst.msk [vmem:[%s115_s1 + $0x20] ss:$4 sm:$0xff] %vm3_vm0, %v49_v1  }
   0x6   :  { %31 = vrot.lane.b32.xlu1 %v49_v1, %s63_s0  ;;  %18 = vrot.lane.b32.xlu0 %v49_v1, %s64_s10 }
   0xa   :  { %44 = vrot.lane.b32.xlu1 %v49_v1, %s65_s15  ;;  %37 = vrot.lane.b32.xlu0 %v23_v0, %s65_s15 }
  0x74   :  { %v25_v2 = vpop.permute.xlu1 %24   ;;  %v12_v3 = vpop.permute.xlu0 %11  }
  0x75   :  { %54 = vst.msk [vmem:[%s115_s1 + $0x2] ss:$4 sm:$0xff] %vm3_vm0, %v25_v2   ;;  %51 = vst.msk [vmem:[%s115_s1 + $0x1] ss:$4 sm:$0xff] %vm3_vm0, %v12_v3  }
  0x78   :  { %v32_v4 = vpop.permute.xlu1 %31   ;;  %v19_v5 = vpop.permute.xlu0 %18  }
  0x79   :  { %56 = vst.msk [vmem:[%s115_s1 + $0x22] ss:$4 sm:$0xff] %vm3_vm0, %v32_v4   ;;  %53 = vst.msk [vmem:[%s115_s1 + $0x21] ss:$4 sm:$0xff] %vm3_vm0, %v19_v5  }
  0x7c   :  { %v45_v6 = vpop.permute.xlu1 %44   ;;  %v38_v7 = vpop.permute.xlu0 %37  }
  0x7d   :  { %59 = vst.msk [vmem:[%s115_s1 + $0x23] ss:$4 sm:$0xff] %vm3_vm0, %v45_v6   ;;  %57 = vst.msk [vmem:[%s115_s1 + $0x3] ss:$4 sm:$0xff] %vm3_vm0, %v38_v7  }

// kernel: tile.18
= control target key start
LH: loop header
LB: loop body
LE: loop exit
PB: predicated region body
PF: predicated region fallthrough
CT: control target
= control target key end

     0   :  { %s28_s0 = inlined_call_operand.vmem [shape: f32[4], index: 0, kind: input, shape index: {}]   ;;  %s29_s1 = inlined_call_operand.vmem [shape: f32[16,4], index: 1, kind: output, shape index: {}]  }
   0x1   :  { %v4_v0 = vld [vmem:[%s28_s0] ss:$0 sm:$0xff] }
   0x2   :  { %5 = vst [vmem:[%s29_s1] sm:$0xff] %v4_v0  ;;  %8 = vst [vmem:[%s29_s1 + $0x8] sm:$0xff] %v4_v0 }

// kernel: tile.13
= control target key start
LH: loop header
LB: loop body
LE: loop exit
PB: predicated region body
PF: predicated region fallthrough
CT: control target
= control target key end

     0   :  { %s22_s0 = inlined_call_operand.vmem [shape: f32[4], index: 0, kind: input, shape index: {}]   ;;  %s23_s1 = inlined_call_operand.vmem [shape: f32[4,4], index: 1, kind: output, shape index: {}]  }
   0x1   :  { %v4_v0 = vld [vmem:[%s22_s0] ss:$0 sm:$0xff] }
   0x2   :  { %5 = vst [vmem:[%s23_s1] sm:$0xf] %v4_v0 }

// kernel: tile.0
= control target key start
LH: loop header
LB: loop body
LE: loop exit
PB: predicated region body
PF: predicated region fallthrough
CT: control target
= control target key end

     0   :  { %s34_s8 = smov 125   ;;  %vm7_vm0 = vcmask 7168   ;;  %s35_s11 = smov 126   ;;  %s61_s0 = inlined_call_operand.vmem [shape: f32[4,4], index: 0, kind: input, shape index: {}]   ;;  %s62_s1 = inlined_call_operand.vmem [shape: f32[16,1], index: 1, kind: output, shape index: {}]  }
   0x1   :  { %v4_v0 = vld [vmem:[%s61_s0] sm:$0xf]  ;;  %s33_s0 = smov 127  }
   0x2   :  { %5 = vst [vmem:[#allocation0] sm:$0xf] %v4_v0 }
   0x9   :  { %v9_v1 = vld [vmem:[#allocation0] sm:$0xf]  }
   0xa   :  { %v21_v2 = vld [vmem:[#allocation0] sm:$0xf]   ;;  %10 = vrot.lane.b32.xlu0 %v9_v1, %s33_s0 }
   0xb   :  { %22 = vrot.lane.b32.xlu1 %v21_v2, %s34_s8  ;;  %v6_v3 = vld [vmem:[#allocation0] sm:$0xf]  }
   0xc   :  { %v15_v4 = vld [vmem:[#allocation0] sm:$0xf]   ;;  %8 = vst.msk [vmem:[%s62_s1] ss:$4 sm:$0xf] %vm7_vm0, %v6_v3  }
   0xe   :  { %16 = vrot.lane.b32.xlu0 %v15_v4, %s35_s11 }
  0x7c   :  { %v11_v5 = vpop.permute.xlu0 %10  }
  0x7d   :  { %v23_v6 = vpop.permute.xlu1 %22   ;;  %27 = vst.msk [vmem:[%s62_s1 + $0x1] ss:$4 sm:$0xf] %vm7_vm0, %v11_v5  }
  0x7e   :  { %29 = vst.msk [vmem:[%s62_s1 + $0x3] ss:$4 sm:$0xf] %vm7_vm0, %v23_v6  }
  0x80   :  { %v17_v7 = vpop.permute.xlu0 %16  }
  0x81   :  { %28 = vst.msk [vmem:[%s62_s1 + $0x2] ss:$4 sm:$0xf] %vm7_vm0, %v17_v7  }

// kernel: _lambda_.2
= control target key start
LH: loop header
LB: loop body
LE: loop exit
PB: predicated region body
PF: predicated region fallthrough
CT: control target
= control target key end

     0   :  { %vm45_vm0 = vcmask 1043456   ;;  %v401_v0 = vmov 0.0   ;;  %vm402_vm1 = vmmov 0   ;;  %vm41_vm2 = vcmask 64512   ;;  %s498_s0 = inlined_call_operand.vmem [shape: bf16[8,128], index: 0, kind: input, shape index: {}]   ;;  %s499_s1 = inlined_call_operand.vmem [shape: bf16[16,8], index: 1, kind: input, shape index: {}]   ;;  %s500_s2 = inlined_call_operand.vmem [shape: f32[16,1], index: 2, kind: input, shape index: {}]   ;;  %s501_s4 = inlined_call_operand.vmem [shape: f32[64,1], index: 4, kind: input, shape index: {}]   ;;  %s502_s3 = inlined_call_operand.vmem [shape: bf16[64,16], index: 3, kind: input, shape index: {}]   ;;  %s503_s5 = inlined_call_operand.vmem [shape: bf16[64,128], index: 5, kind: output, shape index: {}]  }
   0x1   :  { %375 = vmatprep.subr.bf16.mxu0 %v401_v0  ;;  %v21_v1 = vld [vmem:[%s498_s0] sm:$0xf]  ;;  %377 = vmatprep.mubr.msk.bf16.mxu0 %vm402_vm1, %v401_v0  ;;  %v403_v5 = vmov 0   ;;  %v25_v6 = vld [vmem:[%s500_s2 + $0x8] sm:$0xff]  ;;  %v107_v7 = vld [vmem:[%s501_s4 + $0x10] sm:$0xff]  ;;  %vm173_vm3 = vcmask 130048  }
   0x2   :  { %v47_v2 = vsel %vm45_vm0, %v21_v1, 0  ;;  %v396_v3 = vld [vmem:[%s499_s1] sm:$0xff]   ;;  %394 = vset.pattern.permute.xlu0 %v403_v5  ;;  %395 = vset.pattern.permute.xlu1 %v403_v5  ;;  %v111_v9 = vld [vmem:[%s501_s4 + $0x30] sm:$0xff]  ;;  %v106_v12 = vld [vmem:[%s501_s4 + $0x8] sm:$0xff] }
   0x3   :  { %v24_v4 = vld [vmem:[%s500_s2] sm:$0xff]  ;;  %376 = vmatpush3.bf16.msra.mxu0 %v47_v2  ;;  %v108_v13 = vld [vmem:[%s501_s4 + $0x18] sm:$0xff]  ;;  %v110_v14 = vld [vmem:[%s501_s4 + $0x28] sm:$0xff] }
   0x4   :  { %28 = vperm.xlu0 %394, %v24_v4   ;;  %v109_v8 = vld [vmem:[%s501_s4 + $0x20] sm:$0xff]  ;;  %v112_v15 = vld [vmem:[%s501_s4 + $0x38] sm:$0xff]  ;;  %v398_v29 = vld [vmem:[%s502_s3 + $0x8] sm:$0xff]  }
   0x5   :  { %v397_v10 = vld [vmem:[%s502_s3] sm:$0xff]   ;;  %v399_v30 = vld [vmem:[%s502_s3 + $0x10] sm:$0xff]   ;;  %v400_v31 = vld [vmem:[%s502_s3 + $0x18] sm:$0xff]  }
   0x6   :  { %378 = vmatmul.mubr.msk.bf16.vlgmr.msra.gmra.mrb[0].mxu0 %vm41_vm2, %v396_v3  ;;  %383 = vmatprep.mubr.msk.bf16.mxu1 %vm173_vm3, %v397_v10  ;;  %v105_v11 = vld [vmem:[%s501_s4] sm:$0xff] }
   0x7   :  { %115 = vperm.xlu1 %395, %v105_v11  }
   0x8   :  { %33 = vperm.xlu0 %394, %v25_v6  }
   0xb   :  { %120 = vperm.xlu1 %395, %v106_v12  }
   0xc   :  { %125 = vperm.xlu0 %394, %v107_v7  }
   0xf   :  { %130 = vperm.xlu1 %395, %v108_v13  }
  0x10   :  { %135 = vperm.xlu0 %394, %v109_v8  }
  0x13   :  { %140 = vperm.xlu1 %395, %v110_v14  }
  0x14   :  { %145 = vperm.xlu0 %394, %v111_v9  }
  0x17   :  { %150 = vperm.xlu1 %395, %v112_v15  }
  0x83   :  { %v29_v16 = vpop.permute.xlu0 %28 }
  0x86   :  { %v116_v32 = vpop.permute.xlu1 %115 }
  0x87   :  { %v34_v20 = vpop.permute.xlu0 %33 }
  0x8a   :  { %v121_v33 = vpop.permute.xlu1 %120 }
  0x8b   :  { %v126_v34 = vpop.permute.xlu0 %125 }
  0x8e   :  { %v131_v35 = vpop.permute.xlu1 %130 }
  0x8f   :  { %v136_v39 = vpop.permute.xlu0 %135 }
  0x92   :  { %v141_v45 = vpop.permute.xlu1 %140 }
  0x93   :  { %v146_v52 = vpop.permute.xlu0 %145 }
  0x96   :  { %v151_v60 = vpop.permute.xlu1 %150 }
  0xd9   :  { %v83_v17 = vpop.f32.mrb[0].mxu0 }
  0xda   :  { %v84_v18 = vadd.f32 %v83_v17, %v29_v16  ;;  %v379_v19 = vpop.f32.mrb[1].mxu0 }
  0xdb   :  { %v86_v21 = vpop.f32.mrb[2].mxu0 }
  0xdc   :  { %v92_v22 = vmul.f32 0.8, %v84_v18  ;;  %v87_v23 = vadd.f32 %v86_v21, %v34_v20  ;;  %v380_v24 = vpop.f32.mrb[3].mxu0  ;;  %vm90_vm4 = vcmp.ge.f32.partialorder %v84_v18, 0.0 }
  0xde   :  { %v93_v25 = vmul.f32 0.8, %v87_v23  ;;  %vm91_vm5 = vcmp.ge.f32.partialorder %v87_v23, 0.0  ;;  %v94_v26 = vsel %vm90_vm4, %v84_v18, %v92_v22 }
  0xe0   :  { %v95_v27 = vsel %vm91_vm5, %v87_v23, %v93_v25 }
  0xe1   :  { %v96_v28 = vpack.c.bf16 %v95_v27, %v94_v26 }
  0xe3   :  { %381 = vmatprep.subr.bf16.mxu1 %v96_v28 }
  0xe4   :  { %382 = vmatpush3.bf16.msra.mxu1 %v96_v28 }
  0xe7   :  { %384 = vmatmul.mubr.msk.bf16.vlgmr.msra.gmra.mrb[0].mxu1 %vm173_vm3, %v398_v29 }
  0xe8   :  { %387 = vmatprep.mubr.msk.bf16.mxu1 %vm173_vm3, %v399_v30 }
  0xef   :  { %388 = vmatmul.mubr.msk.bf16.gmra.mrb[4].mxu1 %vm173_vm3, %v400_v31 }
 0x1ba   :  { %v385_v36 = vpop.f32.mrb[0].mxu1 }
 0x1bb   :  { %v229_v37 = vadd.f32 %v385_v36, %v126_v34  ;;  %v220_v38 = vpop.f32.mrb[1].mxu1 }
 0x1bc   :  { %v221_v40 = vadd.f32 %v220_v38, %v116_v32  ;;  %v386_v41 = vpop.f32.mrb[2].mxu1 }
 0x1bd   :  { %v261_v42 = vmul.f32 0.8, %v229_v37  ;;  %v232_v43 = vadd.f32 %v386_v41, %v131_v35  ;;  %v223_v44 = vpop.f32.mrb[3].mxu1  ;;  %vm253_vm6 = vcmp.ge.f32.partialorder %v229_v37, 0.0 }
 0x1be   :  { %v259_v46 = vmul.f32 0.8, %v221_v40  ;;  %v224_v47 = vadd.f32 %v223_v44, %v121_v33  ;;  %vm251_vm7 = vcmp.ge.f32.partialorder %v221_v40, 0.0 }
 0x1bf   :  { %vm254_vm8 = vcmp.ge.f32.partialorder %v232_v43, 0.0  ;;  %v262_v48 = vmul.f32 0.8, %v232_v43  ;;  %v269_v50 = vsel %vm253_vm6, %v229_v37, %v261_v42 }
 0x1c0   :  { %vm252_vm9 = vcmp.ge.f32.partialorder %v224_v47, 0.0  ;;  %v260_v49 = vmul.f32 0.8, %v224_v47  ;;  %v267_v53 = vsel %vm251_vm7, %v221_v40, %v259_v46 }
 0x1c1   :  { %v270_v51 = vsel %vm254_vm8, %v232_v43, %v262_v48 }
 0x1c2   :  { %v353_v54 = vpack.c.bf16 %v270_v51, %v269_v50  ;;  %v268_v55 = vsel %vm252_vm9, %v224_v47, %v260_v49  ;;  %v389_v56 = vpop.f32.mrb[4].mxu1 }
 0x1c3   :  { %v348_v57 = vpack.c.bf16 %v268_v55, %v267_v53  ;;  %v245_v58 = vadd.f32 %v389_v56, %v146_v52  ;;  %v236_v59 = vpop.f32.mrb[5].mxu1 }
 0x1c4   :  { %365 = vst [vmem:[%s503_s5 + $0x8] sm:$0xff] %v353_v54   ;;  %v237_v61 = vadd.f32 %v236_v59, %v136_v39  ;;  %v390_v62 = vpop.f32.mrb[6].mxu1 }
 0x1c5   :  { %349 = vst [vmem:[%s503_s5] sm:$0xff] %v348_v57   ;;  %v265_v63 = vmul.f32 0.8, %v245_v58  ;;  %v248_v0 = vadd.f32 %v390_v62, %v151_v60  ;;  %v239_v1 = vpop.f32.mrb[7].mxu1  ;;  %vm257_vm10 = vcmp.ge.f32.partialorder %v245_v58, 0.0 }
 0x1c6   :  { %v263_v2 = vmul.f32 0.8, %v237_v61  ;;  %v240_v3 = vadd.f32 %v239_v1, %v141_v45  ;;  %vm255_vm11 = vcmp.ge.f32.partialorder %v237_v61, 0.0 }
 0x1c7   :  { %vm258_vm12 = vcmp.ge.f32.partialorder %v248_v0, 0.0  ;;  %v266_v4 = vmul.f32 0.8, %v248_v0  ;;  %v273_v6 = vsel %vm257_vm10, %v245_v58, %v265_v63 }
 0x1c8   :  { %vm256_vm13 = vcmp.ge.f32.partialorder %v240_v3, 0.0  ;;  %v264_v5 = vmul.f32 0.8, %v240_v3  ;;  %v271_v8 = vsel %vm255_vm11, %v237_v61, %v263_v2 }
 0x1c9   :  { %v274_v7 = vsel %vm258_vm12, %v248_v0, %v266_v4 }
 0x1ca   :  { %v363_v9 = vpack.c.bf16 %v274_v7, %v273_v6  ;;  %v272_v10 = vsel %vm256_vm13, %v240_v3, %v264_v5 }
 0x1cb   :  { %v358_v11 = vpack.c.bf16 %v272_v10, %v271_v8 }
 0x1cc   :  { %367 = vst [vmem:[%s503_s5 + $0x18] sm:$0xff] %v363_v9  }
 0x1cd   :  { %366 = vst [vmem:[%s503_s5 + $0x10] sm:$0xff] %v358_v11  }

// kernel: _lambda_.3
= control target key start
LH: loop header
LB: loop body
LE: loop exit
PB: predicated region body
PF: predicated region fallthrough
CT: control target
= control target key end

     0   :  { %10 = vsyncpa [#allocation4], 0  ;;  %s14027_s0 = inlined_call_operand.vmem [shape: bf16[2,1,8,2688], index: 0, kind: input, shape index: {}]   ;;  %s14028_s1 = inlined_call_operand.vmem [shape: bf16[9,4,8], index: 1, kind: input, shape index: {}]   ;;  %s14029_s2 = inlined_call_operand.vmem [shape: f32[4,1], index: 2, kind: input, shape index: {}]   ;;  %s14030_s3 = inlined_call_operand.vmem [shape: bf16[9,4,4], index: 3, kind: input, shape index: {}]   ;;  %s14031_s4 = inlined_call_operand.vmem [shape: f32[4,1], index: 4, kind: input, shape index: {}]   ;;  %s14032_s5 = inlined_call_operand.hbm [shape: f32[2,4,16,16], index: 5, kind: output, shape index: {}]  }
   0x1   :  { %12 = vsyncpa [#allocation4 + $0x1], 0  ;;  %s11014_s18 = smov 0   ;;  %s11016_s19 = smov 0  }
   0x2   :  { %s11018_s20 = smov 0   ;;  %s11020_s21 = smov 0  }
   0x3   :  { %s11022_s22 = smov 0   ;;  %s11024_s23 = smov 0  }
   0x4 LB: > { %s10318_s24 = sadd.s32 4294967295, %s10973_s23   ;;  %s10319_s25 = sadd.s32 4294967294, %s10973_s23   ;;  %s10973_s23 = sphi %s11024_s23, %s18_s23   ;;  %s10969_s22 = sphi %s11022_s22, %s14041_s22   ;;  %s10965_s21 = sphi %s11020_s21, %s14040_s21   ;;  %s10961_s20 = sphi %s11018_s20, %s14039_s20   ;;  %s10957_s19 = sphi %s11016_s19, %s14038_s19   ;;  %s10953_s18 = sphi %s11014_s18, %s14037_s18  }
   0x5   : > { %s30_s26 = sadd.s32 1, %s10969_s22  ;;  %s151_s27 = sadd.s32 1, %s10961_s20 }
   0x6   : > { %p32_p0 = scmp.ge.s32.totalorder %s30_s26, 2  ;;  %p161_p1 = scmp.ne.s32.totalorder %s10961_s20, %s10957_s19 }
   0x7   : > { %p162_p2 = scmp.eq.s32.totalorder %s10318_s24, 1  ;;  %p167_p3 = scmp.ne.s32.totalorder %s10957_s19, %s10953_s18 }
   0x8   : > { %s14043_s26 = smov (%p32_p0, %s30_s26), 0  ;;  %p168_p5 = scmp.eq.s32.totalorder %s10319_s25, 1 }
   0x9   : > { %p11054_p4 = por %p162_p2, %p161_p1  ;;  %s146_s29 = ssub.s32 %s10969_s22, %s14043_s26 }
   0xa   : > { %p10322_p6 = scmp.ge.s32.totalorder %s10973_s23, 1  ;;  %p149_p7 = scmp.eq.s32.totalorder %s146_s29, 0 }
   0xb   : > { %p11061_p8 = por %p168_p5, %p167_p3  ;;  %p210_p9 = scmp.lt.s32.totalorder %s10973_s23, 3 }
   0xc   : > { %s11067_s6 = scalar_select %p149_p7, %s10961_s20, %s151_s27  }
   0xd   : > { %p211_p10 = pnand %p10322_p6, %p210_p9 }
   0xe   : > { %p242_p11 = scmp.lt.s32.totalorder (!%p211_p10), %s10965_s21, 1  ;;  %v10975_v0 = vmov (!%p211_p10), 0   ;;  %s10976_s12 = smov (!%p211_p10), 127   ;;  %vm352_vm0 = vcmask (!%p211_p10), 1039360   ;;  %vm375_vm1 = vcmask (!%p211_p10), 1043456   ;;  %vm371_vm2 = vcmask (!%p211_p10), 64512  }
   0xf   : > { %214 = sbr.rel (%p211_p10) target bundleno = 1475 (0x5c3), region = 40  ;;  %462 = vmatprep.mubr.bf16.mxu0 (!%p211_p10), %v10975_v0  ;;  %503 = vmatprep.mubr.bf16.mxu1 (!%p211_p10), %v10975_v0  ;;  %s10977_s13 = smov (!%p211_p10), 126   ;;  %vm1265_vm3 = vcmask (!%p211_p10), 1031168  }
  0x10   : > { %10825 = vset.pattern.permute.xlu0 (!%p211_p10), %v10975_v0  ;;  %10826 = vset.pattern.permute.xlu1 (!%p211_p10), %v10975_v0  ;;  %s10979_s29 = smov (!%p211_p10), 1   ;;  %s239_s14 = sand.u32 (!%p211_p10), 1, %s10957_s19  }
  0x11   : > { %s13981_s25 = scalar_lea.sflag (!%p211_p10), [#allocation4], %s239_s14 }
  0x16   : > { %s243_s7 = scalar_select %p242_p11, %s10965_s21, 1 }
  0x18   : > { %s10761_s8 = smul.u32 84, %s243_s7 }
  0x1a   : > { %s11076_s11 = scalar_lea.vmem %s14027_s0, %s10761_s8 }
  0x1b   : > { %v255_v1 = vld [vmem:[%s11076_s11 + $0x8] sm:$0xff]  ;;  %v254_v2 = vld [vmem:[%s11076_s11] sm:$0xff]  ;;  %v256_v7 = vld [vmem:[%s11076_s11 + $0x10] sm:$0xff] }
  0x1c   : > { %v11082_v3 = vcombine.low %v255_v1, %v255_v1  ;;  %v11084_v4 = vcombine.low %v254_v2, %v254_v2  ;;  %v11090_v5 = vcombine.high %v255_v1, %v255_v1  ;;  %v11092_v6 = vcombine.high %v254_v2, %v254_v2  ;;  %v257_v10 = vld [vmem:[%s11076_s11 + $0x18] sm:$0xff]  ;;  %v258_v13 = vld [vmem:[%s11076_s11 + $0x20] sm:$0xff]  ;;  %v259_v16 = vld [vmem:[%s11076_s11 + $0x28] sm:$0xff] }
  0x1d   : > { %v11099_v8 = vcombine.high %v256_v7, %v256_v7  ;;  %v11101_v9 = vcombine.low %v256_v7, %v256_v7  ;;  %v11108_v11 = vcombine.high %v257_v10, %v257_v10  ;;  %v11110_v12 = vcombine.low %v257_v10, %v257_v10  ;;  %v260_v19 = vld [vmem:[%s11076_s11 + $0x30] sm:$0xff]  ;;  %v261_v22 = vld [vmem:[%s11076_s11 + $0x38] sm:$0xff]  ;;  %v262_v25 = vld [vmem:[%s11076_s11 + $0x40] sm:$0xff] }
  0x1e   : > { %318 = vrot.lane.b32.xlu1 %v11082_v3, %s10976_s12  ;;  %314 = vrot.lane.b32.xlu0 %v11084_v4, %s10976_s12  ;;  %v11117_v14 = vcombine.high %v258_v13, %v258_v13  ;;  %v11119_v15 = vcombine.low %v258_v13, %v258_v13  ;;  %v11126_v17 = vcombine.high %v259_v16, %v259_v16  ;;  %v10845_v28 = vld [vmem:[%s11076_s11 + $0x48] ss:$0 sps:$4 sm:$0xff]   ;;  %v2231_v32 = vld [vmem:[%s11076_s11 + $0xc] sm:$0xff] }
  0x1f   : > { %v11128_v18 = vcombine.low %v259_v16, %v259_v16  ;;  %v11135_v20 = vcombine.high %v260_v19, %v260_v19  ;;  %v11137_v21 = vcombine.low %v260_v19, %v260_v19  ;;  %v11144_v23 = vcombine.high %v261_v22, %v261_v22  ;;  %v2230_v29 = vld [vmem:[%s11076_s11 + $0x4] sm:$0xff]  ;;  %v2232_v35 = vld [vmem:[%s11076_s11 + $0x14] sm:$0xff]  ;;  %v2233_v38 = vld [vmem:[%s11076_s11 + $0x1c] sm:$0xff] }
  0x20   : > { %v11146_v24 = vcombine.low %v261_v22, %v261_v22  ;;  %v11153_v26 = vcombine.high %v262_v25, %v262_v25  ;;  %v11155_v27 = vcombine.low %v262_v25, %v262_v25  ;;  %v11201_v30 = vcombine.high %v2230_v29, %v2230_v29  ;;  %v2234_v41 = vld [vmem:[%s11076_s11 + $0x24] sm:$0xff]  ;;  %v2235_v44 = vld [vmem:[%s11076_s11 + $0x2c] sm:$0xff]  ;;  %v2236_v47 = vld [vmem:[%s11076_s11 + $0x34] sm:$0xff] }
  0x21   : > { %v11203_v31 = vcombine.low %v2230_v29, %v2230_v29  ;;  %v11210_v33 = vcombine.high %v2231_v32, %v2231_v32  ;;  %v11212_v34 = vcombine.low %v2231_v32, %v2231_v32  ;;  %v11219_v36 = vcombine.high %v2232_v35, %v2232_v35  ;;  %v2237_v50 = vld [vmem:[%s11076_s11 + $0x3c] sm:$0xff]  ;;  %v2238_v53 = vld [vmem:[%s11076_s11 + $0x44] sm:$0xff]  ;;  %v11282_v56 = vld [vmem:[%s11076_s11 + $0x4c] ss:$0 sps:$4 sm:$0xff]  }
  0x22   : > { %320 = vrot.lane.b32.xlu1 %v11090_v5, %s10976_s12  ;;  %316 = vrot.lane.b32.xlu0 %v11092_v6, %s10976_s12  ;;  %v11221_v37 = vcombine.low %v2232_v35, %v2232_v35  ;;  %v11228_v39 = vcombine.high %v2233_v38, %v2233_v38  ;;  %v11230_v40 = vcombine.low %v2233_v38, %v2233_v38  ;;  %v11301_v1 = vld [vmem:[%s14028_s1 + $0x2] sm:$0x3] }
  0x23   : > { %v11237_v42 = vcombine.high %v2234_v41, %v2234_v41  ;;  %v11239_v43 = vcombine.low %v2234_v41, %v2234_v41  ;;  %v11246_v45 = vcombine.high %v2235_v44, %v2235_v44  ;;  %v11248_v46 = vcombine.low %v2235_v44, %v2235_v44 }
  0x24   : > { %v11255_v48 = vcombine.high %v2236_v47, %v2236_v47  ;;  %v11257_v49 = vcombine.low %v2236_v47, %v2236_v47  ;;  %v11264_v51 = vcombine.high %v2237_v50, %v2237_v50  ;;  %v11266_v52 = vcombine.low %v2237_v50, %v2237_v50 }
  0x25   : > { %v11273_v54 = vcombine.high %v2238_v53, %v2238_v53  ;;  %v11275_v55 = vcombine.low %v2238_v53, %v2238_v53 }
  0x26   : > { %324 = vrot.lane.b32.xlu1 %v11099_v8, %s10976_s12  ;;  %322 = vrot.lane.b32.xlu0 %v11101_v9, %s10976_s12 }
  0x2a   : > { %328 = vrot.lane.b32.xlu1 %v11108_v11, %s10976_s12  ;;  %326 = vrot.lane.b32.xlu0 %v11110_v12, %s10976_s12 }
  0x2e   : > { %332 = vrot.lane.b32.xlu1 %v11117_v14, %s10976_s12  ;;  %330 = vrot.lane.b32.xlu0 %v11119_v15, %s10976_s12 }
  0x32   : > { %336 = vrot.lane.b32.xlu1 %v11126_v17, %s10976_s12  ;;  %334 = vrot.lane.b32.xlu0 %v11128_v18, %s10976_s12 }
  0x36   : > { %340 = vrot.lane.b32.xlu1 %v11135_v20, %s10976_s12  ;;  %338 = vrot.lane.b32.xlu0 %v11137_v21, %s10976_s12 }
  0x3a   : > { %344 = vrot.lane.b32.xlu1 %v11144_v23, %s10976_s12  ;;  %342 = vrot.lane.b32.xlu0 %v11146_v24, %s10976_s12 }
  0x3e   : > { %348 = vrot.lane.b32.xlu1 %v11153_v26, %s10976_s12  ;;  %346 = vrot.lane.b32.xlu0 %v11155_v27, %s10976_s12 }
  0x42   : > { %350 = vrot.lane.b32.xlu0 %v10845_v28, %s10976_s12  ;;  %1227 = vrot.lane.b32.xlu1 %v11084_v4, %s10977_s13 }
  0x46   : > { %1231 = vrot.lane.b32.xlu1 %v11082_v3, %s10977_s13  ;;  %1229 = vrot.lane.b32.xlu0 %v11092_v6, %s10977_s13 }
  0x4a   : > { %1235 = vrot.lane.b32.xlu1 %v11101_v9, %s10977_s13  ;;  %1233 = vrot.lane.b32.xlu0 %v11090_v5, %s10977_s13 }
  0x4e   : > { %1239 = vrot.lane.b32.xlu1 %v11110_v12, %s10977_s13  ;;  %1237 = vrot.lane.b32.xlu0 %v11099_v8, %s10977_s13 }
  0x52   : > { %1243 = vrot.lane.b32.xlu1 %v11119_v15, %s10977_s13  ;;  %1241 = vrot.lane.b32.xlu0 %v11108_v11, %s10977_s13 }
  0x56   : > { %1247 = vrot.lane.b32.xlu1 %v11128_v18, %s10977_s13  ;;  %1245 = vrot.lane.b32.xlu0 %v11117_v14, %s10977_s13 }
  0x5a   : > { %1251 = vrot.lane.b32.xlu1 %v11137_v21, %s10977_s13  ;;  %1249 = vrot.lane.b32.xlu0 %v11126_v17, %s10977_s13 }
  0x5e   : > { %1255 = vrot.lane.b32.xlu1 %v11146_v24, %s10977_s13  ;;  %1253 = vrot.lane.b32.xlu0 %v11135_v20, %s10977_s13 }
  0x62   : > { %1259 = vrot.lane.b32.xlu1 %v11155_v27, %s10977_s13  ;;  %1257 = vrot.lane.b32.xlu0 %v11144_v23, %s10977_s13 }
  0x66   : > { %1263 = vrot.lane.b32.xlu1 %v10845_v28, %s10977_s13  ;;  %1261 = vrot.lane.b32.xlu0 %v11153_v26, %s10977_s13 }
  0x6a   : > { %2290 = vrot.lane.b32.xlu1 %v11201_v30, %s10976_s12  ;;  %2288 = vrot.lane.b32.xlu0 %v11203_v31, %s10976_s12 }
  0x6e   : > { %2294 = vrot.lane.b32.xlu1 %v11210_v33, %s10976_s12  ;;  %2292 = vrot.lane.b32.xlu0 %v11212_v34, %s10976_s12 }
  0x72   : > { %2298 = vrot.lane.b32.xlu1 %v11219_v36, %s10976_s12  ;;  %2296 = vrot.lane.b32.xlu0 %v11221_v37, %s10976_s12 }
  0x76   : > { %2302 = vrot.lane.b32.xlu1 %v11228_v39, %s10976_s12  ;;  %2300 = vrot.lane.b32.xlu0 %v11230_v40, %s10976_s12 }
  0x7a   : > { %2306 = vrot.lane.b32.xlu1 %v11237_v42, %s10976_s12  ;;  %2304 = vrot.lane.b32.xlu0 %v11239_v43, %s10976_s12 }
  0x7e   : > { %2310 = vrot.lane.b32.xlu1 %v11246_v45, %s10976_s12  ;;  %2308 = vrot.lane.b32.xlu0 %v11248_v46, %s10976_s12 }
  0x82   : > { %2314 = vrot.lane.b32.xlu1 %v11255_v48, %s10976_s12  ;;  %2312 = vrot.lane.b32.xlu0 %v11257_v49, %s10976_s12 }
  0x86   : > { %2318 = vrot.lane.b32.xlu1 %v11264_v51, %s10976_s12  ;;  %2316 = vrot.lane.b32.xlu0 %v11266_v52, %s10976_s12 }
  0x8a   : > { %2322 = vrot.lane.b32.xlu1 %v11273_v54, %s10976_s12  ;;  %2320 = vrot.lane.b32.xlu0 %v11275_v55, %s10976_s12 }
  0x8e   : > { %2790 = vrot.lane.b32.xlu1 %v11203_v31, %s10977_s13  ;;  %2324 = vrot.lane.b32.xlu0 %v11282_v56, %s10976_s12 }
  0x90   : > { %v319_v57 = vpop.permute.xlu1 %318  ;;  %v315_v58 = vpop.permute.xlu0 %314 }
  0x92   : > { %2794 = vrot.lane.b32.xlu1 %v11212_v34, %s10977_s13  ;;  %2792 = vrot.lane.b32.xlu0 %v11201_v30, %s10977_s13 }
  0x94   : > { %v321_v59 = vpop.permute.xlu1 %320  ;;  %v317_v60 = vpop.permute.xlu0 %316 }
  0x95   : > { %v354_v61 = vsel %vm352_vm0, %v317_v60, %v319_v57  ;;  %v353_v62 = vsel %vm352_vm0, %v315_v58, %v317_v60  ;;  %v355_v2 = vsel %vm352_vm0, %v319_v57, %v321_v59 }
  0x96   : > { %10345 = vmatprep.subr.msk.bf16.mxu0 %vm375_vm1, %v354_v61  ;;  %v377_v63 = vsel %vm375_vm1, %v353_v62, 0  ;;  %2798 = vrot.lane.b32.xlu1 %v11221_v37, %s10977_s13  ;;  %v383_v16 = vsel %vm375_vm1, %v355_v2, 0 }
  0x97   : > { %431 = vmatpush1.bf16.msra.mxu0 %v377_v63  ;;  %2796 = vrot.lane.b32.xlu0 %v11210_v33, %s10977_s13 }
  0x98   : > { %v325_v7 = vpop.permute.xlu1 %324  ;;  %v323_v10 = vpop.permute.xlu0 %322 }
  0x99   : > { %v356_v13 = vsel %vm352_vm0, %v321_v59, %v323_v10  ;;  %v357_v19 = vsel %vm352_vm0, %v323_v10, %v325_v7 }
  0x9a   : > { %10346 = vmatmul.mubr.msk.bf16.vlgmr.msra.gmra.mrb[0].mxu0 %vm371_vm2, %v11301_v1  ;;  %10347 = vmatprep.subr.msk.bf16.mxu1 %vm375_vm1, %v356_v13  ;;  %v389_v29 = vsel %vm375_vm1, %v357_v19, 0 }
  0x9b   : > { %472 = vmatpush1.bf16.msra.mxu1 %v383_v16  ;;  %544 = vmatprep.mubr.bf16.mxu0 %v10975_v0 }
  0x9c   : > { %v329_v22 = vpop.permute.xlu1 %328  ;;  %v327_v25 = vpop.permute.xlu0 %326  ;;  %2802 = vrot.lane.b32.xlu1 %v11230_v40, %s10977_s13  ;;  %2800 = vrot.lane.b32.xlu0 %v11219_v36, %s10977_s13 }
  0x9d   : > { %v358_v28 = vsel %vm352_vm0, %v325_v7, %v327_v25  ;;  %v359_v32 = vsel %vm352_vm0, %v327_v25, %v329_v22 }
  0x9e   : > { %10348 = vmatmul.mubr.msk.bf16.vlgmr.msra.gmra.mrb[0].mxu1 %vm371_vm2, %v11301_v1  ;;  %10349 = vmatprep.subr.msk.bf16.mxu0 %vm375_vm1, %v358_v28  ;;  %v395_v44 = vsel %vm375_vm1, %v359_v32, 0 }
  0x9f   : > { %513 = vmatpush1.bf16.msra.mxu0 %v389_v29  ;;  %585 = vmatprep.mubr.bf16.mxu1 %v10975_v0 }
  0xa0   : > { %v333_v35 = vpop.permute.xlu1 %332  ;;  %v331_v38 = vpop.permute.xlu0 %330  ;;  %2806 = vrot.lane.b32.xlu1 %v11239_v43, %s10977_s13  ;;  %2804 = vrot.lane.b32.xlu0 %v11228_v39, %s10977_s13 }
  0xa1   : > { %v360_v41 = vsel %vm352_vm0, %v329_v22, %v331_v38  ;;  %v361_v47 = vsel %vm352_vm0, %v331_v38, %v333_v35  ;;  %v803_v38 = vsel %vm375_vm1, %v11084_v4, 0  ;;  %v809_v4 = vsel %vm375_vm1, %v11082_v3, 0 }
  0xa2   : > { %10350 = vmatmul.mubr.msk.bf16.vlgmr.msra.gmra.mrb[4].mxu0 %vm371_vm2, %v11301_v1  ;;  %10351 = vmatprep.subr.msk.bf16.mxu1 %vm375_vm1, %v360_v41  ;;  %v401_v58 = vsel %vm375_vm1, %v361_v47, 0 }
  0xa3   : > { %554 = vmatpush1.bf16.msra.mxu1 %v395_v44  ;;  %626 = vmatprep.mubr.bf16.mxu0 %v10975_v0 }
  0xa4   : > { %v337_v50 = vpop.permute.xlu1 %336  ;;  %v335_v53 = vpop.permute.xlu0 %334  ;;  %2810 = vrot.lane.b32.xlu1 %v11248_v46, %s10977_s13  ;;  %2808 = vrot.lane.b32.xlu0 %v11237_v42, %s10977_s13 }
  0xa5   : > { %v362_v57 = vsel %vm352_vm0, %v333_v35, %v335_v53  ;;  %v363_v59 = vsel %vm352_vm0, %v335_v53, %v337_v50  ;;  %v815_v53 = vsel %vm375_vm1, %v11101_v9, 0 }
  0xa6   : > { %10352 = vmatmul.mubr.msk.bf16.vlgmr.msra.gmra.mrb[4].mxu1 %vm371_vm2, %v11301_v1  ;;  %10353 = vmatprep.subr.msk.bf16.mxu0 %vm375_vm1, %v362_v57  ;;  %v407_v63 = vsel %vm375_vm1, %v363_v59, 0 }
  0xa7   : > { %595 = vmatpush1.bf16.msra.mxu0 %v401_v58  ;;  %667 = vmatprep.mubr.bf16.mxu1 %v10975_v0  ;;  %v821_v58 = vsel %vm375_vm1, %v11110_v12, 0 }
  0xa8   : > { %v341_v60 = vpop.permute.xlu1 %340  ;;  %v339_v61 = vpop.permute.xlu0 %338  ;;  %2814 = vrot.lane.b32.xlu1 %v11257_v49, %s10977_s13  ;;  %2812 = vrot.lane.b32.xlu0 %v11246_v45, %s10977_s13 }
  0xa9   : > { %v364_v62 = vsel %vm352_vm0, %v337_v50, %v339_v61  ;;  %v365_v2 = vsel %vm352_vm0, %v339_v61, %v341_v60  ;;  %v11414_v50 = vld [vmem:[%s14028_s1] sm:$0x3]  ;;  %v827_v61 = vsel %vm375_vm1, %v11119_v15, 0 }
  0xaa   : > { %10354 = vmatmul.mubr.msk.bf16.vlgmr.msra.gmra.mrb[8].mxu0 %vm371_vm2, %v11301_v1  ;;  %10355 = vmatprep.subr.msk.bf16.mxu1 %vm375_vm1, %v364_v62  ;;  %v413_v16 = vsel %vm375_vm1, %v365_v2, 0 }
  0xab   : > { %636 = vmatpush1.bf16.msra.mxu1 %v407_v63  ;;  %708 = vmatprep.mubr.bf16.mxu0 %v10975_v0  ;;  %v833_v63 = vsel %vm375_vm1, %v11128_v18, 0 }
  0xac   : > { %v345_v7 = vpop.permute.xlu1 %344  ;;  %v343_v10 = vpop.permute.xlu0 %342  ;;  %2818 = vrot.lane.b32.xlu1 %v11266_v52, %s10977_s13  ;;  %2816 = vrot.lane.b32.xlu0 %v11255_v48, %s10977_s13 }
  0xad   : > { %v366_v13 = vsel %vm352_vm0, %v341_v60, %v343_v10  ;;  %v367_v19 = vsel %vm352_vm0, %v343_v10, %v345_v7 }
  0xae   : > { %10356 = vmatmul.mubr.msk.bf16.vlgmr.msra.gmra.mrb[8].mxu1 %vm371_vm2, %v11301_v1  ;;  %10357 = vmatprep.subr.msk.bf16.mxu0 %vm375_vm1, %v366_v13  ;;  %v419_v29 = vsel %vm375_vm1, %v367_v19, 0 }
  0xaf   : > { %677 = vmatpush1.bf16.msra.mxu0 %v413_v16  ;;  %749 = vmatprep.mubr.bf16.mxu1 %v10975_v0  ;;  %v845_v16 = vsel %vm375_vm1, %v11146_v24, 0 }
  0xb0   : > { %v349_v22 = vpop.permute.xlu1 %348  ;;  %v347_v25 = vpop.permute.xlu0 %346  ;;  %2822 = vrot.lane.b32.xlu1 %v11275_v55, %s10977_s13  ;;  %2820 = vrot.lane.b32.xlu0 %v11264_v51, %s10977_s13 }
  0xb1   : > { %v368_v28 = vsel %vm352_vm0, %v345_v7, %v347_v25  ;;  %v369_v32 = vsel %vm352_vm0, %v347_v25, %v349_v22  ;;  %v839_v7 = vsel %vm375_vm1, %v11137_v21, 0 }
  0xb2   : > { %10358 = vmatmul.mubr.msk.bf16.vlgmr.msra.gmra.mrb[12].mxu0 %vm371_vm2, %v11301_v1  ;;  %10359 = vmatprep.subr.msk.bf16.mxu1 %vm375_vm1, %v368_v28  ;;  %v851_v28 = vsel %vm375_vm1, %v11155_v27, 0 }
  0xb3   : > { %718 = vmatpush1.bf16.msra.mxu1 %v419_v29  ;;  %790 = vmatprep.mubr.bf16.mxu0 %v10975_v0 }
  0xb4   : > { %v351_v35 = vpop.permute.xlu0 %350  ;;  %10363 = vmatprep.subr.msk.bf16.mxu1 %vm375_vm1, %v11092_v6  ;;  %v11383_v41 = vpop.permute.xlu1 %1227  ;;  %2826 = vrot.lane.b32.xlu1 %v11282_v56, %s10977_s13  ;;  %v425_v6 = vsel %vm375_vm1, %v369_v32, 0 }
  0xb5   : > { %v370_v44 = vsel %vm352_vm0, %v349_v22, %v351_v35  ;;  %2824 = vrot.lane.b32.xlu0 %v11273_v54, %s10977_s13  ;;  %v3800_v22 = vld [vmem:[%s11076_s11 + $0x48] sm:$0xff] }
  0xb6   : > { %10360 = vmatmul.mubr.msk.bf16.vlgmr.msra.gmra.mrb[12].mxu1 %vm371_vm2, %v11301_v1  ;;  %10361 = vmatprep.subr.msk.bf16.mxu0 %vm375_vm1, %v370_v44  ;;  %v11520_v44 = vcombine.low %v3800_v22, %v3800_v22 }
  0xb7   : > { %759 = vmatpush1.bf16.msra.mxu0 %v425_v6  ;;  %857 = vmatpush1.bf16.msra.mxu1 %v803_v38  ;;  %v11514_v38 = vcombine.high %v3800_v22, %v3800_v22 }
  0xb8   : > { %888 = vmatprep.mubr.bf16.mxu1 %v10975_v0  ;;  %10365 = vmatprep.subr.msk.bf16.mxu0 %vm375_vm1, %v11090_v5  ;;  %v11399_v56 = vpop.permute.xlu1 %1231  ;;  %v11401_v47 = vpop.permute.xlu0 %1229 }
  0xb9   : > { %10367 = vmatprep.subr.msk.bf16.mxu1 %vm375_vm1, %v11099_v8  ;;  %3852 = vrot.lane.b32.xlu1 %v11090_v5, %s10976_s12  ;;  %v1267_v19 = vsel %vm1265_vm3, %v11401_v47, %v11399_v56  ;;  %v1266_v32 = vsel %vm1265_vm3, %v11383_v41, %v11401_v47 }
  0xba   : > { %10362 = vmatmul.mubr.msk.bf16.vlgmr.msra.gmra.mrb[16].mxu0 %vm371_vm2, %v11301_v1  ;;  %3850 = vrot.lane.b32.xlu0 %v11082_v3, %s10976_s12  ;;  %v1288_v41 = vsel %vm375_vm1, %v1266_v32, 0 }
  0xbb   : > { %898 = vmatpush1.bf16.msra.mxu0 %v809_v4  ;;  %929 = vmatprep.mubr.bf16.mxu0 %v10975_v0 }
  0xbc   : > { %10369 = vmatprep.subr.msk.bf16.mxu0 %vm375_vm1, %v11108_v11  ;;  %v11421_v57 = vpop.permute.xlu1 %1235  ;;  %v11423_v1 = vpop.permute.xlu0 %1233 }
  0xbd   : > { %3856 = vrot.lane.b32.xlu1 %v11099_v8, %s10976_s12  ;;  %v1269_v35 = vsel %vm1265_vm3, %v11423_v1, %v11421_v57  ;;  %v1268_v6 = vsel %vm1265_vm3, %v11399_v56, %v11423_v1 }
  0xbe   : > { %10364 = vmatmul.mubr.msk.bf16.vlgmr.msra.gmra.mrb[16].mxu1 %vm371_vm2, %v11414_v50  ;;  %3854 = vrot.lane.b32.xlu0 %v11101_v9, %s10976_s12  ;;  %v1294_v56 = vsel %vm375_vm1, %v1268_v6, 0 }
  0xbf   : > { %939 = vmatpush1.bf16.msra.mxu1 %v815_v53  ;;  %970 = vmatprep.mubr.bf16.mxu1 %v10975_v0 }
  0xc0   : > { %10371 = vmatprep.subr.msk.bf16.mxu1 %vm375_vm1, %v11117_v14  ;;  %v11436_v59 = vpop.permute.xlu1 %1239  ;;  %v11442_v60 = vpop.permute.xlu0 %1237 }
  0xc1   : > { %3860 = vrot.lane.b32.xlu1 %v11108_v11, %s10976_s12  ;;  %v1271_v4 = vsel %vm1265_vm3, %v11442_v60, %v11436_v59  ;;  %v1270_v1 = vsel %vm1265_vm3, %v11421_v57, %v11442_v60 }
  0xc2   : > { %10366 = vmatmul.mubr.msk.bf16.vlgmr.msra.gmra.mrb[20].mxu0 %vm371_vm2, %v11414_v50  ;;  %3858 = vrot.lane.b32.xlu0 %v11110_v12, %s10976_s12  ;;  %v1300_v60 = vsel %vm375_vm1, %v1270_v1, 0 }
  0xc3   : > { %980 = vmatpush1.bf16.msra.mxu0 %v821_v58  ;;  %1011 = vmatprep.mubr.bf16.mxu0 %v10975_v0  ;;  %v11540_v58 = vld [vmem:[%s11076_s11 + $0x50] ss:$0 sps:$4 sm:$0xff]  }
  0xc4   : > { %10373 = vmatprep.subr.msk.bf16.mxu0 %vm375_vm1, %v11126_v17  ;;  %v11458_v62 = vpop.permute.xlu1 %1243  ;;  %v11464_v2 = vpop.permute.xlu0 %1241 }
  0xc5   : > { %3864 = vrot.lane.b32.xlu1 %v11117_v14, %s10976_s12 }
  0xc6   : > { %10368 = vmatmul.mubr.msk.bf16.vlgmr.msra.gmra.mrb[20].mxu1 %vm371_vm2, %v11414_v50  ;;  %3862 = vrot.lane.b32.xlu0 %v11119_v15, %s10976_s12 }
  0xc7   : > { %1021 = vmatpush1.bf16.msra.mxu1 %v827_v61  ;;  %1052 = vmatprep.mubr.bf16.mxu1 %v10975_v0  ;;  %v1273_v61 = vsel %vm1265_vm3, %v11464_v2, %v11458_v62 }
  0xc8   : > { %10375 = vmatprep.subr.msk.bf16.mxu1 %vm375_vm1, %v11135_v20  ;;  %v11477_v10 = vpop.permute.xlu1 %1247  ;;  %v1246_v13 = vpop.permute.xlu0 %1245 }
  0xc9   : > { %3868 = vrot.lane.b32.xlu1 %v11126_v17, %s10976_s12 }
  0xca   : > { %10370 = vmatmul.mubr.msk.bf16.vlgmr.msra.gmra.mrb[24].mxu0 %vm371_vm2, %v11414_v50  ;;  %3866 = vrot.lane.b32.xlu0 %v11128_v18, %s10976_s12 }
  0xcb   : > { %1062 = vmatpush1.bf16.msra.mxu0 %v833_v63  ;;  %1093 = vmatprep.mubr.bf16.mxu0 %v10975_v0  ;;  %v11560_v63 = vld [vmem:[%s14028_s1 + $0x4] sm:$0x3] }
  0xcc   : > { %10377 = vmatprep.subr.msk.bf16.mxu0 %vm375_vm1, %v11144_v23  ;;  %v11501_v25 = vpop.permute.xlu1 %1251  ;;  %v1250_v29 = vpop.permute.xlu0 %1249 }
  0xcd   : > { %3872 = vrot.lane.b32.xlu1 %v11135_v20, %s10976_s12 }
  0xce   : > { %10372 = vmatmul.mubr.msk.bf16.vlgmr.msra.gmra.mrb[24].mxu1 %vm371_vm2, %v11414_v50  ;;  %3870 = vrot.lane.b32.xlu0 %v11137_v21, %s10976_s12 }
  0xcf   : > { %1103 = vmatpush1.bf16.msra.mxu1 %v839_v7  ;;  %1134 = vmatprep.mubr.bf16.mxu1 %v10975_v0  ;;  %v1275_v7 = vsel %vm1265_vm3, %v1246_v13, %v11477_v10 }
  0xd0   : > { %10379 = vmatprep.subr.msk.bf16.mxu1 %vm375_vm1, %v11153_v26  ;;  %v11531_v47 = vpop.permute.xlu1 %1255  ;;  %v1254_v53 = vpop.permute.xlu0 %1253 }
  0xd1   : > { %3876 = vrot.lane.b32.xlu1 %v11144_v23, %s10976_s12  ;;  %v1278_v22 = vsel %vm1265_vm3, %v11501_v25, %v1254_v53 }
  0xd2   : > { %10374 = vmatmul.mubr.msk.bf16.vlgmr.msra.gmra.mrb[28].mxu0 %vm371_vm2, %v11414_v50  ;;  %3874 = vrot.lane.b32.xlu0 %v11146_v24, %s10976_s12 }
  0xd3   : > { %1144 = vmatpush1.bf16.msra.mxu0 %v845_v16  ;;  %1175 = vmatprep.mubr.bf16.mxu0 %v10975_v0 }
  0xd4   : > { %10382 = vmatprep.subr.msk.bf16.mxu0 %vm375_vm1, %v1267_v19  ;;  %v1260_v57 = vpop.permute.xlu1 %1259 }
  0xd5   : > { %3880 = vrot.lane.b32.xlu1 %v11153_v26, %s10976_s12 }
  0xd6   : > { %10376 = vmatmul.mubr.msk.bf16.vlgmr.msra.gmra.mrb[28].mxu1 %vm371_vm2, %v11414_v50  ;;  %3878 = vrot.lane.b32.xlu0 %v11155_v27, %s10976_s12 }
  0xd7   : > { %1185 = vmatpush1.bf16.msra.mxu1 %v851_v28  ;;  %1216 = vmatprep.mubr.bf16.mxu1 %v10975_v0  ;;  %v1324_v28 = vsel %vm375_vm1, %v1278_v22, 0 }
  0xd8   : > { %10384 = vmatprep.subr.msk.bf16.mxu1 %vm375_vm1, %v1269_v35 }
  0xd9   : > { %3884 = vrot.lane.b32.xlu1 %v11514_v38, %s10976_s12 }
  0xda   : > { %10378 = vmatmul.mubr.msk.bf16.vlgmr.msra.gmra.mrb[32].mxu0 %vm371_vm2, %v11414_v50  ;;  %3882 = vrot.lane.b32.xlu0 %v11520_v44, %s10976_s12 }
  0xdb   : > { %1342 = vmatpush1.bf16.msra.mxu0 %v1288_v41  ;;  %1373 = vmatprep.mubr.bf16.mxu0 %v10975_v0 }
  0xdc   : > { %10386 = vmatprep.subr.msk.bf16.mxu0 %vm375_vm1, %v1271_v4 }
  0xdd   : > { %4352 = vrot.lane.b32.xlu1 %v11082_v3, %s10977_s13  ;;  %v1258_v3 = vpop.permute.xlu0 %1257 }
  0xde   : > { %10380 = vmatmul.mubr.msk.bf16.vlgmr.msra.gmra.mrb[32].mxu1 %vm371_vm2, %v11414_v50  ;;  %3886 = vrot.lane.b32.xlu0 %v11540_v58, %s10976_s12  ;;  %v1272_v50 = vsel %vm1265_vm3, %v11436_v59, %v11464_v2  ;;  %v1274_v59 = vsel %vm1265_vm3, %v11458_v62, %v1246_v13  ;;  %v1277_v2 = vsel %vm1265_vm3, %v1250_v29, %v11501_v25 }
  0xdf   : > { %1383 = vmatpush1.bf16.msra.mxu1 %v1294_v56  ;;  %1414 = vmatprep.mubr.bf16.mxu1 %v10975_v0  ;;  %v1306_v16 = vsel %vm375_vm1, %v1272_v50, 0  ;;  %v1312_v19 = vsel %vm375_vm1, %v1274_v59, 0  ;;  %v1276_v62 = vsel %vm1265_vm3, %v11477_v10, %v1250_v29 }
  0xe0   : > { %10388 = vmatprep.subr.msk.bf16.mxu1 %vm375_vm1, %v1273_v61  ;;  %v1318_v10 = vsel %vm375_vm1, %v1276_v62, 0 }
  0xe1   : > { %4356 = vrot.lane.b32.xlu1 %v11101_v9, %s10977_s13  ;;  %v1264_v9 = vpop.permute.xlu1 %1263 }
  0xe2   : > { %10383 = vmatmul.mubr.msk.bf16.vlgmr.msra.gmra.mrb[36].mxu0 %vm371_vm2, %v11560_v63  ;;  %4354 = vrot.lane.b32.xlu0 %v11090_v5, %s10977_s13  ;;  %v1262_v5 = vpop.permute.xlu0 %1261 }
  0xe3   : > { %1424 = vmatpush1.bf16.msra.mxu0 %v1300_v60  ;;  %1455 = vmatprep.mubr.bf16.mxu0 %v10975_v0  ;;  %v1283_v29 = vsel %vm1265_vm3, %v1262_v5, %v1264_v9  ;;  %v1282_v32 = vsel %vm1265_vm3, %v1260_v57, %v1262_v5 }
  0xe4   : > { %10390 = vmatprep.subr.msk.bf16.mxu0 %vm375_vm1, %v1275_v7 }
  0xe5   : > { %4360 = vrot.lane.b32.xlu1 %v11110_v12, %s10977_s13  ;;  %v1279_v12 = vsel %vm1265_vm3, %v1254_v53, %v11531_v47  ;;  %v11596_v13 = vpop.permute.xlu1 %2290 }
  0xe6   : > { %10385 = vmatmul.mubr.msk.bf16.vlgmr.msra.gmra.mrb[36].mxu1 %vm371_vm2, %v11560_v63  ;;  %4358 = vrot.lane.b32.xlu0 %v11099_v8, %s10977_s13  ;;  %v11602_v8 = vpop.permute.xlu0 %2288 }
  0xe7   : > { %1465 = vmatpush1.bf16.msra.mxu1 %v1306_v16  ;;  %1496 = vmatprep.mubr.bf16.mxu1 %v10975_v0 }
  0xe8   : > { %10392 = vmatprep.subr.msk.bf16.mxu1 %vm375_vm1, %v1277_v2 }
  0xe9   : > { %4364 = vrot.lane.b32.xlu1 %v11119_v15, %s10977_s13  ;;  %v1281_v15 = vsel %vm1265_vm3, %v1258_v3, %v1260_v57 }
  0xea   : > { %10387 = vmatmul.mubr.msk.bf16.vlgmr.msra.gmra.mrb[40].mxu0 %vm371_vm2, %v11560_v63  ;;  %4362 = vrot.lane.b32.xlu0 %v11108_v11, %s10977_s13  ;;  %v11619_v11 = vpop.permute.xlu1 %2294  ;;  %v11623_v25 = vpop.permute.xlu0 %2292 }
  0xeb   : > { %1506 = vmatpush1.bf16.msra.mxu0 %v1312_v19  ;;  %1537 = vmatprep.mubr.bf16.mxu0 %v10975_v0 }
  0xec   : > { %10394 = vmatprep.subr.msk.bf16.mxu0 %vm375_vm1, %v1279_v12 }
  0xed   : > { %4368 = vrot.lane.b32.xlu1 %v11128_v18, %s10977_s13  ;;  %v1280_v18 = vsel %vm1265_vm3, %v11531_v47, %v1258_v3  ;;  %v11795_v3 = vld [vmem:[%s14028_s1 + $0x8] sm:$0x3] }
  0xee   : > { %10389 = vmatmul.mubr.msk.bf16.vlgmr.msra.gmra.mrb[40].mxu1 %vm371_vm2, %v11560_v63  ;;  %4366 = vrot.lane.b32.xlu0 %v11117_v14, %s10977_s13  ;;  %v1330_v14 = vsel %vm375_vm1, %v1280_v18, 0  ;;  %v11638_v35 = vpop.permute.xlu1 %2298 }
  0xef   : > { %1547 = vmatpush1.bf16.msra.mxu1 %v1318_v10  ;;  %1578 = vmatprep.mubr.bf16.mxu1 %v10975_v0 }
  0xf0   : > { %10396 = vmatprep.subr.msk.bf16.mxu1 %vm375_vm1, %v1281_v15 }
  0xf1   : > { %4372 = vrot.lane.b32.xlu1 %v11137_v21, %s10977_s13  ;;  %v11644_v21 = vpop.permute.xlu0 %2296 }
  0xf2   : > { %10391 = vmatmul.mubr.msk.bf16.vlgmr.msra.gmra.mrb[44].mxu0 %vm371_vm2, %v11560_v63  ;;  %4370 = vrot.lane.b32.xlu0 %v11126_v17, %s10977_s13  ;;  %v1336_v17 = vsel %vm375_vm1, %v1282_v32, 0  ;;  %v2329_v4 = vsel %vm352_vm0, %v11619_v11, %v11644_v21  ;;  %v2330_v61 = vsel %vm352_vm0, %v11644_v21, %v11638_v35 }
  0xf3   : > { %1588 = vmatpush1.bf16.msra.mxu0 %v1324_v28  ;;  %1619 = vmatprep.mubr.bf16.mxu0 %v10975_v0  ;;  %v2360_v50 = vsel %vm375_vm1, %v2330_v61, 0 }
  0xf4   : > { %10398 = vmatprep.subr.msk.bf16.mxu0 %vm375_vm1, %v1283_v29 }
  0xf5   : > { %4376 = vrot.lane.b32.xlu1 %v11146_v24, %s10977_s13  ;;  %v1788_v24 = vsel %vm375_vm1, %v11203_v31, 0 }
  0xf6   : > { %10393 = vmatmul.mubr.msk.bf16.vlgmr.msra.gmra.mrb[44].mxu1 %vm371_vm2, %v11560_v63  ;;  %4374 = vrot.lane.b32.xlu0 %v11135_v20, %s10977_s13  ;;  %v11659_v20 = vpop.permute.xlu1 %2302 }
  0xf7   : > { %1629 = vmatpush1.bf16.msra.mxu1 %v1330_v14  ;;  %1660 = vmatprep.mubr.bf16.mxu1 %v10975_v0 }
  0xf8   : > { %10419 = vmatprep.subr.msk.bf16.mxu1 %vm375_vm1, %v11201_v30  ;;  %v11665_v30 = vpop.permute.xlu0 %2300 }
  0xf9   : > { %4380 = vrot.lane.b32.xlu1 %v11155_v27, %s10977_s13  ;;  %v2331_v56 = vsel %vm352_vm0, %v11638_v35, %v11665_v30  ;;  %v2332_v7 = vsel %vm352_vm0, %v11665_v30, %v11659_v20 }
  0xfa   : > { %10395 = vmatmul.mubr.msk.bf16.vlgmr.msra.gmra.mrb[48].mxu0 %vm371_vm2, %v11560_v63  ;;  %4378 = vrot.lane.b32.xlu0 %v11144_v23, %s10977_s13  ;;  %v1794_v23 = vsel %vm375_vm1, %v11212_v34, 0  ;;  %v11678_v27 = vpop.permute.xlu1 %2306  ;;  %v2366_v2 = vsel %vm375_vm1, %v2332_v7, 0 }
  0xfb   : > { %1670 = vmatpush1.bf16.msra.mxu0 %v1336_v17  ;;  %1701 = vmatprep.mubr.bf16.mxu0 %v10975_v0 }
  0xfc   : > { %10421 = vmatprep.subr.msk.bf16.mxu0 %vm375_vm1, %v11210_v33  ;;  %v11684_v31 = vpop.permute.xlu0 %2304  ;;  %v1800_v33 = vsel %vm375_vm1, %v11221_v37, 0  ;;  %v1812_v37 = vsel %vm375_vm1, %v11239_v43, 0 }
  0xfd   : > { %4384 = vrot.lane.b32.xlu1 %v11520_v44, %s10977_s13  ;;  %v2334_v5 = vsel %vm352_vm0, %v11684_v31, %v11678_v27 }
  0xfe   : > { %10397 = vmatmul.mubr.msk.bf16.vlgmr.msra.gmra.mrb[48].mxu1 %vm371_vm2, %v11560_v63  ;;  %4382 = vrot.lane.b32.xlu0 %v11153_v26, %s10977_s13  ;;  %v11691_v26 = vld [vmem:[%s14028_s1 + $0x6] sm:$0x3]  ;;  %v11701_v34 = vpop.permute.xlu1 %2310  ;;  %v2372_v62 = vsel %vm375_vm1, %v2334_v5, 0  ;;  %v3293_v5 = vld [vmem:[%s11076_s11 + $0x10] sm:$0xff] }
  0xff   : > { %1842 = vmatpush1.bf16.msra.mxu1 %v1788_v24  ;;  %1873 = vmatprep.mubr.bf16.mxu1 %v10975_v0 }
 0x100   : > { %10423 = vmatprep.subr.msk.bf16.mxu1 %vm375_vm1, %v11219_v36  ;;  %v1806_v36 = vsel %vm375_vm1, %v11230_v40, 0  ;;  %v11707_v41 = vpop.permute.xlu0 %2308 }
 0x101   : > { %4388 = vrot.lane.b32.xlu1 %v11540_v58, %s10977_s13  ;;  %v2328_v58 = vsel %vm352_vm0, %v11623_v25, %v11619_v11  ;;  %v2335_v16 = vsel %vm352_vm0, %v11678_v27, %v11707_v41  ;;  %v2336_v12 = vsel %vm352_vm0, %v11707_v41, %v11701_v34 }
 0x102   : > { %10399 = vmatmul.mubr.msk.bf16.vlgmr.msra.gmra.mrb[52].mxu0 %vm371_vm2, %v11560_v63  ;;  %4386 = vrot.lane.b32.xlu0 %v11514_v38, %s10977_s13  ;;  %v2354_v1 = vsel %vm375_vm1, %v2328_v58, 0  ;;  %v2333_v63 = vsel %vm352_vm0, %v11659_v20, %v11684_v31  ;;  %v2378_v22 = vsel %vm375_vm1, %v2336_v12, 0  ;;  %v10498_v12 = vcombine.high %v3293_v5, %v3293_v5 }
 0x103   : > { %1883 = vmatpush1.bf16.msra.mxu0 %v1794_v23  ;;  %1914 = vmatprep.mubr.bf16.mxu0 %v10975_v0 }
 0x104   : > { %10425 = vmatprep.subr.msk.bf16.mxu0 %vm375_vm1, %v11228_v39  ;;  %v11716_v39 = vpop.permute.xlu1 %2314  ;;  %v11720_v40 = vpop.permute.xlu0 %2312 }
 0x105   : > { %v2337_v19 = vsel %vm352_vm0, %v11701_v34, %v11720_v40  ;;  %v2338_v15 = vsel %vm352_vm0, %v11720_v40, %v11716_v39 }
 0x106   : > { %10420 = vmatmul.mubr.msk.bf16.vlgmr.msra.gmra.mrb[52].mxu1 %vm371_vm2, %v11691_v26 }
 0x107   : > { %1924 = vmatpush1.bf16.msra.mxu1 %v1800_v33  ;;  %1955 = vmatprep.mubr.bf16.mxu1 %v10975_v0 }
 0x108   : > { %10427 = vmatprep.subr.msk.bf16.mxu1 %vm375_vm1, %v11237_v42  ;;  %v1818_v42 = vsel %vm375_vm1, %v11248_v46, 0  ;;  %v11730_v43 = vpop.permute.xlu1 %2318  ;;  %v11736_v6 = vpop.permute.xlu0 %2316  ;;  %v1830_v46 = vsel %vm375_vm1, %v11266_v52, 0  ;;  %v1836_v52 = vsel %vm375_vm1, %v11275_v55, 0 }
 0x109   : > { %v2340_v29 = vsel %vm352_vm0, %v11736_v6, %v11730_v43 }
 0x10a   : > { %10422 = vmatmul.mubr.msk.bf16.vlgmr.msra.gmra.mrb[56].mxu0 %vm371_vm2, %v11691_v26  ;;  %v2390_v32 = vsel %vm375_vm1, %v2340_v29, 0 }
 0x10b   : > { %1965 = vmatpush1.bf16.msra.mxu0 %v1806_v36  ;;  %1996 = vmatprep.mubr.bf16.mxu0 %v10975_v0 }
 0x10c   : > { %10429 = vmatprep.subr.msk.bf16.mxu0 %vm375_vm1, %v11246_v45  ;;  %v1824_v45 = vsel %vm375_vm1, %v11257_v49, 0  ;;  %v11748_v49 = vpop.permute.xlu1 %2322 }
 0x10e   : > { %10424 = vmatmul.mubr.msk.bf16.vlgmr.msra.gmra.mrb[56].mxu1 %vm371_vm2, %v11691_v26 }
 0x10f   : > { %2006 = vmatpush1.bf16.msra.mxu1 %v1812_v37  ;;  %2037 = vmatprep.mubr.bf16.mxu1 %v10975_v0 }
 0x110   : > { %10431 = vmatprep.subr.msk.bf16.mxu1 %vm375_vm1, %v11255_v48  ;;  %v2327_v48 = vsel %vm352_vm0, %v11596_v13, %v11623_v25  ;;  %v11767_v47 = vpop.permute.xlu1 %2790  ;;  %v2384_v25 = vsel %vm375_vm1, %v2338_v15, 0  ;;  %v10497_v15 = vcombine.low %v3293_v5, %v3293_v5 }
 0x112   : > { %10426 = vmatmul.mubr.msk.bf16.vlgmr.msra.gmra.mrb[60].mxu0 %vm371_vm2, %v11691_v26 }
 0x113   : > { %2047 = vmatpush1.bf16.msra.mxu0 %v1818_v42  ;;  %2078 = vmatprep.mubr.bf16.mxu0 %v10975_v0  ;;  %v11887_v42 = vld [vmem:[%s14028_s1 + $0xa] sm:$0x3] }
 0x114   : > { %10433 = vmatprep.subr.msk.bf16.mxu0 %vm375_vm1, %v11264_v51  ;;  %v11752_v51 = vpop.permute.xlu0 %2320  ;;  %v11788_v57 = vpop.permute.xlu1 %2794 }
 0x115   : > { %v2341_v11 = vsel %vm352_vm0, %v11730_v43, %v11752_v51  ;;  %v2342_v35 = vsel %vm352_vm0, %v11752_v51, %v11748_v49 }
 0x116   : > { %10428 = vmatmul.mubr.msk.bf16.vlgmr.msra.gmra.mrb[60].mxu1 %vm371_vm2, %v11691_v26  ;;  %v2396_v24 = vsel %vm375_vm1, %v2342_v35, 0 }
 0x117   : > { %2088 = vmatpush1.bf16.msra.mxu1 %v1824_v45  ;;  %2119 = vmatprep.mubr.bf16.mxu1 %v10975_v0 }
 0x118   : > { %10435 = vmatprep.subr.msk.bf16.mxu1 %vm375_vm1, %v11273_v54  ;;  %v2326_v54 = vsel %vm352_vm0, %v11602_v8, %v11596_v13  ;;  %v2325_v55 = vpop.permute.xlu0 %2324  ;;  %v2799_v59 = vpop.permute.xlu1 %2798  ;;  %v2339_v13 = vsel %vm352_vm0, %v11716_v39, %v11736_v6 }
 0x119   : > { %v2348_v53 = vsel %vm375_vm1, %v2326_v54, 0  ;;  %v2343_v14 = vsel %vm352_vm0, %v11748_v49, %v2325_v55 }
 0x11a   : > { %10430 = vmatmul.mubr.msk.bf16.vlgmr.msra.gmra.mrb[64].mxu0 %vm371_vm2, %v11691_v26 }
 0x11b   : > { %2129 = vmatpush1.bf16.msra.mxu0 %v1830_v46  ;;  %2160 = vmatprep.mubr.bf16.mxu0 %v10975_v0 }
 0x11c   : > { %10457 = vmatprep.subr.msk.bf16.mxu0 %vm375_vm1, %v2327_v48  ;;  %v2793_v60 = vpop.permute.xlu0 %2792  ;;  %v2803_v8 = vpop.permute.xlu1 %2802 }
 0x11d   : > { %v2829_v21 = vsel %vm1265_vm3, %v2793_v60, %v11788_v57  ;;  %v2828_v30 = vsel %vm1265_vm3, %v11767_v47, %v2793_v60 }
 0x11e   : > { %10432 = vmatmul.mubr.msk.bf16.vlgmr.msra.gmra.mrb[64].mxu1 %vm371_vm2, %v11691_v26  ;;  %v2850_v31 = vsel %vm375_vm1, %v2828_v30, 0 }
 0x11f   : > { %2170 = vmatpush1.bf16.msra.mxu1 %v1836_v52  ;;  %2201 = vmatprep.mubr.bf16.mxu1 %v10975_v0 }
 0x120   : > { %10459 = vmatprep.subr.msk.bf16.mxu1 %vm375_vm1, %v2329_v4  ;;  %v2797_v9 = vpop.permute.xlu0 %2796  ;;  %v2807_v28 = vpop.permute.xlu1 %2806 }
 0x121   : > { %v2831_v23 = vsel %vm1265_vm3, %v2797_v9, %v2799_v59  ;;  %v2830_v33 = vsel %vm1265_vm3, %v11788_v57, %v2797_v9 }
 0x122   : > { %10434 = vmatmul.mubr.msk.bf16.vlgmr.msra.gmra.mrb[68].mxu0 %vm371_vm2, %v11691_v26  ;;  %v2856_v36 = vsel %vm375_vm1, %v2830_v33, 0  ;;  %v3297_v33 = vld [vmem:[%s11076_s11 + $0x30] sm:$0xff] }
 0x123   : > { %2402 = vmatpush1.bf16.msra.mxu0 %v2348_v53  ;;  %2433 = vmatprep.mubr.bf16.mxu0 %v10975_v0 }
 0x124   : > { %10461 = vmatprep.subr.msk.bf16.mxu0 %vm375_vm1, %v2331_v56  ;;  %v2801_v10 = vpop.permute.xlu0 %2800  ;;  %v2811_v17 = vpop.permute.xlu1 %2810 }
 0x125   : > { %v2833_v34 = vsel %vm1265_vm3, %v2801_v10, %v2803_v8  ;;  %v2832_v41 = vsel %vm1265_vm3, %v2799_v59, %v2801_v10 }
 0x126   : > { %10436 = vmatmul.mubr.msk.bf16.vlgmr.msra.gmra.mrb[68].mxu1 %vm371_vm2, %v11691_v26  ;;  %v2862_v43 = vsel %vm375_vm1, %v2832_v41, 0 }
 0x127   : > { %2443 = vmatpush1.bf16.msra.mxu1 %v2354_v1  ;;  %2474 = vmatprep.mubr.bf16.mxu1 %v10975_v0 }
 0x128   : > { %10463 = vmatprep.subr.msk.bf16.mxu1 %vm375_vm1, %v2333_v63  ;;  %v2805_v18 = vpop.permute.xlu0 %2804  ;;  %v2815_v27 = vpop.permute.xlu1 %2814 }
 0x129   : > { %v2835_v37 = vsel %vm1265_vm3, %v2805_v18, %v2807_v28  ;;  %v2834_v45 = vsel %vm1265_vm3, %v2803_v8, %v2805_v18  ;;  %v3356_v18 = vsel %vm375_vm1, %v10497_v15, 0 }
 0x12a   : > { %10458 = vmatmul.mubr.msk.bf16.vlgmr.msra.gmra.mrb[72].mxu0 %vm371_vm2, %v11795_v3  ;;  %v2868_v48 = vsel %vm375_vm1, %v2834_v45, 0 }
 0x12b   : > { %2484 = vmatpush1.bf16.msra.mxu0 %v2360_v50  ;;  %2515 = vmatprep.mubr.bf16.mxu0 %v10975_v0  ;;  %v3292_v50 = vld [vmem:[%s11076_s11 + $0x8] sm:$0xff] }
 0x12c   : > { %10465 = vmatprep.subr.msk.bf16.mxu0 %vm375_vm1, %v2335_v16  ;;  %v2809_v20 = vpop.permute.xlu0 %2808  ;;  %v2819_v39 = vpop.permute.xlu1 %2818  ;;  %v10496_v59 = vcombine.high %v3292_v50, %v3292_v50 }
 0x12d   : > { %v2837_v6 = vsel %vm1265_vm3, %v2809_v20, %v2811_v17  ;;  %v2836_v51 = vsel %vm1265_vm3, %v2807_v28, %v2809_v20  ;;  %v3295_v28 = vld [vmem:[%s11076_s11 + $0x20] sm:$0xff] }
 0x12e   : > { %10460 = vmatmul.mubr.msk.bf16.vlgmr.msra.gmra.mrb[72].mxu1 %vm371_vm2, %v11795_v3  ;;  %v2874_v54 = vsel %vm375_vm1, %v2836_v51, 0 }
 0x12f   : > { %2525 = vmatpush1.bf16.msra.mxu1 %v2366_v2  ;;  %2556 = vmatprep.mubr.bf16.mxu1 %v10975_v0 }
 0x130   : > { %10467 = vmatprep.subr.msk.bf16.mxu1 %vm375_vm1, %v2337_v19  ;;  %v2813_v26 = vpop.permute.xlu0 %2812  ;;  %v2823_v46 = vpop.permute.xlu1 %2822 }
 0x131   : > { %v2839_v52 = vsel %vm1265_vm3, %v2813_v26, %v2815_v27  ;;  %v2838_v4 = vsel %vm1265_vm3, %v2811_v17, %v2813_v26 }
 0x132   : > { %10462 = vmatmul.mubr.msk.bf16.vlgmr.msra.gmra.mrb[76].mxu0 %vm371_vm2, %v11795_v3  ;;  %v2880_v58 = vsel %vm375_vm1, %v2838_v4, 0 }
 0x133   : > { %2566 = vmatpush1.bf16.msra.mxu0 %v2372_v62  ;;  %2597 = vmatprep.mubr.bf16.mxu0 %v10975_v0  ;;  %v10495_v62 = vcombine.low %v3292_v50, %v3292_v50 }
 0x134   : > { %10469 = vmatprep.subr.msk.bf16.mxu0 %vm375_vm1, %v2339_v13  ;;  %v2817_v40 = vpop.permute.xlu0 %2816  ;;  %v2827_v53 = vpop.permute.xlu1 %2826  ;;  %v3294_v13 = vld [vmem:[%s11076_s11 + $0x18] sm:$0xff] }
 0x135   : > { %v2841_v47 = vsel %vm1265_vm3, %v2817_v40, %v2819_v39  ;;  %v2840_v56 = vsel %vm1265_vm3, %v2815_v27, %v2817_v40  ;;  %v10499_v29 = vcombine.low %v3294_v13, %v3294_v13  ;;  %v10501_v27 = vcombine.low %v3295_v28, %v3295_v28 }
 0x136   : > { %10464 = vmatmul.mubr.msk.bf16.vlgmr.msra.gmra.mrb[76].mxu1 %vm371_vm2, %v11795_v3  ;;  %v2886_v57 = vsel %vm375_vm1, %v2840_v56, 0 }
 0x137   : > { %2607 = vmatpush1.bf16.msra.mxu1 %v2378_v22  ;;  %2638 = vmatprep.mubr.bf16.mxu1 %v10975_v0  ;;  %v3350_v22 = vsel %vm375_vm1, %v10495_v62, 0  ;;  %v3368_v40 = vsel %vm375_vm1, %v10501_v27, 0 }
 0x138   : > { %10471 = vmatprep.subr.msk.bf16.mxu1 %vm375_vm1, %v2341_v11  ;;  %v2821_v49 = vpop.permute.xlu0 %2820  ;;  %v11915_v61 = vpop.permute.xlu1 %3852  ;;  %v10500_v11 = vcombine.high %v3294_v13, %v3294_v13 }
 0x139   : > { %v2843_v1 = vsel %vm1265_vm3, %v2821_v49, %v2823_v46  ;;  %v2842_v60 = vsel %vm1265_vm3, %v2819_v39, %v2821_v49 }
 0x13a   : > { %10466 = vmatmul.mubr.msk.bf16.vlgmr.msra.gmra.mrb[80].mxu0 %vm371_vm2, %v11795_v3  ;;  %v2892_v16 = vsel %vm375_vm1, %v2842_v60, 0 }
 0x13b   : > { %2648 = vmatpush1.bf16.msra.mxu0 %v2384_v25  ;;  %2679 = vmatprep.mubr.bf16.mxu0 %v10975_v0 }
 0x13c   : > { %10473 = vmatprep.subr.msk.bf16.mxu0 %vm375_vm1, %v2343_v14  ;;  %v2825_v55 = vpop.permute.xlu0 %2824  ;;  %v11930_v7 = vpop.permute.xlu1 %3856  ;;  %v10502_v14 = vcombine.high %v3295_v28, %v3295_v28 }
 0x13d   : > { %v2844_v9 = vsel %vm1265_vm3, %v2823_v46, %v2825_v55 }
 0x13e   : > { %10468 = vmatmul.mubr.msk.bf16.vlgmr.msra.gmra.mrb[80].mxu1 %vm371_vm2, %v11795_v3  ;;  %v2898_v19 = vsel %vm375_vm1, %v2844_v9, 0 }
 0x13f   : > { %2689 = vmatpush1.bf16.msra.mxu1 %v2390_v32  ;;  %2720 = vmatprep.mubr.bf16.mxu1 %v10975_v0 }
 0x140   : > { %10476 = vmatprep.subr.msk.bf16.mxu1 %vm375_vm1, %v2829_v21  ;;  %v11919_v63 = vpop.permute.xlu0 %3850  ;;  %v11944_v8 = vpop.permute.xlu1 %3860  ;;  %v3296_v21 = vld [vmem:[%s11076_s11 + $0x28] sm:$0xff] }
 0x141   : > { %v3888_v27 = vsel %vm352_vm0, %v11919_v63, %v11915_v61 }
 0x142   : > { %10470 = vmatmul.mubr.msk.bf16.vlgmr.msra.gmra.mrb[84].mxu0 %vm371_vm2, %v11795_v3 }
 0x143   : > { %2730 = vmatpush1.bf16.msra.mxu0 %v2396_v24  ;;  %2761 = vmatprep.mubr.bf16.mxu0 %v10975_v0  ;;  %v11973_v24 = vld [vmem:[%s14028_s1 + $0xc] sm:$0x3] }
 0x144   : > { %10478 = vmatprep.subr.msk.bf16.mxu0 %vm375_vm1, %v2831_v23  ;;  %v11934_v2 = vpop.permute.xlu0 %3854  ;;  %v11957_v25 = vpop.permute.xlu1 %3864  ;;  %v3362_v23 = vsel %vm375_vm1, %v10499_v29, 0 }
 0x146   : > { %10472 = vmatmul.mubr.msk.bf16.vlgmr.msra.gmra.mrb[84].mxu1 %vm371_vm2, %v11795_v3 }
 0x147   : > { %2904 = vmatpush1.bf16.msra.mxu1 %v2850_v31  ;;  %2935 = vmatprep.mubr.bf16.mxu1 %v10975_v0  ;;  %v10504_v31 = vcombine.high %v3296_v21, %v3296_v21 }
 0x148   : > { %10480 = vmatprep.subr.msk.bf16.mxu1 %vm375_vm1, %v2833_v34  ;;  %v11948_v10 = vpop.permute.xlu0 %3858  ;;  %v11981_v34 = vpop.permute.xlu1 %3868 }
 0x14a   : > { %10474 = vmatmul.mubr.msk.bf16.vlgmr.msra.gmra.mrb[88].mxu0 %vm371_vm2, %v11795_v3  ;;  %v2845_v3 = vsel %vm1265_vm3, %v2825_v55, %v2827_v53  ;;  %v3299_v55 = vld [vmem:[%s11076_s11 + $0x40] sm:$0xff] }
 0x14b   : > { %2945 = vmatpush1.bf16.msra.mxu0 %v2856_v36  ;;  %2976 = vmatprep.mubr.bf16.mxu0 %v10975_v0 }
 0x14c   : > { %10482 = vmatprep.subr.msk.bf16.mxu0 %vm375_vm1, %v2835_v37  ;;  %v11961_v32 = vpop.permute.xlu0 %3862  ;;  %v12000_v49 = vpop.permute.xlu1 %3872 }
 0x14e   : > { %10477 = vmatmul.mubr.msk.bf16.vlgmr.msra.gmra.mrb[88].mxu1 %vm371_vm2, %v11887_v42 }
 0x14f   : > { %2986 = vmatpush1.bf16.msra.mxu1 %v2862_v43  ;;  %3017 = vmatprep.mubr.bf16.mxu1 %v10975_v0  ;;  %v10506_v43 = vcombine.high %v3297_v33, %v3297_v33 }
 0x150   : > { %10484 = vmatprep.subr.msk.bf16.mxu1 %vm375_vm1, %v2837_v6  ;;  %v11987_v41 = vpop.permute.xlu0 %3866  ;;  %v3298_v6 = vld [vmem:[%s11076_s11 + $0x38] sm:$0xff]  ;;  %s10760_s11 = sshll.u32 %s10965_s21, 10 }
 0x151   : > { %v10508_v4 = vcombine.high %v3298_v6, %v3298_v6  ;;  %v10507_v60 = vcombine.low %v3298_v6, %v3298_v6  ;;  %v3893_v6 = vsel %vm352_vm0, %v11944_v8, %v11961_v32  ;;  %s13969_s21 = scalar_lea.hbm %s14032_s5, %s10760_s11 }
 0x152   : > { %10479 = vmatmul.mubr.msk.bf16.vlgmr.msra.gmra.mrb[92].mxu0 %vm371_vm2, %v11887_v42 }
 0x153   : > { %3027 = vmatpush1.bf16.msra.mxu0 %v2868_v48  ;;  %3058 = vmatprep.mubr.bf16.mxu0 %v10975_v0  ;;  %v3386_v62 = vsel %vm375_vm1, %v10507_v60, 0 }
 0x154   : > { %10486 = vmatprep.subr.msk.bf16.mxu0 %vm375_vm1, %v2839_v52 }
 0x156   : > { %10481 = vmatmul.mubr.msk.bf16.vlgmr.msra.gmra.mrb[92].mxu1 %vm371_vm2, %v11887_v42 }
 0x157   : > { %3068 = vmatpush1.bf16.msra.mxu1 %v2874_v54  ;;  %3099 = vmatprep.mubr.bf16.mxu1 %v10975_v0  ;;  %v10505_v54 = vcombine.low %v3297_v33, %v3297_v33  ;;  %v3891_v33 = vsel %vm352_vm0, %v11930_v7, %v11948_v10 }
 0x158   : > { %10488 = vmatprep.subr.msk.bf16.mxu1 %vm375_vm1, %v2841_v47  ;;  %v12004_v47 = vpop.permute.xlu0 %3870 }
 0x15a   : > { %10483 = vmatmul.mubr.msk.bf16.vlgmr.msra.gmra.mrb[96].mxu0 %vm371_vm2, %v11887_v42 }
 0x15b   : > { %3109 = vmatpush1.bf16.msra.mxu0 %v2880_v58  ;;  %3140 = vmatprep.mubr.bf16.mxu0 %v10975_v0 }
 0x15c   : > { %10490 = vmatprep.subr.msk.bf16.mxu0 %vm375_vm1, %v2843_v1  ;;  %v12024_v9 = vpop.permute.xlu0 %3874 }
 0x15e   : > { %10485 = vmatmul.mubr.msk.bf16.vlgmr.msra.gmra.mrb[96].mxu1 %vm371_vm2, %v11887_v42 }
 0x15f   : > { %3150 = vmatpush1.bf16.msra.mxu1 %v2886_v57  ;;  %3181 = vmatprep.mubr.bf16.mxu1 %v10975_v0  ;;  %v3380_v57 = vsel %vm375_vm1, %v10505_v54, 0 }
 0x160   : > { %10492 = vmatprep.subr.msk.bf16.mxu1 %vm375_vm1, %v2845_v3  ;;  %v10510_v3 = vcombine.high %v3299_v55, %v3299_v55  ;;  %v12041_v29 = vpop.permute.xlu0 %3878 }
 0x162   : > { %10487 = vmatmul.mubr.msk.bf16.vlgmr.msra.gmra.mrb[100].mxu0 %vm371_vm2, %v11887_v42 }
 0x163   : > { %3191 = vmatpush1.bf16.msra.mxu0 %v2892_v16  ;;  %3222 = vmatprep.mubr.bf16.mxu0 %v10975_v0  ;;  %v12018_v16 = vpop.permute.xlu1 %3876 }
 0x164   : > { %10513 = vmatprep.subr.msk.bf16.mxu0 %vm375_vm1, %v10496_v59 }
 0x166   : > { %10489 = vmatmul.mubr.msk.bf16.vlgmr.msra.gmra.mrb[100].mxu1 %vm371_vm2, %v11887_v42 }
 0x167   : > { %3232 = vmatpush1.bf16.msra.mxu1 %v2898_v19  ;;  %3263 = vmatprep.mubr.bf16.mxu1 %v10975_v0 }
 0x168   : > { %10515 = vmatprep.subr.msk.bf16.mxu1 %vm375_vm1, %v10498_v12  ;;  %v10509_v12 = vcombine.low %v3299_v55, %v3299_v55  ;;  %v3892_v55 = vsel %vm352_vm0, %v11948_v10, %v11944_v8  ;;  %v12114_v8 = vld [vmem:[%s14028_s1 + $0xe] sm:$0x3] }
 0x16a   : > { %10491 = vmatmul.mubr.msk.bf16.vlgmr.msra.gmra.mrb[104].mxu0 %vm371_vm2, %v11887_v42 }
 0x16b   : > { %3404 = vmatpush1.bf16.msra.mxu0 %v3350_v22  ;;  %3435 = vmatprep.mubr.bf16.mxu0 %v10975_v0 }
 0x16c   : > { %10517 = vmatprep.subr.msk.bf16.mxu0 %vm375_vm1, %v10500_v11  ;;  %v12036_v11 = vpop.permute.xlu1 %3880 }
 0x16d   : > { %v11963_v35 = vpop.f32.mrb[0].mxu0 }
 0x16e   : > { %10493 = vmatmul.mubr.msk.bf16.vlgmr.msra.gmra.mrb[104].mxu1 %vm371_vm2, %v11887_v42  ;;  %v11968_v17 = vpop.f32.mrb[1].mxu0  ;;  %v10503_v42 = vcombine.low %v3296_v21, %v3296_v21  ;;  %v3889_v21 = vsel %vm352_vm0, %v11915_v61, %v11934_v2  ;;  %v3910_v61 = vsel %vm375_vm1, %v3888_v27, 0 }
 0x16f   : > { %v468_v20 = vpop.f32.mrb[2].mxu0  ;;  %3445 = vmatpush1.bf16.msra.mxu1 %v3356_v18  ;;  %3476 = vmatprep.mubr.bf16.mxu1 %v10975_v0  ;;  %v3392_v18 = vsel %vm375_vm1, %v10509_v12, 0 }
 0x170   : > { %v469_v30 = vpop.f32.mrb[3].mxu0  ;;  %10519 = vmatprep.subr.msk.bf16.mxu1 %vm375_vm1, %v10502_v14  ;;  %v3374_v52 = vsel %vm375_vm1, %v10503_v42, 0  ;;  %v3890_v42 = vsel %vm352_vm0, %v11934_v2, %v11930_v7  ;;  %v4852_v7 = vld [vmem:[%s14029_s2] sm:$0xf] }
 0x171   : > { %v11978_v26 = vpop.f32.mrb[0].mxu1  ;;  %v3916_v54 = vsel %vm375_vm1, %v3890_v42, 0  ;;  %4855 = vperm.xlu0 %10825, %v4852_v7  }
 0x172   : > { %v11983_v36 = vpop.f32.mrb[1].mxu1  ;;  %10514 = vmatmul.mubr.msk.bf16.vlgmr.msra.gmra.mrb[108].mxu0 %vm371_vm2, %v11973_v24 }
 0x173   : > { %v509_v37 = vpop.f32.mrb[2].mxu1  ;;  %3486 = vmatpush1.bf16.msra.mxu0 %v3362_v23  ;;  %3517 = vmatprep.mubr.bf16.mxu0 %v10975_v0 }
 0x174   : > { %v510_v39 = vpop.f32.mrb[3].mxu1  ;;  %10521 = vmatprep.subr.msk.bf16.mxu0 %vm375_vm1, %v10504_v31  ;;  %v12064_v37 = vpop.permute.xlu1 %3884 }
 0x175   : > { %v11992_v45 = vpop.f32.mrb[4].mxu0 }
 0x176   : > { %10516 = vmatmul.mubr.msk.bf16.vlgmr.msra.gmra.mrb[108].mxu1 %vm371_vm2, %v11973_v24  ;;  %v11997_v46 = vpop.f32.mrb[5].mxu0 }
 0x177   : > { %v550_v48 = vpop.f32.mrb[6].mxu0  ;;  %3527 = vmatpush1.bf16.msra.mxu1 %v3368_v40  ;;  %3558 = vmatprep.mubr.bf16.mxu1 %v10975_v0  ;;  %v12070_v40 = vpop.permute.xlu0 %3882 }
 0x178   : > { %v551_v51 = vpop.f32.mrb[7].mxu0  ;;  %10523 = vmatprep.subr.msk.bf16.mxu1 %vm375_vm1, %v10506_v43 }
 0x179   : > { %v12006_v53 = vpop.f32.mrb[4].mxu1 }
 0x17a   : > { %v12009_v58 = vpop.f32.mrb[5].mxu1  ;;  %10518 = vmatmul.mubr.msk.bf16.vlgmr.msra.gmra.mrb[112].mxu0 %vm371_vm2, %v11973_v24 }
 0x17b   : > { %v591_v56 = vpop.f32.mrb[6].mxu1  ;;  %3568 = vmatpush1.bf16.msra.mxu0 %v3374_v52  ;;  %3599 = vmatprep.mubr.bf16.mxu0 %v10975_v0  ;;  %v12088_v52 = vpop.permute.xlu1 %4352 }
 0x17c   : > { %v592_v1 = vpop.f32.mrb[7].mxu1  ;;  %10525 = vmatprep.subr.msk.bf16.mxu0 %vm375_vm1, %v10508_v4  ;;  %v12095_v4 = vpop.permute.xlu0 %3886 }
 0x17d   : > { %v12016_v50 = vpop.f32.mrb[8].mxu0  ;;  %v3895_v1 = vsel %vm352_vm0, %v11957_v25, %v11987_v41 }
 0x17e   : > { %10520 = vmatmul.mubr.msk.bf16.vlgmr.msra.gmra.mrb[112].mxu1 %vm371_vm2, %v11973_v24  ;;  %v12022_v59 = vpop.f32.mrb[9].mxu0 }
 0x17f   : > { %v632_v5 = vpop.f32.mrb[10].mxu0  ;;  %3609 = vmatpush1.bf16.msra.mxu1 %v3380_v57  ;;  %3640 = vmatprep.mubr.bf16.mxu1 %v10975_v0 }
 0x180   : > { %v633_v19 = vpop.f32.mrb[11].mxu0  ;;  %10527 = vmatprep.subr.msk.bf16.mxu1 %vm375_vm1, %v10510_v3 }
 0x181   : > { %v12029_v13 = vpop.f32.mrb[8].mxu1  ;;  %v3897_v19 = vsel %vm352_vm0, %v11981_v34, %v12004_v47 }
 0x182   : > { %v12031_v22 = vpop.f32.mrb[9].mxu1  ;;  %10522 = vmatmul.mubr.msk.bf16.vlgmr.msra.gmra.mrb[116].mxu0 %vm371_vm2, %v11973_v24 }
 0x183   : > { %v673_v15 = vpop.f32.mrb[10].mxu1  ;;  %3650 = vmatpush1.bf16.msra.mxu0 %v3386_v62  ;;  %3681 = vmatprep.mubr.bf16.mxu0 %v10975_v0  ;;  %v12125_v62 = vpop.permute.xlu1 %4356 }
 0x184   : > { %v674_v28 = vpop.f32.mrb[11].mxu1  ;;  %10529 = vmatprep.subr.msk.bf16.mxu0 %vm375_vm1, %v11514_v38  ;;  %v3398_v38 = vsel %vm375_vm1, %v11520_v44, 0 }
 0x185   : > { %v12043_v14 = vpop.f32.mrb[12].mxu0  ;;  %v12132_v28 = vpop.permute.xlu0 %4354 }
 0x186   : > { %10524 = vmatmul.mubr.msk.bf16.vlgmr.msra.gmra.mrb[116].mxu1 %vm371_vm2, %v11973_v24  ;;  %v12050_v20 = vpop.f32.mrb[13].mxu0 }
 0x187   : > { %v714_v30 = vpop.f32.mrb[14].mxu0  ;;  %3691 = vmatpush1.bf16.msra.mxu1 %v3392_v18  ;;  %3722 = vmatprep.mubr.bf16.mxu1 %v10975_v0 }
 0x188   : > { %v715_v23 = vpop.f32.mrb[15].mxu0  ;;  %10551 = vmatprep.subr.msk.bf16.mxu1 %vm375_vm1, %v3889_v21 }
 0x189   : > { %v12059_v31 = vpop.f32.mrb[12].mxu1  ;;  %v3899_v23 = vsel %vm352_vm0, %v12000_v49, %v12024_v9 }
 0x18a   : > { %v12066_v39 = vpop.f32.mrb[13].mxu1  ;;  %10526 = vmatmul.mubr.msk.bf16.vlgmr.msra.gmra.mrb[120].mxu0 %vm371_vm2, %v11973_v24 }
 0x18b   : > { %v755_v44 = vpop.f32.mrb[14].mxu1  ;;  %3732 = vmatpush1.bf16.msra.mxu0 %v3398_v38  ;;  %3763 = vmatprep.mubr.bf16.mxu0 %v10975_v0 }
 0x18c   : > { %v756_v63 = vpop.f32.mrb[15].mxu1  ;;  %10553 = vmatprep.subr.msk.bf16.mxu0 %vm375_vm1, %v3891_v33 }
 0x18d   : > { %v12078_v43 = vpop.f32.mrb[16].mxu0 }
 0x18e   : > { %10528 = vmatmul.mubr.msk.bf16.vlgmr.msra.gmra.mrb[120].mxu1 %vm371_vm2, %v11973_v24  ;;  %v12085_v48 = vpop.f32.mrb[17].mxu0 }
 0x18f   : > { %3964 = vmatpush1.bf16.msra.mxu1 %v3910_v61  ;;  %v796_v51 = vpop.f32.mrb[18].mxu0  ;;  %3995 = vmatprep.mubr.bf16.mxu1 %v10975_v0  ;;  %v3898_v61 = vsel %vm352_vm0, %v12004_v47, %v12000_v49 }
 0x190   : > { %v797_v2 = vpop.f32.mrb[19].mxu0  ;;  %10555 = vmatprep.subr.msk.bf16.mxu1 %vm375_vm1, %v3893_v6  ;;  %v3940_v47 = vsel %vm375_vm1, %v3898_v61, 0 }
 0x191   : > { %v890_v56 = vpop.f32.mrb[16].mxu1 }
 0x192   : > { %v12104_v57 = vadd.f32 %v890_v56, %v11963_v35  ;;  %v892_v60 = vpop.f32.mrb[17].mxu1  ;;  %10530 = vmatmul.mubr.msk.bf16.vlgmr.msra.gmra.mrb[124].mxu0 %vm371_vm2, %v11973_v24  ;;  %v3922_v35 = vsel %vm375_vm1, %v3892_v55, 0  ;;  %v3894_v24 = vsel %vm352_vm0, %v11961_v32, %v11957_v25 }
 0x193   : > { %v12109_v3 = vadd.f32 %v892_v60, %v11968_v17  ;;  %v894_v5 = vpop.f32.mrb[18].mxu1  ;;  %4005 = vmatpush1.bf16.msra.mxu0 %v3916_v54  ;;  %4036 = vmatprep.mubr.bf16.mxu0 %v10975_v0  ;;  %v3928_v21 = vsel %vm375_vm1, %v3894_v24, 0  ;;  %v3903_v54 = vsel %vm352_vm0, %v12036_v11, %v12070_v40 }
 0x194   : > { %v895_v10 = vpop.f32.mrb[19].mxu1  ;;  %10557 = vmatprep.subr.msk.bf16.mxu0 %vm375_vm1, %v3895_v1 }
 0x195   : > { %v931_v17 = vpop.f32.mrb[20].mxu0 }
 0x196   : > { %v12128_v12 = vadd.f32 %v931_v17, %v11978_v26  ;;  %v933_v15 = vpop.f32.mrb[21].mxu0  ;;  %10552 = vmatmul.mubr.msk.bf16.vlgmr.msra.gmra.mrb[124].mxu1 %vm371_vm2, %v12114_v8  ;;  %v3896_v26 = vsel %vm352_vm0, %v11987_v41, %v11981_v34  ;;  %v12155_v34 = vpop.permute.xlu1 %4360 }
 0x197   : > { %v12135_v18 = vadd.f32 %v933_v15, %v11983_v36  ;;  %4046 = vmatpush1.bf16.msra.mxu1 %v3922_v35  ;;  %v935_v25 = vpop.f32.mrb[22].mxu0  ;;  %4077 = vmatprep.mubr.bf16.mxu1 %v10975_v0  ;;  %v3934_v44 = vsel %vm375_vm1, %v3896_v26, 0  ;;  %v3905_v35 = vsel %vm352_vm0, %v12064_v37, %v12095_v4  ;;  %v3904_v4 = vsel %vm352_vm0, %v12070_v40, %v12064_v37 }
 0x198   : > { %v936_v32 = vpop.f32.mrb[23].mxu0  ;;  %10559 = vmatprep.subr.msk.bf16.mxu1 %vm375_vm1, %v3897_v19  ;;  %v3958_v40 = vsel %vm375_vm1, %v3904_v4, 0 }
 0x199   : > { %v972_v30 = vpop.f32.mrb[20].mxu1 }
 0x19a   : > { %v12147_v36 = vadd.f32 %v972_v30, %v11992_v45  ;;  %v974_v38 = vpop.f32.mrb[21].mxu1  ;;  %10554 = vmatmul.mubr.msk.bf16.vlgmr.msra.gmra.mrb[128].mxu0 %vm371_vm2, %v12114_v8  ;;  %v12159_v45 = vpop.permute.xlu0 %4358 }
 0x19b   : > { %v12152_v27 = vadd.f32 %v974_v38, %v11997_v46  ;;  %v976_v33 = vpop.f32.mrb[22].mxu1  ;;  %4087 = vmatpush1.bf16.msra.mxu0 %v3928_v21  ;;  %4118 = vmatprep.mubr.bf16.mxu0 %v10975_v0  ;;  %v3901_v46 = vsel %vm352_vm0, %v12018_v16, %v12041_v29  ;;  %v4393_v38 = vsel %vm1265_vm3, %v12159_v45, %v12155_v34 }
 0x19c   : > { %v977_v41 = vpop.f32.mrb[23].mxu1  ;;  %10561 = vmatprep.subr.msk.bf16.mxu0 %vm375_vm1, %v3899_v23 }
 0x19d   : > { %v1013_v63 = vpop.f32.mrb[24].mxu0 }
 0x19e   : > { %v12168_v42 = vadd.f32 %v1013_v63, %v12006_v53  ;;  %v1015_v6 = vpop.f32.mrb[25].mxu0  ;;  %10556 = vmatmul.mubr.msk.bf16.vlgmr.msra.gmra.mrb[128].mxu1 %vm371_vm2, %v12114_v8  ;;  %v3900_v53 = vsel %vm352_vm0, %v12024_v9, %v12018_v16  ;;  %v12191_v1 = vpop.permute.xlu0 %4362 }
 0x19f   : > { %v12173_v51 = vadd.f32 %v1015_v6, %v12009_v58  ;;  %4128 = vmatpush1.bf16.msra.mxu1 %v3934_v44  ;;  %v1017_v7 = vpop.f32.mrb[26].mxu0  ;;  %4159 = vmatprep.mubr.bf16.mxu1 %v10975_v0  ;;  %v12184_v58 = vpop.permute.xlu1 %4364  ;;  %v3946_v5 = vsel %vm375_vm1, %v3900_v53, 0  ;;  %v4392_v6 = vsel %vm1265_vm3, %v12125_v62, %v12159_v45 }
 0x1a0   : > { %v1018_v49 = vpop.f32.mrb[27].mxu0  ;;  %10563 = vmatprep.subr.msk.bf16.mxu1 %vm375_vm1, %v3901_v46  ;;  %v4418_v45 = vsel %vm375_vm1, %v4392_v6, 0 }
 0x1a1   : > { %v1054_v2 = vpop.f32.mrb[24].mxu1 }
 0x1a2   : > { %v12187_v55 = vadd.f32 %v1054_v2, %v12016_v50  ;;  %v1056_v56 = vpop.f32.mrb[25].mxu1  ;;  %10558 = vmatmul.mubr.msk.bf16.vlgmr.msra.gmra.mrb[132].mxu0 %vm371_vm2, %v12114_v8  ;;  %v3902_v50 = vsel %vm352_vm0, %v12041_v29, %v12036_v11 }
 0x1a3   : > { %v12194_v60 = vadd.f32 %v1056_v56, %v12022_v59  ;;  %v1058_v16 = vpop.f32.mrb[26].mxu1  ;;  %4169 = vmatpush1.bf16.msra.mxu0 %v3940_v47  ;;  %4200 = vmatprep.mubr.bf16.mxu0 %v10975_v0  ;;  %v12214_v11 = vpop.permute.xlu1 %4368  ;;  %v3952_v15 = vsel %vm375_vm1, %v3902_v50, 0 }
 0x1a4   : > { %v1059_v9 = vpop.f32.mrb[27].mxu1  ;;  %10565 = vmatprep.subr.msk.bf16.mxu0 %vm375_vm1, %v3903_v54 }
 0x1a5   : > { %v1095_v10 = vpop.f32.mrb[28].mxu0 }
 0x1a6   : > { %v12206_v59 = vadd.f32 %v1095_v10, %v12029_v13  ;;  %v1097_v24 = vpop.f32.mrb[29].mxu0  ;;  %10560 = vmatmul.mubr.msk.bf16.vlgmr.msra.gmra.mrb[132].mxu1 %vm371_vm2, %v12114_v8  ;;  %v4367_v13 = vpop.permute.xlu0 %4366 }
 0x1a7   : > { %v12211_v17 = vadd.f32 %v1097_v24, %v12031_v22  ;;  %4210 = vmatpush1.bf16.msra.mxu1 %v3946_v5  ;;  %v1099_v19 = vpop.f32.mrb[30].mxu0  ;;  %4241 = vmatprep.mubr.bf16.mxu1 %v10975_v0  ;;  %v4391_v22 = vsel %vm1265_vm3, %v12132_v28, %v12125_v62  ;;  %v4397_v56 = vsel %vm1265_vm3, %v4367_v13, %v12214_v11  ;;  %v12286_v5 = vld [vmem:[%s14028_s1 + $0x10] sm:$0x3] }
 0x1a8   : > { %v1100_v29 = vpop.f32.mrb[31].mxu0  ;;  %10567 = vmatprep.subr.msk.bf16.mxu1 %vm375_vm1, %v3905_v35 }
 0x1a9   : > { %v1136_v25 = vpop.f32.mrb[28].mxu1 }
 0x1aa   : > { %v12225_v32 = vadd.f32 %v1136_v25, %v12043_v14  ;;  %v1138_v21 = vpop.f32.mrb[29].mxu1  ;;  %10562 = vmatmul.mubr.msk.bf16.vlgmr.msra.gmra.mrb[136].mxu0 %vm371_vm2, %v12114_v8  ;;  %v4390_v14 = vsel %vm1265_vm3, %v12088_v52, %v12132_v28  ;;  %v4371_v41 = vpop.permute.xlu0 %4370 }
 0x1ab   : > { %v12230_v26 = vadd.f32 %v1138_v21, %v12050_v20  ;;  %v1140_v30 = vpop.f32.mrb[30].mxu1  ;;  %4251 = vmatpush1.bf16.msra.mxu0 %v3952_v15  ;;  %4282 = vmatprep.mubr.bf16.mxu0 %v10975_v0  ;;  %v12241_v20 = vpop.permute.xlu1 %4372  ;;  %v4412_v63 = vsel %vm375_vm1, %v4390_v14, 0  ;;  %v4398_v25 = vsel %vm1265_vm3, %v12214_v11, %v4371_v41 }
 0x1ac   : > { %v1141_v37 = vpop.f32.mrb[31].mxu1  ;;  %10570 = vmatprep.subr.msk.bf16.mxu0 %vm375_vm1, %v4391_v22  ;;  %v4399_v10 = vsel %vm1265_vm3, %v4371_v41, %v12241_v20  ;;  %v4436_v11 = vsel %vm375_vm1, %v4398_v25, 0 }
 0x1ad   : > { %v1177_v23 = vpop.f32.mrb[32].mxu0 }
 0x1ae   : > { %v1179_v33 = vpop.f32.mrb[33].mxu0  ;;  %10564 = vmatmul.mubr.msk.bf16.vlgmr.msra.gmra.mrb[136].mxu1 %vm371_vm2, %v12114_v8  ;;  %v12246_v44 = vadd.f32 %v1177_v23, %v12059_v31  ;;  %v4395_v31 = vsel %vm1265_vm3, %v12191_v1, %v12184_v58  ;;  %v4375_v2 = vpop.permute.xlu0 %4374 }
 0x1af   : > { %4292 = vmatpush1.bf16.msra.mxu1 %v3958_v40  ;;  %v1181_v61 = vpop.f32.mrb[34].mxu0  ;;  %4323 = vmatprep.mubr.bf16.mxu1 %v10975_v0  ;;  %v12250_v52 = vadd.f32 %v1179_v33, %v12066_v39  ;;  %v12266_v47 = vpop.permute.xlu1 %4376 }
 0x1b0   : > { %v1182_v28 = vpop.f32.mrb[35].mxu0  ;;  %10572 = vmatprep.subr.msk.bf16.mxu1 %vm375_vm1, %v4393_v38  ;;  %v4400_v38 = vsel %vm1265_vm3, %v12241_v20, %v4375_v2 }
 0x1b1   : > { %v1218_v46 = vpop.f32.mrb[32].mxu1 }
 0x1b2   : > { %v1220_v7 = vpop.f32.mrb[33].mxu1  ;;  %10566 = vmatmul.mubr.msk.bf16.vlgmr.msra.gmra.mrb[140].mxu0 %vm371_vm2, %v12114_v8  ;;  %v12263_v39 = vadd.f32 %v1218_v46, %v12078_v43  ;;  %v4394_v43 = vsel %vm1265_vm3, %v12155_v34, %v12191_v1  ;;  %v4379_v19 = vpop.permute.xlu0 %4378 }
 0x1b3   : > { %v1222_v49 = vpop.f32.mrb[34].mxu1  ;;  %4466 = vmatpush1.bf16.msra.mxu0 %v4412_v63  ;;  %4497 = vmatprep.mubr.bf16.mxu0 %v10975_v0  ;;  %v12269_v53 = vadd.f32 %v1220_v7, %v12085_v48  ;;  %v4424_v50 = vsel %vm375_vm1, %v4394_v43, 0  ;;  %v4381_v35 = vpop.permute.xlu1 %4380  ;;  %v4442_v63 = vsel %vm375_vm1, %v4400_v38, 0  ;;  %v4402_v46 = vsel %vm1265_vm3, %v12266_v47, %v4379_v19 }
 0x1b4   : > { %v1223_v62 = vpop.f32.mrb[35].mxu1  ;;  %10574 = vmatprep.subr.msk.bf16.mxu0 %vm375_vm1, %v4395_v31 }
 0x1b5   : > { %v1375_v54 = vpop.f32.mrb[36].mxu0 }
 0x1b6   : > { %v1377_v16 = vpop.f32.mrb[37].mxu0  ;;  %10568 = vmatmul.mubr.msk.bf16.vlgmr.msra.gmra.mrb[140].mxu1 %vm371_vm2, %v12114_v8  ;;  %v12281_v48 = vadd.f32 %v1375_v54, %v12104_v57  ;;  %v4396_v57 = vsel %vm1265_vm3, %v12184_v58, %v4367_v13  ;;  %v4383_v23 = vpop.permute.xlu0 %4382 }
 0x1b7   : > { %4507 = vmatpush1.bf16.msra.mxu1 %v4418_v45  ;;  %v1379_v9 = vpop.f32.mrb[38].mxu0  ;;  %4538 = vmatprep.mubr.bf16.mxu1 %v10975_v0  ;;  %v12290_v34 = vadd.f32 %v1377_v16, %v12109_v3  ;;  %v4430_v13 = vsel %vm375_vm1, %v4396_v57, 0  ;;  %v4385_v30 = vpop.permute.xlu1 %4384  ;;  %v4404_v54 = vsel %vm1265_vm3, %v4381_v35, %v4383_v23 }
 0x1b8   : > { %v1380_v1 = vpop.f32.mrb[39].mxu0  ;;  %10576 = vmatprep.subr.msk.bf16.mxu1 %vm375_vm1, %v4397_v56  ;;  %v4405_v6 = vsel %vm1265_vm3, %v4383_v23, %v4385_v30 }
 0x1b9   : > { %v1416_v8 = vpop.f32.mrb[36].mxu1  ;;  %v4454_v1 = vsel %vm375_vm1, %v4404_v54, 0 }
 0x1ba   : > { %v1418_v24 = vpop.f32.mrb[37].mxu1  ;;  %10571 = vmatmul.mubr.msk.bf16.vlgmr.msra.gmra.mrb[144].mxu0 %vm371_vm2, %v12286_v5  ;;  %v12301_v3 = vadd.f32 %v1416_v8, %v12128_v12  ;;  %v4401_v12 = vsel %vm1265_vm3, %v4375_v2, %v12266_v47  ;;  %v4387_v7 = vpop.permute.xlu0 %4386  ;;  %v4448_v47 = vsel %vm375_vm1, %v4402_v46, 0 }
 0x1bb   : > { %v1420_v29 = vpop.f32.mrb[38].mxu1  ;;  %4548 = vmatpush1.bf16.msra.mxu0 %v4424_v50  ;;  %4579 = vmatprep.mubr.bf16.mxu0 %v10975_v0  ;;  %v12305_v15 = vadd.f32 %v1418_v24, %v12135_v18  ;;  %v4406_v8 = vsel %vm1265_vm3, %v4385_v30, %v4387_v7 }
 0x1bc   : > { %v1421_v58 = vpop.f32.mrb[39].mxu1  ;;  %10578 = vmatprep.subr.msk.bf16.mxu0 %vm375_vm1, %v4399_v10  ;;  %v4460_v24 = vsel %vm375_vm1, %v4406_v8, 0 }
 0x1bd   : > { %v1457_v4 = vpop.f32.mrb[40].mxu0 }
 0x1be   : > { %v1459_v22 = vpop.f32.mrb[41].mxu0  ;;  %10573 = vmatmul.mubr.msk.bf16.vlgmr.msra.gmra.mrb[144].mxu1 %vm371_vm2, %v12286_v5  ;;  %v12316_v21 = vadd.f32 %v1457_v4, %v12147_v36  ;;  %v4403_v36 = vsel %vm1265_vm3, %v4379_v19, %v4381_v35 }
 0x1bf   : > { %4589 = vmatpush1.bf16.msra.mxu1 %v4430_v13  ;;  %v1461_v18 = vpop.f32.mrb[42].mxu0  ;;  %4620 = vmatprep.mubr.bf16.mxu1 %v10975_v0  ;;  %v12320_v37 = vadd.f32 %v1459_v22, %v12152_v27 }
 0x1c0   : > { %v1462_v40 = vpop.f32.mrb[43].mxu0  ;;  %10580 = vmatprep.subr.msk.bf16.mxu1 %vm375_vm1, %v4401_v12 }
 0x1c1   : > { %v1498_v14 = vpop.f32.mrb[40].mxu1 }
 0x1c2   : > { %v1500_v33 = vpop.f32.mrb[41].mxu1  ;;  %10575 = vmatmul.mubr.msk.bf16.vlgmr.msra.gmra.mrb[148].mxu0 %vm371_vm2, %v12286_v5  ;;  %v12330_v41 = vadd.f32 %v1498_v14, %v12168_v42  ;;  %v4389_v42 = vpop.permute.xlu1 %4388 }
 0x1c3   : > { %v1502_v27 = vpop.f32.mrb[42].mxu1  ;;  %4630 = vmatpush1.bf16.msra.mxu0 %v4436_v11  ;;  %4661 = vmatprep.mubr.bf16.mxu0 %v10975_v0  ;;  %v12334_v61 = vadd.f32 %v1500_v33, %v12173_v51  ;;  %v4407_v43 = vsel %vm1265_vm3, %v4387_v7, %v4389_v42 }
 0x1c4   : > { %v1503_v28 = vpop.f32.mrb[43].mxu1  ;;  %10582 = vmatprep.subr.msk.bf16.mxu0 %vm375_vm1, %v4403_v36 }
 0x1c5   : > { %v1539_v20 = vpop.f32.mrb[44].mxu0 }
 0x1c6   : > { %v1541_v31 = vpop.f32.mrb[45].mxu0  ;;  %10577 = vmatmul.mubr.msk.bf16.vlgmr.msra.gmra.mrb[148].mxu1 %vm371_vm2, %v12286_v5  ;;  %v12344_v51 = vadd.f32 %v1539_v20, %v12187_v55 }
 0x1c7   : > { %4671 = vmatpush1.bf16.msra.mxu1 %v4442_v63  ;;  %v1543_v49 = vpop.f32.mrb[46].mxu0  ;;  %4702 = vmatprep.mubr.bf16.mxu1 %v10975_v0  ;;  %v12348_v62 = vadd.f32 %v1541_v31, %v12194_v60 }
 0x1c8   : > { %v1544_v45 = vpop.f32.mrb[47].mxu0  ;;  %10584 = vmatprep.subr.msk.bf16.mxu1 %vm375_vm1, %v4405_v6 }
 0x1c9   : > { %v1580_v2 = vpop.f32.mrb[44].mxu1 }
 0x1ca   : > { %v1582_v56 = vpop.f32.mrb[45].mxu1  ;;  %10579 = vmatmul.mubr.msk.bf16.vlgmr.msra.gmra.mrb[152].mxu0 %vm371_vm2, %v12286_v5  ;;  %v12357_v55 = vadd.f32 %v1580_v2, %v12206_v59 }
 0x1cb   : > { %v1584_v16 = vpop.f32.mrb[46].mxu1  ;;  %4712 = vmatpush1.bf16.msra.mxu0 %v4448_v47  ;;  %4743 = vmatprep.mubr.bf16.mxu0 %v10975_v0  ;;  %v12361_v60 = vadd.f32 %v1582_v56, %v12211_v17 }
 0x1cc   : > { %v1585_v9 = vpop.f32.mrb[47].mxu1  ;;  %10586 = vmatprep.subr.msk.bf16.mxu0 %vm375_vm1, %v4407_v43 }
 0x1cd   : > { %v1621_v50 = vpop.f32.mrb[48].mxu0 }
 0x1ce   : > { %v1623_v57 = vpop.f32.mrb[49].mxu0  ;;  %10581 = vmatmul.mubr.msk.bf16.vlgmr.msra.gmra.mrb[152].mxu1 %vm371_vm2, %v12286_v5  ;;  %v12369_v59 = vadd.f32 %v1621_v50, %v12225_v32 }
 0x1cf   : > { %4753 = vmatpush1.bf16.msra.mxu1 %v4454_v1  ;;  %v1625_v10 = vpop.f32.mrb[50].mxu0  ;;  %4784 = vmatprep.mubr.bf16.mxu1 %v10975_v0  ;;  %v1723_v17 = vadd.f32 %v1623_v57, %v12230_v26 }
 0x1d0   : > { %v1626_v35 = vpop.f32.mrb[51].mxu0 }
 0x1d1   : > { %v1662_v19 = vpop.f32.mrb[48].mxu1 }
 0x1d2   : > { %v1724_v29 = vadd.f32 %v1662_v19, %v12246_v44  ;;  %v1664_v58 = vpop.f32.mrb[49].mxu1  ;;  %10583 = vmatmul.mubr.msk.bf16.vlgmr.msra.gmra.mrb[156].mxu0 %vm371_vm2, %v12286_v5 }
 0x1d3   : > { %v1725_v13 = vadd.f32 %v1664_v58, %v12250_v52  ;;  %v1666_v32 = vpop.f32.mrb[50].mxu1  ;;  %4794 = vmatpush1.bf16.msra.mxu0 %v4460_v24  ;;  %4825 = vmatprep.mubr.bf16.mxu0 %v10975_v0 }
 0x1d4   : > { %v1667_v4 = vpop.f32.mrb[51].mxu1 }
 0x1d5   : > { %v1703_v25 = vpop.f32.mrb[52].mxu0 }
 0x1d6   : > { %v1726_v26 = vadd.f32 %v1703_v25, %v12263_v39  ;;  %v1705_v12 = vpop.f32.mrb[53].mxu0  ;;  %10585 = vmatmul.mubr.msk.bf16.vlgmr.msra.gmra.mrb[156].mxu1 %vm371_vm2, %v12286_v5 }
 0x1d7   : > { %v1727_v44 = vadd.f32 %v1705_v12, %v12269_v53  ;;  %v1707_v22 = vpop.f32.mrb[54].mxu0  ;;  %5340 = vmatprep.mubr.bf16.mxu1 %v10975_v0 }
 0x1d8   : > { %v1708_v18 = vpop.f32.mrb[55].mxu0 }
 0x1d9   : > { %v1875_v30 = vpop.f32.mrb[52].mxu1 }
 0x1da   : > { %v2210_v52 = vadd.f32 %v1875_v30, %v12281_v48  ;;  %v1877_v40 = vpop.f32.mrb[53].mxu1  ;;  %10587 = vmatmul.mubr.msk.bf16.vlgmr.msra.gmra.mrb[160].mxu0 %vm371_vm2, %v12286_v5 }
 0x1db   : > { %v2211_v11 = vadd.f32 %v1877_v40, %v12290_v34  ;;  %v1879_v39 = vpop.f32.mrb[54].mxu1  ;;  %5381 = vmatprep.mubr.bf16.mxu0 %v10975_v0 }
 0x1dc   : > { %v1880_v23 = vpop.f32.mrb[55].mxu1 }
 0x1dd   : > { %v1916_v14 = vpop.f32.mrb[56].mxu0 }
 0x1de   : > { %v2212_v53 = vadd.f32 %v1916_v14, %v12301_v3  ;;  %v1918_v38 = vpop.f32.mrb[57].mxu0 }
 0x1df   : > { %v2213_v36 = vadd.f32 %v1918_v38, %v12305_v15  ;;  %v1920_v33 = vpop.f32.mrb[58].mxu0 }
 0x1e0   : > { %v1921_v27 = vpop.f32.mrb[59].mxu0 }
 0x1e1   : > { %v1957_v28 = vpop.f32.mrb[56].mxu1 }
 0x1e2   : > { %v2214_v48 = vadd.f32 %v1957_v28, %v12316_v21  ;;  %v1959_v63 = vpop.f32.mrb[57].mxu1 }
 0x1e3   : > { %v2215_v5 = vadd.f32 %v1959_v63, %v12320_v37  ;;  %v1961_v20 = vpop.f32.mrb[58].mxu1 }
 0x1e4   : > { %v1962_v34 = vpop.f32.mrb[59].mxu1 }
 0x1e5   : > { %v1998_v46 = vpop.f32.mrb[60].mxu0 }
 0x1e6   : > { %v2216_v6 = vadd.f32 %v1998_v46, %v12330_v41  ;;  %v2000_v42 = vpop.f32.mrb[61].mxu0 }
 0x1e7   : > { %v2217_v31 = vadd.f32 %v2000_v42, %v12334_v61  ;;  %v2002_v3 = vpop.f32.mrb[62].mxu0 }
 0x1e8   : > { %v2003_v7 = vpop.f32.mrb[63].mxu0 }
 0x1e9   : > { %v2039_v49 = vpop.f32.mrb[60].mxu1 }
 0x1ea   : > { %v2218_v15 = vadd.f32 %v2039_v49, %v12344_v51  ;;  %v2041_v45 = vpop.f32.mrb[61].mxu1 }
 0x1eb   : > { %v2219_v47 = vadd.f32 %v2041_v45, %v12348_v62  ;;  %v2043_v21 = vpop.f32.mrb[62].mxu1 }
 0x1ec   : > { %v2044_v2 = vpop.f32.mrb[63].mxu1 }
 0x1ed   : > { %v2080_v54 = vpop.f32.mrb[64].mxu0 }
 0x1ee   : > { %v2220_v37 = vadd.f32 %v2080_v54, %v12357_v55  ;;  %v2082_v43 = vpop.f32.mrb[65].mxu0 }
 0x1ef   : > { %v2221_v56 = vadd.f32 %v2082_v43, %v12361_v60  ;;  %v2084_v41 = vpop.f32.mrb[66].mxu0 }
 0x1f0   : > { %v2085_v16 = vpop.f32.mrb[67].mxu0 }
 0x1f1   : > { %v2121_v9 = vpop.f32.mrb[64].mxu1 }
 0x1f2   : > { %v2222_v61 = vadd.f32 %v2121_v9, %v12369_v59  ;;  %v2123_v1 = vpop.f32.mrb[65].mxu1 }
 0x1f3   : > { %v2223_v50 = vadd.f32 %v2123_v1, %v1723_v17  ;;  %v2125_v8 = vpop.f32.mrb[66].mxu1 }
 0x1f4   : > { %v2126_v51 = vpop.f32.mrb[67].mxu1 }
 0x1f5   : > { %v2162_v57 = vpop.f32.mrb[68].mxu0 }
 0x1f6   : > { %v2224_v10 = vadd.f32 %v2162_v57, %v1724_v29  ;;  %v2164_v62 = vpop.f32.mrb[69].mxu0 }
 0x1f7   : > { %v2225_v35 = vadd.f32 %v2164_v62, %v1725_v13  ;;  %v2166_v24 = vpop.f32.mrb[70].mxu0 }
 0x1f8   : > { %v2167_v19 = vpop.f32.mrb[71].mxu0 }
 0x1f9   : > { %v2203_v58 = vpop.f32.mrb[68].mxu1 }
 0x1fa   : > { %v2226_v55 = vadd.f32 %v2203_v58, %v1726_v26  ;;  %v2205_v32 = vpop.f32.mrb[69].mxu1 }
 0x1fb   : > { %v2227_v4 = vadd.f32 %v2205_v32, %v1727_v44  ;;  %v2207_v60 = vpop.f32.mrb[70].mxu1 }
 0x1fc   : > { %v2208_v25 = vpop.f32.mrb[71].mxu1 }
 0x1fd   : > { %v2435_v12 = vpop.f32.mrb[72].mxu0 }
 0x1fe   : > { %v2770_v22 = vadd.f32 %v2435_v12, %v2210_v52  ;;  %v2437_v18 = vpop.f32.mrb[73].mxu0 }
 0x1ff   : > { %v2771_v59 = vadd.f32 %v2437_v18, %v2211_v11  ;;  %v2439_v30 = vpop.f32.mrb[74].mxu0 }
 0x200   : > { %v2440_v17 = vpop.f32.mrb[75].mxu0 }
 0x201   : > { %v2476_v40 = vpop.f32.mrb[72].mxu1 }
 0x202   : > { %v2772_v39 = vadd.f32 %v2476_v40, %v2212_v53  ;;  %v2478_v23 = vpop.f32.mrb[73].mxu1 }
 0x203   : > { %v2773_v29 = vadd.f32 %v2478_v23, %v2213_v36  ;;  %v2480_v14 = vpop.f32.mrb[74].mxu1 }
 0x204   : > { %v2481_v13 = vpop.f32.mrb[75].mxu1 }
 0x205   : > { %v2517_v38 = vpop.f32.mrb[76].mxu0 }
 0x206   : > { %v2774_v33 = vadd.f32 %v2517_v38, %v2214_v48  ;;  %v2519_v27 = vpop.f32.mrb[77].mxu0 }
 0x207   : > { %v2775_v26 = vadd.f32 %v2519_v27, %v2215_v5  ;;  %v2521_v28 = vpop.f32.mrb[78].mxu0 }
 0x208   : > { %v2522_v44 = vpop.f32.mrb[79].mxu0 }
 0x209   : > { %v2558_v63 = vpop.f32.mrb[76].mxu1 }
 0x20a   : > { %v2776_v20 = vadd.f32 %v2558_v63, %v2216_v6  ;;  %v2560_v34 = vpop.f32.mrb[77].mxu1 }
 0x20b   : > { %v2777_v52 = vadd.f32 %v2560_v34, %v2217_v31  ;;  %v2562_v46 = vpop.f32.mrb[78].mxu1 }
 0x20c   : > { %v2563_v11 = vpop.f32.mrb[79].mxu1 }
 0x20d   : > { %v2599_v42 = vpop.f32.mrb[80].mxu0 }
 0x20e   : > { %v2778_v3 = vadd.f32 %v2599_v42, %v2218_v15  ;;  %v2601_v7 = vpop.f32.mrb[81].mxu0 }
 0x20f   : > { %v2779_v53 = vadd.f32 %v2601_v7, %v2219_v47  ;;  %v2603_v49 = vpop.f32.mrb[82].mxu0 }
 0x210   : > { %v2604_v36 = vpop.f32.mrb[83].mxu0 }
 0x211   : > { %v2640_v45 = vpop.f32.mrb[80].mxu1 }
 0x212   : > { %v2780_v21 = vadd.f32 %v2640_v45, %v2220_v37  ;;  %v2642_v2 = vpop.f32.mrb[81].mxu1 }
 0x213   : > { %v2781_v48 = vadd.f32 %v2642_v2, %v2221_v56  ;;  %v2644_v54 = vpop.f32.mrb[82].mxu1 }
 0x214   : > { %v2645_v5 = vpop.f32.mrb[83].mxu1 }
 0x215   : > { %v2681_v43 = vpop.f32.mrb[84].mxu0 }
 0x216   : > { %v2782_v41 = vadd.f32 %v2681_v43, %v2222_v61  ;;  %v2683_v16 = vpop.f32.mrb[85].mxu0 }
 0x217   : > { %v2783_v6 = vadd.f32 %v2683_v16, %v2223_v50  ;;  %v2685_v9 = vpop.f32.mrb[86].mxu0 }
 0x218   : > { %v2686_v31 = vpop.f32.mrb[87].mxu0 }
 0x219   : > { %v2722_v1 = vpop.f32.mrb[84].mxu1 }
 0x21a   : > { %v2784_v8 = vadd.f32 %v2722_v1, %v2224_v10  ;;  %v2724_v51 = vpop.f32.mrb[85].mxu1 }
 0x21b   : > { %v2785_v15 = vadd.f32 %v2724_v51, %v2225_v35  ;;  %v2726_v57 = vpop.f32.mrb[86].mxu1 }
 0x21c   : > { %v2727_v47 = vpop.f32.mrb[87].mxu1 }
 0x21d   : > { %v2763_v62 = vpop.f32.mrb[88].mxu0 }
 0x21e   : > { %v2786_v24 = vadd.f32 %v2763_v62, %v2226_v55  ;;  %v2765_v19 = vpop.f32.mrb[89].mxu0 }
 0x21f   : > { %v2787_v37 = vadd.f32 %v2765_v19, %v2227_v4  ;;  %v2767_v58 = vpop.f32.mrb[90].mxu0 }
 0x220   : > { %v2768_v56 = vpop.f32.mrb[91].mxu0 }
 0x221   : > { %v2937_v32 = vpop.f32.mrb[88].mxu1 }
 0x222   : > { %v3272_v60 = vadd.f32 %v2937_v32, %v2770_v22  ;;  %v2939_v25 = vpop.f32.mrb[89].mxu1 }
 0x223   : > { %v3273_v61 = vadd.f32 %v2939_v25, %v2771_v59  ;;  %v2941_v12 = vpop.f32.mrb[90].mxu1 }
 0x224   : > { %v2942_v50 = vpop.f32.mrb[91].mxu1 }
 0x225   : > { %v2978_v18 = vpop.f32.mrb[92].mxu0 }
 0x226   : > { %v3274_v30 = vadd.f32 %v2978_v18, %v2772_v39  ;;  %v2980_v17 = vpop.f32.mrb[93].mxu0 }
 0x227   : > { %v3275_v10 = vadd.f32 %v2980_v17, %v2773_v29  ;;  %v2982_v40 = vpop.f32.mrb[94].mxu0 }
 0x228   : > { %v2983_v35 = vpop.f32.mrb[95].mxu0 }
 0x229   : > { %v3019_v23 = vpop.f32.mrb[92].mxu1 }
 0x22a   : > { %v3276_v14 = vadd.f32 %v3019_v23, %v2774_v33  ;;  %v3021_v13 = vpop.f32.mrb[93].mxu1 }
 0x22b   : > { %v3277_v55 = vadd.f32 %v3021_v13, %v2775_v26  ;;  %v3023_v38 = vpop.f32.mrb[94].mxu1 }
 0x22c   : > { %v3024_v4 = vpop.f32.mrb[95].mxu1 }
 0x22d   : > { %v3060_v27 = vpop.f32.mrb[96].mxu0 }
 0x22e   : > { %v3278_v28 = vadd.f32 %v3060_v27, %v2776_v20  ;;  %v3062_v44 = vpop.f32.mrb[97].mxu0 }
 0x22f   : > { %v3279_v22 = vadd.f32 %v3062_v44, %v2777_v52  ;;  %v3064_v63 = vpop.f32.mrb[98].mxu0 }
 0x230   : > { %v3065_v59 = vpop.f32.mrb[99].mxu0 }
 0x231   : > { %v3101_v34 = vpop.f32.mrb[96].mxu1 }
 0x232   : > { %v3280_v46 = vadd.f32 %v3101_v34, %v2778_v3  ;;  %v3103_v11 = vpop.f32.mrb[97].mxu1 }
 0x233   : > { %v3281_v39 = vadd.f32 %v3103_v11, %v2779_v53  ;;  %v3105_v42 = vpop.f32.mrb[98].mxu1 }
 0x234   : > { %v3106_v29 = vpop.f32.mrb[99].mxu1 }
 0x235   : > { %v3142_v7 = vpop.f32.mrb[100].mxu0 }
 0x236   : > { %v3282_v49 = vadd.f32 %v3142_v7, %v2780_v21  ;;  %v3144_v36 = vpop.f32.mrb[101].mxu0 }
 0x237   : > { %v3283_v33 = vadd.f32 %v3144_v36, %v2781_v48  ;;  %v3146_v45 = vpop.f32.mrb[102].mxu0 }
 0x238   : > { %v3147_v26 = vpop.f32.mrb[103].mxu0 }
 0x239   : > { %v3183_v2 = vpop.f32.mrb[100].mxu1 }
 0x23a   : > { %v3284_v54 = vadd.f32 %v3183_v2, %v2782_v41  ;;  %v3185_v5 = vpop.f32.mrb[101].mxu1 }
 0x23b   : > { %v3285_v20 = vadd.f32 %v3185_v5, %v2783_v6  ;;  %v3187_v43 = vpop.f32.mrb[102].mxu1 }
 0x23c   : > { %v3188_v52 = vpop.f32.mrb[103].mxu1 }
 0x23d   : > { %v3224_v16 = vpop.f32.mrb[104].mxu0 }
 0x23e   : > { %v3286_v9 = vadd.f32 %v3224_v16, %v2784_v8  ;;  %v3226_v31 = vpop.f32.mrb[105].mxu0 }
 0x23f   : > { %v3287_v3 = vadd.f32 %v3226_v31, %v2785_v15  ;;  %v3228_v1 = vpop.f32.mrb[106].mxu0 }
 0x240   : > { %v3229_v53 = vpop.f32.mrb[107].mxu0 }
 0x241   : > { %v3265_v51 = vpop.f32.mrb[104].mxu1 }
 0x242   : > { %v3288_v57 = vadd.f32 %v3265_v51, %v2786_v24  ;;  %v3267_v47 = vpop.f32.mrb[105].mxu1 }
 0x243   : > { %v3289_v21 = vadd.f32 %v3267_v47, %v2787_v37  ;;  %v3269_v62 = vpop.f32.mrb[106].mxu1 }
 0x244   : > { %v3270_v48 = vpop.f32.mrb[107].mxu1 }
 0x245   : > { %v3437_v19 = vpop.f32.mrb[108].mxu0 }
 0x246   : > { %v3772_v58 = vadd.f32 %v3437_v19, %v3272_v60  ;;  %v3439_v56 = vpop.f32.mrb[109].mxu0 }
 0x247   : > { %v3773_v41 = vadd.f32 %v3439_v56, %v3273_v61  ;;  %v3441_v32 = vpop.f32.mrb[110].mxu0 }
 0x248   : > { %v3442_v6 = vpop.f32.mrb[111].mxu0 }
 0x249   : > { %v3478_v25 = vpop.f32.mrb[108].mxu1 }
 0x24a   : > { %v3774_v12 = vadd.f32 %v3478_v25, %v3274_v30  ;;  %v3480_v50 = vpop.f32.mrb[109].mxu1 }
 0x24b   : > { %v3775_v8 = vadd.f32 %v3480_v50, %v3275_v10  ;;  %v3482_v18 = vpop.f32.mrb[110].mxu1 }
 0x24c   : > { %v3483_v15 = vpop.f32.mrb[111].mxu1 }
 0x24d   : > { %v3519_v17 = vpop.f32.mrb[112].mxu0 }
 0x24e   : > { %v3776_v40 = vadd.f32 %v3519_v17, %v3276_v14  ;;  %v3521_v35 = vpop.f32.mrb[113].mxu0 }
 0x24f   : > { %v3777_v24 = vadd.f32 %v3521_v35, %v3277_v55  ;;  %v3523_v23 = vpop.f32.mrb[114].mxu0 }
 0x250   : > { %v3524_v37 = vpop.f32.mrb[115].mxu0 }
 0x251   : > { %v3560_v13 = vpop.f32.mrb[112].mxu1 }
 0x252   : > { %v3778_v38 = vadd.f32 %v3560_v13, %v3278_v28  ;;  %v3562_v4 = vpop.f32.mrb[113].mxu1 }
 0x253   : > { %v3779_v60 = vadd.f32 %v3562_v4, %v3279_v22  ;;  %v3564_v27 = vpop.f32.mrb[114].mxu1 }
 0x254   : > { %v3565_v61 = vpop.f32.mrb[115].mxu1 }
 0x255   : > { %v3601_v44 = vpop.f32.mrb[116].mxu0 }
 0x256   : > { %v3780_v63 = vadd.f32 %v3601_v44, %v3280_v46  ;;  %v3603_v59 = vpop.f32.mrb[117].mxu0 }
 0x257   : > { %v3781_v30 = vadd.f32 %v3603_v59, %v3281_v39  ;;  %v3605_v34 = vpop.f32.mrb[118].mxu0 }
 0x258   : > { %v3606_v10 = vpop.f32.mrb[119].mxu0 }
 0x259   : > { %v3642_v11 = vpop.f32.mrb[116].mxu1 }
 0x25a   : > { %v3782_v42 = vadd.f32 %v3642_v11, %v3282_v49  ;;  %v3644_v29 = vpop.f32.mrb[117].mxu1 }
 0x25b   : > { %v3783_v14 = vadd.f32 %v3644_v29, %v3283_v33  ;;  %v3646_v7 = vpop.f32.mrb[118].mxu1 }
 0x25c   : > { %v3647_v55 = vpop.f32.mrb[119].mxu1 }
 0x25d   : > { %v3683_v36 = vpop.f32.mrb[120].mxu0 }
 0x25e   : > { %v3784_v45 = vadd.f32 %v3683_v36, %v3284_v54  ;;  %v3685_v26 = vpop.f32.mrb[121].mxu0 }
 0x25f   : > { %v3785_v28 = vadd.f32 %v3685_v26, %v3285_v20  ;;  %v3687_v2 = vpop.f32.mrb[122].mxu0 }
 0x260   : > { %v3688_v22 = vpop.f32.mrb[123].mxu0 }
 0x261   : > { %v3724_v5 = vpop.f32.mrb[120].mxu1 }
 0x262   : > { %v3786_v43 = vadd.f32 %v3724_v5, %v3286_v9  ;;  %v3726_v52 = vpop.f32.mrb[121].mxu1 }
 0x263   : > { %v3787_v46 = vadd.f32 %v3726_v52, %v3287_v3  ;;  %v3728_v16 = vpop.f32.mrb[122].mxu1 }
 0x264   : > { %v3729_v39 = vpop.f32.mrb[123].mxu1 }
 0x265   : > { %v3765_v31 = vpop.f32.mrb[124].mxu0 }
 0x266   : > { %v3788_v1 = vadd.f32 %v3765_v31, %v3288_v57  ;;  %v3767_v53 = vpop.f32.mrb[125].mxu0  ;;  %v12428_v31 = vpop.permute.xlu0 %4855 }
 0x267   : > { %v3789_v49 = vadd.f32 %v3767_v53, %v3289_v21  ;;  %v3769_v51 = vpop.f32.mrb[126].mxu0 }
 0x268   : > { %v3770_v33 = vpop.f32.mrb[127].mxu0 }
 0x269   : > { %v3997_v47 = vpop.f32.mrb[124].mxu1 }
 0x26a   : > { %v4332_v62 = vadd.f32 %v3997_v47, %v3772_v58  ;;  %v3999_v48 = vpop.f32.mrb[125].mxu1 }
 0x26b   : > { %v4333_v54 = vadd.f32 %v3999_v48, %v3773_v41  ;;  %v4001_v19 = vpop.f32.mrb[126].mxu1 }
 0x26c   : > { %v4002_v20 = vpop.f32.mrb[127].mxu1 }
 0x26d   : > { %v4038_v56 = vpop.f32.mrb[128].mxu0 }
 0x26e   : > { %v4334_v32 = vadd.f32 %v4038_v56, %v3774_v12  ;;  %v4040_v6 = vpop.f32.mrb[129].mxu0  ;;  %v4971_v56 = vlaneseq }
 0x26f   : > { %v4335_v9 = vadd.f32 %v4040_v6, %v3775_v8  ;;  %v4042_v25 = vpop.f32.mrb[130].mxu0 }
 0x270   : > { %v4043_v3 = vpop.f32.mrb[131].mxu0 }
 0x271   : > { %v4079_v50 = vpop.f32.mrb[128].mxu1 }
 0x272   : > { %v12400_v18 = vadd.f32 %v4079_v50, %v3776_v40  ;;  %v4081_v57 = vpop.f32.mrb[129].mxu1 }
 0x273   : > { %v12402_v15 = vadd.f32 %v4081_v57, %v3777_v24  ;;  %v4083_v21 = vpop.f32.mrb[130].mxu1 }
 0x274   : > { %v4084_v17 = vpop.f32.mrb[131].mxu1 }
 0x275   : > { %v4120_v35 = vpop.f32.mrb[132].mxu0 }
 0x276   : > { %v12404_v58 = vadd.f32 %v4120_v35, %v3778_v38  ;;  %v4122_v41 = vpop.f32.mrb[133].mxu0 }
 0x277   : > { %v12406_v23 = vadd.f32 %v4122_v41, %v3779_v60  ;;  %v4124_v37 = vpop.f32.mrb[134].mxu0 }
 0x278   : > { %v4125_v12 = vpop.f32.mrb[135].mxu0 }
 0x279   : > { %v4161_v13 = vpop.f32.mrb[132].mxu1  ;;  %v12434_v12 = vshrl.u32 %v4971_v56, 7 }
 0x27a   : > { %v12408_v8 = vadd.f32 %v4161_v13, %v3780_v63  ;;  %v4163_v4 = vpop.f32.mrb[133].mxu1 }
 0x27b   : > { %v12410_v27 = vadd.f32 %v4163_v4, %v3781_v30  ;;  %v4165_v40 = vpop.f32.mrb[134].mxu1 }
 0x27c   : > { %v4166_v61 = vpop.f32.mrb[135].mxu1 }
 0x27d   : > { %v4202_v24 = vpop.f32.mrb[136].mxu0 }
 0x27e   : > { %v12412_v44 = vadd.f32 %v4202_v24, %v3782_v42  ;;  %v4204_v59 = vpop.f32.mrb[137].mxu0 }
 0x27f   : > { %v12414_v34 = vadd.f32 %v4204_v59, %v3783_v14  ;;  %v4206_v38 = vpop.f32.mrb[138].mxu0 }
 0x280   : > { %v4207_v10 = vpop.f32.mrb[139].mxu0 }
 0x281   : > { %v4243_v60 = vpop.f32.mrb[136].mxu1 }
 0x282   : > { %v12416_v11 = vadd.f32 %v4243_v60, %v3784_v45  ;;  %v4245_v29 = vpop.f32.mrb[137].mxu1 }
 0x283   : > { %v12418_v7 = vadd.f32 %v4245_v29, %v3785_v28  ;;  %v4247_v63 = vpop.f32.mrb[138].mxu1 }
 0x284   : > { %v4248_v55 = vpop.f32.mrb[139].mxu1 }
 0x285   : > { %v4284_v30 = vpop.f32.mrb[140].mxu0 }
 0x286   : > { %v12420_v36 = vadd.f32 %v4284_v30, %v3786_v43  ;;  %v4286_v26 = vpop.f32.mrb[141].mxu0 }
 0x287   : > { %v12422_v2 = vadd.f32 %v4286_v26, %v3787_v46  ;;  %v4288_v42 = vpop.f32.mrb[142].mxu0 }
 0x288   : > { %v4289_v22 = vpop.f32.mrb[143].mxu0 }
 0x289   : > { %v4325_v14 = vpop.f32.mrb[140].mxu1 }
 0x28a   : > { %v12424_v5 = vadd.f32 %v4325_v14, %v3788_v1  ;;  %v4327_v52 = vpop.f32.mrb[141].mxu1  ;;  %v10978_v1 = vmov 1983009808  }
 0x28b   : > { %v12426_v16 = vadd.f32 %v4327_v52, %v3789_v49  ;;  %v4329_v45 = vpop.f32.mrb[142].mxu1  ;;  %v4969_v20 = vunpack.c.l.s4 %v10978_v1 }
 0x28c   : > { %v4330_v39 = vpop.f32.mrb[143].mxu1 }
 0x28d   : > { %v4499_v28 = vpop.f32.mrb[144].mxu0  ;;  %v4970_v37 = vunpack.c.0.s8 %v4969_v20 }
 0x28e   : > { %v4834_v53 = vadd.f32 %v4499_v28, %v4332_v62  ;;  %v4501_v51 = vpop.f32.mrb[145].mxu0 }
 0x28f   : > { %v4835_v43 = vadd.f32 %v4501_v51, %v4333_v54  ;;  %v4503_v33 = vpop.f32.mrb[146].mxu0  ;;  %v12441_v55 = vsub.s32 %v4970_v37, %v12434_v12 }
 0x290   : > { %v4504_v47 = vpop.f32.mrb[147].mxu0  ;;  %v4858_v46 = vadd.f32 %v12428_v31, %v4834_v53 }
 0x291   : > { %v4540_v48 = vpop.f32.mrb[144].mxu1  ;;  %v4859_v19 = vadd.f32 %v12428_v31, %v4835_v43 }
 0x292   : > { %v4836_v49 = vadd.f32 %v4540_v48, %v4334_v32  ;;  %v4542_v6 = vpop.f32.mrb[145].mxu1  ;;  %vm4876_vm4 = vcmp.ge.f32.partialorder %v4858_v46, 0.0  ;;  %v4894_v25 = vmul.f32 0.8, %v4858_v46 }
 0x293   : > { %v4837_v3 = vadd.f32 %v4542_v6, %v4335_v9  ;;  %v4544_v50 = vpop.f32.mrb[146].mxu1  ;;  %vm4877_vm5 = vcmp.ge.f32.partialorder %v4859_v19, 0.0  ;;  %v4895_v62 = vmul.f32 0.8, %v4859_v19 }
 0x294   : > { %v4860_v54 = vadd.f32 %v12428_v31, %v4836_v49  ;;  %v4545_v57 = vpop.f32.mrb[147].mxu1  ;;  %v4912_v21 = vsel %vm4876_vm4, %v4858_v46, %v4894_v25 }
 0x295   : > { %v4861_v17 = vadd.f32 %v12428_v31, %v4837_v3  ;;  %v4581_v35 = vpop.f32.mrb[148].mxu0  ;;  %v4913_v41 = vsel %vm4877_vm5, %v4859_v19, %v4895_v62 }
 0x296   : > { %vm4878_vm6 = vcmp.ge.f32.partialorder %v4860_v54, 0.0  ;;  %v4896_v32 = vmul.f32 0.8, %v4860_v54  ;;  %v4838_v13 = vadd.f32 %v4581_v35, %v12400_v18  ;;  %v4583_v4 = vpop.f32.mrb[149].mxu0  ;;  %v10588_v9 = vpack.c.bf16 %v4913_v41, %v4912_v21 }
 0x297   : > { %vm4879_vm7 = vcmp.ge.f32.partialorder %v4861_v17, 0.0  ;;  %v4897_v40 = vmul.f32 0.8, %v4861_v17  ;;  %v4839_v61 = vadd.f32 %v4583_v4, %v12402_v15  ;;  %v4585_v24 = vpop.f32.mrb[150].mxu0 }
 0x298   : > { %v4914_v59 = vsel %vm4878_vm6, %v4860_v54, %v4896_v32  ;;  %v4862_v38 = vadd.f32 %v12428_v31, %v4838_v13  ;;  %v4586_v10 = vpop.f32.mrb[151].mxu0  ;;  %v4974_v33 = vrot.slane %v10588_v9, %v12441_v55 }
 0x299   : > { %v4915_v60 = vsel %vm4879_vm7, %v4861_v17, %v4897_v40  ;;  %v4863_v29 = vadd.f32 %v12428_v31, %v4839_v61  ;;  %v4622_v63 = vpop.f32.mrb[148].mxu1 }
 0x29a   : > { %v10589_v30 = vpack.c.bf16 %v4915_v60, %v4914_v59  ;;  %vm4880_vm8 = vcmp.ge.f32.partialorder %v4862_v38, 0.0  ;;  %v4898_v18 = vmul.f32 0.8, %v4862_v38  ;;  %v4840_v26 = vadd.f32 %v4622_v63, %v12404_v58  ;;  %v4624_v42 = vpop.f32.mrb[149].mxu1 }
 0x29b   : > { %vm4881_vm9 = vcmp.ge.f32.partialorder %v4863_v29, 0.0  ;;  %v4899_v15 = vmul.f32 0.8, %v4863_v29  ;;  %v4841_v22 = vadd.f32 %v4624_v42, %v12406_v23  ;;  %v4626_v14 = vpop.f32.mrb[150].mxu1 }
 0x29c   : > { %v4916_v52 = vsel %vm4880_vm8, %v4862_v38, %v4898_v18  ;;  %v4864_v45 = vadd.f32 %v12428_v31, %v4840_v26  ;;  %v4627_v39 = vpop.f32.mrb[151].mxu1  ;;  %v4981_v28 = vrot.slane %v10589_v30, %v12441_v55  ;;  %vm5073_vm8 = vcmask 1041416  }
 0x29d   : > { %v4917_v53 = vsel %vm4881_vm9, %v4863_v29, %v4899_v15  ;;  %v4865_v51 = vadd.f32 %v12428_v31, %v4841_v22  ;;  %v4663_v43 = vpop.f32.mrb[152].mxu0  ;;  %vm5074_vm9 = vcmask 1043458  }
 0x29e   : > { %v10590_v47 = vpack.c.bf16 %v4917_v53, %v4916_v52  ;;  %vm4882_vm10 = vcmp.ge.f32.partialorder %v4864_v45, 0.0  ;;  %v4900_v58 = vmul.f32 0.8, %v4864_v45  ;;  %v4842_v46 = vadd.f32 %v4663_v43, %v12408_v8  ;;  %v4665_v48 = vpop.f32.mrb[153].mxu0 }
 0x29f   : > { %vm4883_vm11 = vcmp.ge.f32.partialorder %v4865_v51, 0.0  ;;  %v4901_v23 = vmul.f32 0.8, %v4865_v51  ;;  %v4843_v19 = vadd.f32 %v4665_v48, %v12410_v27  ;;  %v4667_v1 = vpop.f32.mrb[154].mxu0  ;;  %v4982_v20 = vcombine.low %v4974_v33, %v4981_v28 }
 0x2a0   : > { %v4918_v56 = vsel %vm4882_vm10, %v4864_v45, %v4900_v58  ;;  %v4866_v49 = vadd.f32 %v12428_v31, %v4842_v46  ;;  %v4668_v6 = vpop.f32.mrb[155].mxu0  ;;  %v4991_v40 = vrot.slane %v10590_v47, %v12441_v55  ;;  %vm5075_vm10 = vmor %vm5074_vm9, %vm5073_vm8  ;;  %vm5086_vm8 = vcmask 5124  }
 0x2a1   : > { %v4919_v25 = vsel %vm4883_vm11, %v4865_v51, %v4901_v23  ;;  %v4867_v3 = vadd.f32 %v12428_v31, %v4843_v19  ;;  %5042 = vrot.lane.b32.xlu1 %v4982_v20, %s10979_s29  ;;  %v4704_v50 = vpop.f32.mrb[152].mxu1  ;;  %vm5076_vm11 = vcmask 1045508  }
 0x2a2   : > { %v10591_v62 = vpack.c.bf16 %v4919_v25, %v4918_v56  ;;  %vm4884_vm12 = vcmp.ge.f32.partialorder %v4866_v49, 0.0  ;;  %v4902_v8 = vmul.f32 0.8, %v4866_v49  ;;  %v4844_v54 = vadd.f32 %v4704_v50, %v12412_v44  ;;  %v4706_v57 = vpop.f32.mrb[153].mxu1 }
 0x2a3   : > { %vm4885_vm13 = vcmp.ge.f32.partialorder %v4867_v3, 0.0  ;;  %v4903_v27 = vmul.f32 0.8, %v4867_v3  ;;  %v4845_v21 = vadd.f32 %v4706_v57, %v12414_v34  ;;  %v4708_v17 = vpop.f32.mrb[154].mxu1 }
 0x2a4   : > { %v4920_v35 = vsel %vm4884_vm12, %v4866_v49, %v4902_v8  ;;  %v4868_v41 = vadd.f32 %v12428_v31, %v4844_v54  ;;  %v4709_v37 = vpop.f32.mrb[155].mxu1  ;;  %v4998_v32 = vrot.slane %v10591_v62, %v12441_v55  ;;  %vm5077_vm12 = vmor %vm5076_vm11, %vm5075_vm10  ;;  %vm5256_vm10 = vcmask 31744  }
 0x2a5   : > { %v4921_v13 = vsel %vm4885_vm13, %v4867_v3, %v4903_v27  ;;  %v4869_v4 = vadd.f32 %v12428_v31, %v4845_v21  ;;  %v4745_v9 = vpop.f32.mrb[156].mxu0  ;;  %vm5078_vm13 = vcmask 1047558   ;;  %vm9720_vm11 = vcmask 122880  }
 0x2a6   : > { %v10592_v61 = vpack.c.bf16 %v4921_v13, %v4920_v35  ;;  %vm4886_vm14 = vcmp.ge.f32.partialorder %v4868_v41, 0.0  ;;  %v4904_v44 = vmul.f32 0.8, %v4868_v41  ;;  %v4846_v24 = vadd.f32 %v4745_v9, %v12416_v11  ;;  %v4747_v59 = vpop.f32.mrb[157].mxu0 }
 0x2a7   : > { %vm4887_vm15 = vcmp.ge.f32.partialorder %v4869_v4, 0.0  ;;  %v4905_v34 = vmul.f32 0.8, %v4869_v4  ;;  %v4847_v38 = vadd.f32 %v4747_v59, %v12418_v7  ;;  %v4749_v10 = vpop.f32.mrb[158].mxu0  ;;  %v4999_v60 = vcombine.low %v4991_v40, %v4998_v32 }
 0x2a8   : > { %v4922_v29 = vsel %vm4886_vm14, %v4868_v41, %v4904_v44  ;;  %v4870_v63 = vadd.f32 %v12428_v31, %v4846_v24  ;;  %v4750_v30 = vpop.f32.mrb[159].mxu0  ;;  %v5008_v58 = vrot.slane %v10592_v61, %v12441_v55  ;;  %vm5057_vm14 = vcmask 7168  }
 0x2a9   : > { %v4923_v18 = vsel %vm4887_vm15, %v4869_v4, %v4905_v34  ;;  %v4871_v26 = vadd.f32 %v12428_v31, %v4847_v38  ;;  %5044 = vrot.lane.b32.xlu1 %v4999_v60, %s10979_s29  ;;  %v4786_v42 = vpop.f32.mrb[156].mxu1  ;;  %vm5091_vm15 = vcmask 1041544  }
 0x2aa   : > { %v10593_v15 = vpack.c.bf16 %v4923_v18, %v4922_v29  ;;  %vm4888_vm1 = vcmp.ge.f32.partialorder %v4870_v63, 0.0  ;;  %v4906_v11 = vmul.f32 0.8, %v4870_v63  ;;  %v4848_v22 = vadd.f32 %v4786_v42, %v12420_v36  ;;  %v4788_v14 = vpop.f32.mrb[157].mxu1 }
 0x2ab   : > { %vm4889_vm2 = vcmp.ge.f32.partialorder %v4871_v26, 0.0  ;;  %v4907_v7 = vmul.f32 0.8, %v4871_v26  ;;  %v4849_v52 = vadd.f32 %v4788_v14, %v12422_v2  ;;  %v4790_v45 = vpop.f32.mrb[158].mxu1 }
 0x2ac   : > { %v4924_v39 = vsel %vm4888_vm1, %v4870_v63, %v4906_v11  ;;  %v4872_v28 = vadd.f32 %v12428_v31, %v4848_v22  ;;  %v4791_v53 = vpop.f32.mrb[159].mxu1  ;;  %v5015_v51 = vrot.slane %v10593_v15, %v12441_v55  ;;  %vm5092_vm1 = vcmask 3074  }
 0x2ad   : > { %v4925_v43 = vsel %vm4889_vm2, %v4871_v26, %v4907_v7  ;;  %v4873_v33 = vadd.f32 %v12428_v31, %v4849_v52  ;;  %v4827_v47 = vpop.f32.mrb[160].mxu0  ;;  %vm5079_vm2 = vmor %vm5078_vm13, %vm5077_vm12 }
 0x2ae   : > { %v10594_v46 = vpack.c.bf16 %v4925_v43, %v4924_v39  ;;  %vm4890_vm4 = vcmp.ge.f32.partialorder %v4872_v28, 0.0  ;;  %v4908_v36 = vmul.f32 0.8, %v4872_v28  ;;  %v4850_v48 = vadd.f32 %v4827_v47, %v12424_v5  ;;  %v4829_v23 = vpop.f32.mrb[161].mxu0 }
 0x2af   : > { %vm4891_vm5 = vcmp.ge.f32.partialorder %v4873_v33, 0.0  ;;  %v4909_v2 = vmul.f32 0.8, %v4873_v33  ;;  %v4851_v19 = vadd.f32 %v4829_v23, %v12426_v16  ;;  %v5016_v1 = vcombine.low %v5008_v58, %v5015_v51  ;;  %v4831_v20 = vpop.f32.mrb[162].mxu0 }
 0x2b0   : > { %v4926_v56 = vsel %vm4890_vm4, %v4872_v28, %v4908_v36  ;;  %v4874_v49 = vadd.f32 %v12428_v31, %v4850_v48  ;;  %v4832_v6 = vpop.f32.mrb[163].mxu0  ;;  %v5025_v54 = vrot.slane %v10594_v46, %v12441_v55  ;;  %vm5089_vm4 = vcmask 1024  }
 0x2b1   : > { %v4927_v25 = vsel %vm4891_vm5, %v4873_v33, %v4909_v2  ;;  %v4875_v3 = vadd.f32 %v12428_v31, %v4851_v19  ;;  %5046 = vrot.lane.b32.xlu0 %v5016_v1, %s10979_s29  ;;  %vm12482_vm5 = vmor %vm5092_vm1, %vm5091_vm15 }
 0x2b2   : > { %v10595_v50 = vpack.c.bf16 %v4927_v25, %v4926_v56  ;;  %vm4892_vm6 = vcmp.ge.f32.partialorder %v4874_v49, 0.0  ;;  %v4910_v62 = vmul.f32 0.8, %v4874_v49 }
 0x2b3   : > { %vm4893_vm7 = vcmp.ge.f32.partialorder %v4875_v3, 0.0  ;;  %v4911_v5 = vmul.f32 0.8, %v4875_v3 }
 0x2b4   : > { %v4928_v8 = vsel %vm4892_vm6, %v4874_v49, %v4910_v62  ;;  %v5032_v16 = vrot.slane %v10595_v50, %v12441_v55  ;;  %vm5059_vm6 = vcmask 1041408  }
 0x2b5   : > { %v4929_v57 = vsel %vm4893_vm7, %v4875_v3, %v4911_v5  ;;  %vm5085_vm7 = vmor %vm5074_vm9, %vm5059_vm6 }
 0x2b6   : > { %v10596_v27 = vpack.c.bf16 %v4929_v57, %v4928_v8  ;;  %v5033_v21 = vcombine.low %v5025_v54, %v5032_v16  ;;  %vm5087_vm9 = vmor %vm5086_vm8, %vm5085_vm7 }
 0x2b8   : > { %5048 = vrot.lane.b32.xlu1 %v5033_v21, %s10979_s29  ;;  %v5041_v17 = vrot.slane %v10596_v27, %v12441_v55 }
 0x2ba   : > { %5050 = vrot.lane.b32.xlu0 %v5041_v17, %s10979_s29  ;;  %s10981_s29 = smov [#allocation3]  }
 0x2bb   : > { %s10899_s7 = sshll.u32 %s10981_s29, 4  ;;  %s10900_s7 = int_to_ptr.vmem [resolvable:$false] %s10899_s7 }
 0x2bc   : > { %s10901_s8 = scalar_lea.vmem %s10900_s7, 2048 }
 0x313   : > { %v5043_v31 = vpop.permute.xlu1 %5042 }
 0x314   : > { %v5052_v35 = vrot.slane %v5043_v31, 6 }
 0x316   : > { %v5058_v37 = vsel %vm5057_vm14, %v5052_v35, %v5043_v31 }
 0x317   : > { %5080 = vst.msk [vmem:[#allocation2] sm:$0xff] %vm5079_vm2, %v5058_v37 }
 0x318   : > { %5090 = vst.msk [vmem:[#allocation2] sm:$0x3] %vm5089_vm4, %v10975_v0 }
 0x319   : > { %5094 = vst.msk [vmem:[#allocation2] sm:$0xf] %vm12482_vm5, %v10975_v0 }
 0x31a   : > { %5095 = vst.msk [vmem:[#allocation2 + $0x2] sm:$0xf] %vm12482_vm5, %v10975_v0  ;;  %5116 = vst [vmem:[#allocation2] sm:$0x3] %v10975_v0 }
 0x31b   : > { %5096 = vst.msk [vmem:[#allocation2 + $0x4] sm:$0xf] %vm12482_vm5, %v10975_v0  ;;  %v5045_v32 = vpop.permute.xlu1 %5044 }
 0x31c   : > { %v5053_v13 = vrot.slane %v5045_v32, 6 }
 0x31e   : > { %v5060_v4 = vsel %vm5059_vm6, %v5052_v35, %v5053_v13 }
 0x31f   : > { %v5061_v9 = vsel %vm5057_vm14, %v5060_v4, %v5045_v32 }
 0x320   : > { %5081 = vst [vmem:[#allocation2 + $0x8] sm:$0xff] %v5061_v9 }
 0x321   : > { %5097 = vst.msk [vmem:[#allocation2 + $0x6] sm:$0xf] %vm12482_vm5, %v10975_v0 }
 0x322   : > { %5098 = vst.msk [vmem:[#allocation2 + $0x8] sm:$0xf] %vm12482_vm5, %v10975_v0 }
 0x323   : > { %5099 = vst.msk [vmem:[#allocation2 + $0xa] sm:$0xf] %vm12482_vm5, %v10975_v0  ;;  %v5047_v40 = vpop.permute.xlu0 %5046 }
 0x324   : > { %5100 = vst.msk [vmem:[#allocation2 + $0xc] sm:$0xf] %vm12482_vm5, %v10975_v0  ;;  %v5054_v61 = vrot.slane %v5047_v40, 6 }
 0x326   : > { %v5062_v44 = vsel %vm5059_vm6, %v5053_v13, %v5054_v61 }
 0x327   : > { %v5063_v24 = vsel %vm5057_vm14, %v5062_v44, %v5047_v40 }
 0x328   : > { %5082 = vst [vmem:[#allocation2 + $0x10] sm:$0xff] %v5063_v24  ;;  %v5119_v59 = vld [vmem:[#allocation2] sm:$0xff] }
 0x329   : > { %5101 = vst.msk [vmem:[#allocation2 + $0xe] sm:$0xf] %vm12482_vm5, %v10975_v0  ;;  %v12518_v34 = vrot.slane %v5119_v59, %v12441_v55  ;;  %v5131_v38 = vcombine.high %v5119_v59, %v5119_v59  ;;  %v7022_v20 = vld [vmem:[#allocation2 + $0x2] sm:$0xff] }
 0x32a   : > { %5102 = vst.msk [vmem:[#allocation2 + $0x10] sm:$0xf] %vm12482_vm5, %v10975_v0  ;;  %v5049_v10 = vpop.permute.xlu1 %5048  ;;  %v12674_v56 = vrot.slane %v7022_v20, %v12441_v55  ;;  %v7032_v49 = vcombine.high %v7022_v20, %v7022_v20 }
 0x32b   : > { %5103 = vst.msk [vmem:[#allocation2 + $0x12] sm:$0xf] %vm12482_vm5, %v10975_v0  ;;  %5206 = vrot.lane.b32.xlu1 %v12518_v34, %s10976_s12  ;;  %v5055_v60 = vrot.slane %v5049_v10, 6  ;;  %v12532_v29 = vcombine.high %v12518_v34, %v12518_v34  ;;  %v12535_v63 = vrot.slane %v5131_v38, %v12441_v55 }
 0x32c   : > { %5104 = vst.msk [vmem:[#allocation2 + $0x14] sm:$0xf] %vm12482_vm5, %v10975_v0  ;;  %v5051_v30 = vpop.permute.xlu0 %5050  ;;  %v12681_v6 = vcombine.high %v12674_v56, %v12674_v56  ;;  %v12684_v25 = vrot.slane %v7032_v49, %v12441_v55 }
 0x32d   : > { %v5064_v18 = vsel %vm5059_vm6, %v5054_v61, %v5055_v60  ;;  %v5056_v26 = vrot.slane %v5051_v30, 6  ;;  %5208 = vrot.lane.b32.xlu0 %v12532_v29, %s10976_s12  ;;  %v12545_v42 = vcombine.high %v12535_v63, %v12535_v63 }
 0x32e   : > { %v5065_v15 = vsel %vm5057_vm14, %v5064_v18, %v5049_v10  ;;  %v12692_v50 = vcombine.high %v12684_v25, %v12684_v25  ;;  %v12793_v18 = vld [vmem:[%s14030_s3 + $0x2] sm:$0x3] }
 0x32f   : > { %5083 = vst [vmem:[#allocation2 + $0x18] sm:$0xff] %v5065_v15  ;;  %v5066_v11 = vsel %vm5059_vm6, %v5055_v60, %v5056_v26  ;;  %5210 = vrot.lane.b32.xlu1 %v12535_v63, %s10976_s12 }
 0x330   : > { %5105 = vst.msk [vmem:[#allocation2 + $0x16] sm:$0xf] %vm12482_vm5, %v10975_v0  ;;  %v5067_v22 = vsel %vm5057_vm14, %v5066_v11, %v5051_v30  ;;  %v5120_v14 = vld [vmem:[#allocation2 + $0x8] sm:$0xff] }
 0x331   : > { %5106 = vst.msk [vmem:[#allocation2 + $0x18] sm:$0xf] %vm12482_vm5, %v10975_v0  ;;  %5212 = vrot.lane.b32.xlu0 %v12545_v42, %s10976_s12  ;;  %v12561_v7 = vrot.slane %v5120_v14, %v12441_v55  ;;  %v5148_v52 = vcombine.high %v5120_v14, %v5120_v14  ;;  %v7023_v3 = vld [vmem:[#allocation2 + $0xa] sm:$0xff] }
 0x332   : > { %5088 = vst.msk [vmem:[#allocation2 + $0x20] sm:$0x3f] %vm5087_vm9, %v5067_v22  ;;  %v12695_v62 = vrot.slane %v7023_v3, %v12441_v55  ;;  %v7049_v5 = vcombine.high %v7023_v3, %v7023_v3 }
 0x333   : > { %5107 = vst.msk [vmem:[#allocation2 + $0x1a] sm:$0xf] %vm12482_vm5, %v10975_v0  ;;  %5214 = vrot.lane.b32.xlu1 %v12561_v7, %s10976_s12  ;;  %v12573_v45 = vcombine.high %v12561_v7, %v12561_v7  ;;  %v12576_v39 = vrot.slane %v5148_v52, %v12441_v55 }
 0x334   : > { %5108 = vst.msk [vmem:[#allocation2 + $0x1c] sm:$0xf] %vm12482_vm5, %v10975_v0  ;;  %v12703_v8 = vcombine.high %v12695_v62, %v12695_v62  ;;  %v12706_v54 = vrot.slane %v7049_v5, %v12441_v55 }
 0x335   : > { %5109 = vst.msk [vmem:[#allocation2 + $0x1e] sm:$0xf] %vm12482_vm5, %v10975_v0  ;;  %5216 = vrot.lane.b32.xlu0 %v12573_v45, %s10976_s12  ;;  %v12588_v28 = vcombine.high %v12576_v39, %v12576_v39 }
 0x336   : > { %5110 = vst.msk [vmem:[#allocation2 + $0x20] sm:$0xf] %vm12482_vm5, %v10975_v0  ;;  %v12714_v57 = vcombine.high %v12706_v54, %v12706_v54 }
 0x337   : > { %5111 = vst.msk [vmem:[#allocation2 + $0x22] sm:$0xf] %vm12482_vm5, %v10975_v0  ;;  %5218 = vrot.lane.b32.xlu1 %v12576_v39, %s10976_s12  ;;  %v5121_v53 = vld [vmem:[#allocation2 + $0x10] sm:$0xff] }
 0x338   : > { %5117 = vst [vmem:[#allocation2 + $0x22] sm:$0x3] %v10975_v0  ;;  %v12597_v51 = vrot.slane %v5121_v53, %v12441_v55  ;;  %v5165_v43 = vcombine.high %v5121_v53, %v5121_v53  ;;  %v7024_v16 = vld [vmem:[#allocation2 + $0x12] sm:$0xff] }
 0x339   : > { %5220 = vrot.lane.b32.xlu0 %v12588_v28, %s10976_s12  ;;  %v12717_v27 = vrot.slane %v7024_v16, %v12441_v55  ;;  %v7066_v21 = vcombine.high %v7024_v16, %v7024_v16 }
 0x33a   : > { %v12603_v33 = vcombine.high %v12597_v51, %v12597_v51  ;;  %v12606_v47 = vrot.slane %v5165_v43, %v12441_v55 }
 0x33b   : > { %5222 = vrot.lane.b32.xlu1 %v12597_v51, %s10976_s12  ;;  %v12725_v17 = vcombine.high %v12717_v27, %v12717_v27  ;;  %v12728_v31 = vrot.slane %v7066_v21, %v12441_v55 }
 0x33c   : > { %v5122_v58 = vld [vmem:[#allocation2 + $0x18] sm:$0xff]  ;;  %v12614_v46 = vcombine.high %v12606_v47, %v12606_v47 }
 0x33d   : > { %5224 = vrot.lane.b32.xlu0 %v12603_v33, %s10976_s12  ;;  %v12617_v36 = vrot.slane %v5122_v58, %v12441_v55  ;;  %v5182_v48 = vcombine.high %v5122_v58, %v5122_v58  ;;  %v10598_v1 = vld.sshfl [vmem:[#allocation2 + $0x20] sm:$0x3 pattern:$0x76325410]  ;;  %v12736_v41 = vcombine.high %v12728_v31, %v12728_v31 }
 0x33e   : > { %v7025_v35 = vld [vmem:[#allocation2 + $0x1a] sm:$0xff] }
 0x33f   : > { %5226 = vrot.lane.b32.xlu1 %v12606_v47, %s10976_s12  ;;  %v12625_v23 = vcombine.high %v12617_v36, %v12617_v36  ;;  %v12628_v2 = vrot.slane %v5182_v48, %v12441_v55  ;;  %v12739_v37 = vrot.slane %v7025_v35, %v12441_v55  ;;  %v7083_v32 = vcombine.high %v7025_v35, %v7025_v35  ;;  %v10667_v9 = vld.sshfl [vmem:[#allocation2 + $0x22] sm:$0x3 pattern:$0x76325410] }
 0x341   : > { %5228 = vrot.lane.b32.xlu0 %v12614_v46, %s10976_s12  ;;  %v12636_v19 = vcombine.high %v12628_v2, %v12628_v2  ;;  %v12747_v13 = vcombine.high %v12739_v37, %v12739_v37  ;;  %v12752_v4 = vrot.slane %v7083_v32, %v12441_v55 }
 0x343   : > { %5230 = vrot.lane.b32.xlu1 %v12617_v36, %s10976_s12  ;;  %v12762_v40 = vcombine.high %v12752_v4, %v12752_v4 }
 0x345   : > { %5232 = vrot.lane.b32.xlu0 %v12625_v23, %s10976_s12 }
 0x347   : > { %5234 = vrot.lane.b32.xlu1 %v12628_v2, %s10976_s12 }
 0x349   : > { %5236 = vrot.lane.b32.xlu0 %v12636_v19, %s10976_s12 }
 0x34b   : > { %5238 = vrot.lane.b32.xlu1 %v10598_v1, %s10976_s12 }
 0x34d   : > { %6102 = vrot.lane.b32.xlu0 %v12518_v34, %s10977_s13 }
 0x34f   : > { %6104 = vrot.lane.b32.xlu1 %v12532_v29, %s10977_s13 }
 0x351   : > { %6106 = vrot.lane.b32.xlu0 %v12535_v63, %s10977_s13 }
 0x353   : > { %6108 = vrot.lane.b32.xlu1 %v12545_v42, %s10977_s13 }
 0x355   : > { %6110 = vrot.lane.b32.xlu0 %v12561_v7, %s10977_s13 }
 0x357   : > { %6112 = vrot.lane.b32.xlu1 %v12573_v45, %s10977_s13 }
 0x359   : > { %6114 = vrot.lane.b32.xlu0 %v12576_v39, %s10977_s13 }
 0x35b   : > { %6116 = vrot.lane.b32.xlu1 %v12588_v28, %s10977_s13 }
 0x35d   : > { %6118 = vrot.lane.b32.xlu0 %v12597_v51, %s10977_s13 }
 0x35f   : > { %6120 = vrot.lane.b32.xlu1 %v12603_v33, %s10977_s13 }
 0x361   : > { %6122 = vrot.lane.b32.xlu0 %v12606_v47, %s10977_s13 }
 0x363   : > { %6124 = vrot.lane.b32.xlu1 %v12614_v46, %s10977_s13 }
 0x365   : > { %6126 = vrot.lane.b32.xlu0 %v12617_v36, %s10977_s13 }
 0x367   : > { %6128 = vrot.lane.b32.xlu1 %v12625_v23, %s10977_s13 }
 0x369   : > { %6130 = vrot.lane.b32.xlu0 %v12628_v2, %s10977_s13 }
 0x36b   : > { %6132 = vrot.lane.b32.xlu1 %v12636_v19, %s10977_s13 }
 0x36d   : > { %6134 = vrot.lane.b32.xlu0 %v10598_v1, %s10977_s13  ;;  %v8559_v1 = vld [vmem:[#allocation2 + $0x4] sm:$0xff] }
 0x36e   : > { %v12825_v16 = vrot.slane %v8559_v1, %v12441_v55  ;;  %v8569_v21 = vcombine.high %v8559_v1, %v8559_v1 }
 0x36f   : > { %7107 = vrot.lane.b32.xlu1 %v12674_v56, %s10976_s12 }
 0x371   : > { %7109 = vrot.lane.b32.xlu0 %v12681_v6, %s10976_s12 }
 0x373   : > { %7111 = vrot.lane.b32.xlu1 %v12684_v25, %s10976_s12 }
 0x375   : > { %7113 = vrot.lane.b32.xlu0 %v12692_v50, %s10976_s12 }
 0x377   : > { %7115 = vrot.lane.b32.xlu1 %v12695_v62, %s10976_s12 }
 0x379   : > { %7117 = vrot.lane.b32.xlu0 %v12703_v8, %s10976_s12 }
 0x37b   : > { %7119 = vrot.lane.b32.xlu1 %v12706_v54, %s10976_s12 }
 0x37d   : > { %7121 = vrot.lane.b32.xlu0 %v12714_v57, %s10976_s12 }
 0x37f   : > { %7123 = vrot.lane.b32.xlu1 %v12717_v27, %s10976_s12 }
 0x381   : > { %7125 = vrot.lane.b32.xlu0 %v12725_v17, %s10976_s12 }
 0x383   : > { %7127 = vrot.lane.b32.xlu1 %v12728_v31, %s10976_s12 }
 0x385   : > { %7129 = vrot.lane.b32.xlu0 %v12736_v41, %s10976_s12 }
 0x387   : > { %7131 = vrot.lane.b32.xlu1 %v12739_v37, %s10976_s12 }
 0x389   : > { %7133 = vrot.lane.b32.xlu0 %v12747_v13, %s10976_s12 }
 0x38b   : > { %7135 = vrot.lane.b32.xlu1 %v12752_v4, %s10976_s12 }
 0x38d   : > { %7639 = vrot.lane.b32.xlu0 %v12674_v56, %s10977_s13 }
 0x38f   : > { %7139 = vrot.lane.b32.xlu1 %v10667_v9, %s10976_s12 }
 0x391   : > { %7137 = vrot.lane.b32.xlu0 %v12762_v40, %s10976_s12 }
 0x393   : > { %7641 = vrot.lane.b32.xlu1 %v12681_v6, %s10977_s13 }
 0x395   : > { %7643 = vrot.lane.b32.xlu0 %v12684_v25, %s10977_s13 }
 0x397   : > { %7645 = vrot.lane.b32.xlu1 %v12692_v50, %s10977_s13 }
 0x399   : > { %7647 = vrot.lane.b32.xlu0 %v12695_v62, %s10977_s13 }
 0x39b   : > { %7649 = vrot.lane.b32.xlu1 %v12703_v8, %s10977_s13 }
 0x39d   : > { %v5207_v61 = vpop.permute.xlu1 %5206  ;;  %7651 = vrot.lane.b32.xlu0 %v12706_v54, %s10977_s13 }
 0x39f   : > { %v5209_v44 = vpop.permute.xlu0 %5208  ;;  %7653 = vrot.lane.b32.xlu1 %v12714_v57, %s10977_s13 }
 0x3a0   : > { %v5240_v24 = vsel %vm352_vm0, %v5207_v61, %v5209_v44  ;;  %v12834_v61 = vcombine.high %v12825_v16, %v12825_v16 }
 0x3a1   : > { %v5211_v59 = vpop.permute.xlu1 %5210  ;;  %7655 = vrot.lane.b32.xlu0 %v12717_v27, %s10977_s13  ;;  %v5261_v60 = vsel %vm5059_vm6, %v5240_v24, 0 }
 0x3a2   : > { %v5241_v38 = vsel %vm352_vm0, %v5209_v44, %v5211_v59 }
 0x3a3   : > { %v5213_v10 = vpop.permute.xlu0 %5212  ;;  %10599 = vmatprep.subr.msk.bf16.mxu1 %vm5059_vm6, %v5241_v38  ;;  %7657 = vrot.lane.b32.xlu1 %v12725_v17, %s10977_s13  ;;  %v12842_v38 = vrot.slane %v8569_v21, %v12441_v55 }
 0x3a4   : > { %v5242_v30 = vsel %vm352_vm0, %v5211_v59, %v5213_v10  ;;  %5309 = vmatpush1.bf16.msra.mxu1 %v5261_v60  ;;  %v8560_v60 = vld [vmem:[#allocation2 + $0xc] sm:$0xff] }
 0x3a5   : > { %v5215_v26 = vpop.permute.xlu1 %5214  ;;  %7659 = vrot.lane.b32.xlu0 %v12728_v31, %s10977_s13  ;;  %v5267_v22 = vsel %vm5059_vm6, %v5242_v30, 0  ;;  %v12852_v30 = vcombine.high %v12842_v38, %v12842_v38 }
 0x3a6   : > { %v5243_v15 = vsel %vm352_vm0, %v5213_v10, %v5215_v26 }
 0x3a7   : > { %v5217_v11 = vpop.permute.xlu0 %5216  ;;  %10600 = vmatmul.mubr.msk.bf16.vlgmr.msra.gmra.mrb[160].mxu1 %vm5256_vm10, %v12793_v18  ;;  %10601 = vmatprep.subr.msk.bf16.mxu0 %vm5059_vm6, %v5243_v15 }
 0x3a8   : > { %v5244_v14 = vsel %vm352_vm0, %v5215_v26, %v5217_v11  ;;  %5350 = vmatpush1.bf16.msra.mxu0 %v5267_v22  ;;  %5422 = vmatprep.mubr.bf16.mxu1 %v10975_v0 }
 0x3a9   : > { %v5219_v52 = vpop.permute.xlu1 %5218  ;;  %7663 = vrot.lane.b32.xlu0 %v12739_v37, %s10977_s13  ;;  %7661 = vrot.lane.b32.xlu1 %v12736_v41, %s10977_s13  ;;  %v5273_v43 = vsel %vm5059_vm6, %v5244_v14, 0  ;;  %v12862_v14 = vrot.slane %v8560_v60, %v12441_v55 }
 0x3aa   : > { %v5245_v53 = vsel %vm352_vm0, %v5217_v11, %v5219_v52 }
 0x3ab   : > { %v5221_v58 = vpop.permute.xlu0 %5220  ;;  %10602 = vmatmul.mubr.msk.bf16.vlgmr.msra.gmra.mrb[164].mxu0 %vm5256_vm10, %v12793_v18  ;;  %10603 = vmatprep.subr.msk.bf16.mxu1 %vm5059_vm6, %v5245_v53  ;;  %v8586_v53 = vcombine.high %v8560_v60, %v8560_v60 }
 0x3ac   : > { %v5246_v48 = vsel %vm352_vm0, %v5219_v52, %v5221_v58  ;;  %5391 = vmatpush1.bf16.msra.mxu1 %v5273_v43  ;;  %5463 = vmatprep.mubr.bf16.mxu0 %v10975_v0 }
 0x3ad   : > { %v5223_v20 = vpop.permute.xlu1 %5222  ;;  %7667 = vrot.lane.b32.xlu0 %v12752_v4, %s10977_s13  ;;  %7665 = vrot.lane.b32.xlu1 %v12747_v13, %s10977_s13  ;;  %v5279_v3 = vsel %vm5059_vm6, %v5246_v48, 0 }
 0x3ae   : > { %v5247_v49 = vsel %vm352_vm0, %v5221_v58, %v5223_v20  ;;  %v12871_v58 = vcombine.high %v12862_v14, %v12862_v14 }
 0x3af   : > { %v5225_v5 = vpop.permute.xlu0 %5224  ;;  %10604 = vmatmul.mubr.msk.bf16.vlgmr.msra.gmra.mrb[164].mxu1 %vm5256_vm10, %v12793_v18  ;;  %10605 = vmatprep.subr.msk.bf16.mxu0 %vm5059_vm6, %v5247_v49 }
 0x3b0   : > { %v5248_v35 = vsel %vm352_vm0, %v5223_v20, %v5225_v5  ;;  %5432 = vmatpush1.bf16.msra.mxu0 %v5279_v3  ;;  %5504 = vmatprep.mubr.bf16.mxu1 %v10975_v0  ;;  %v5640_v3 = vsel %vm5059_vm6, %v12518_v34, 0 }
 0x3b1   : > { %v5227_v32 = vpop.permute.xlu1 %5226  ;;  %7671 = vrot.lane.b32.xlu0 %v10667_v9, %s10977_s13  ;;  %7669 = vrot.lane.b32.xlu1 %v12762_v40, %s10977_s13  ;;  %v5285_v24 = vsel %vm5059_vm6, %v5248_v35, 0  ;;  %v8561_v35 = vld [vmem:[#allocation2 + $0x14] sm:$0xff] }
 0x3b2   : > { %v5249_v44 = vsel %vm352_vm0, %v5225_v5, %v5227_v32  ;;  %v12886_v5 = vrot.slane %v8586_v53, %v12441_v55 }
 0x3b3   : > { %v5229_v59 = vpop.permute.xlu0 %5228  ;;  %10606 = vmatmul.mubr.msk.bf16.vlgmr.msra.gmra.mrb[168].mxu0 %vm5256_vm10, %v12793_v18  ;;  %10607 = vmatprep.subr.msk.bf16.mxu1 %vm5059_vm6, %v5249_v44  ;;  %v5646_v44 = vsel %vm5059_vm6, %v12535_v63, 0 }
 0x3b4   : > { %v5250_v9 = vsel %vm352_vm0, %v5227_v32, %v5229_v59  ;;  %5473 = vmatpush1.bf16.msra.mxu1 %v5285_v24  ;;  %5545 = vmatprep.mubr.bf16.mxu0 %v10975_v0 }
 0x3b5   : > { %v5231_v10 = vpop.permute.xlu1 %5230  ;;  %8644 = vrot.lane.b32.xlu1 %v12825_v16, %s10976_s12  ;;  %8646 = vrot.lane.b32.xlu0 %v12834_v61, %s10976_s12  ;;  %v5291_v15 = vsel %vm5059_vm6, %v5250_v9, 0  ;;  %v8603_v9 = vcombine.high %v8561_v35, %v8561_v35 }
 0x3b6   : > { %v5251_v26 = vsel %vm352_vm0, %v5229_v59, %v5231_v10  ;;  %v12909_v59 = vrot.slane %v8561_v35, %v12441_v55 }
 0x3b7   : > { %v5233_v11 = vpop.permute.xlu0 %5232  ;;  %10608 = vmatmul.mubr.msk.bf16.vlgmr.msra.gmra.mrb[168].mxu1 %vm5256_vm10, %v12793_v18  ;;  %10609 = vmatprep.subr.msk.bf16.mxu0 %vm5059_vm6, %v5251_v26 }
 0x3b8   : > { %v5252_v22 = vsel %vm352_vm0, %v5231_v10, %v5233_v11  ;;  %5514 = vmatpush1.bf16.msra.mxu0 %v5291_v15  ;;  %5586 = vmatprep.mubr.bf16.mxu1 %v10975_v0  ;;  %v12923_v63 = vcombine.high %v12909_v59, %v12909_v59  ;;  %v5658_v15 = vsel %vm5059_vm6, %v12576_v39, 0 }
 0x3b9   : > { %v5235_v52 = vpop.permute.xlu1 %5234  ;;  %8648 = vrot.lane.b32.xlu1 %v12842_v38, %s10976_s12  ;;  %8650 = vrot.lane.b32.xlu0 %v12852_v30, %s10976_s12  ;;  %v5297_v48 = vsel %vm5059_vm6, %v5252_v22, 0 }
 0x3ba   : > { %v5253_v43 = vsel %vm352_vm0, %v5233_v11, %v5235_v52 }
 0x3bb   : > { %v5237_v1 = vpop.permute.xlu0 %5236  ;;  %10610 = vmatmul.mubr.msk.bf16.vlgmr.msra.gmra.mrb[172].mxu0 %vm5256_vm10, %v12793_v18  ;;  %10611 = vmatprep.subr.msk.bf16.mxu1 %vm5059_vm6, %v5253_v43  ;;  %v12979_v43 = vld.sshfl [vmem:[#allocation2 + $0x24] sm:$0x3 pattern:$0x76325410] }
 0x3bc   : > { %v5254_v20 = vsel %vm352_vm0, %v5235_v52, %v5237_v1  ;;  %5555 = vmatpush1.bf16.msra.mxu1 %v5297_v48  ;;  %5627 = vmatprep.mubr.bf16.mxu0 %v10975_v0 }
 0x3bd   : > { %v5239_v49 = vpop.permute.xlu1 %5238  ;;  %10615 = vmatprep.subr.msk.bf16.mxu1 %vm5059_vm6, %v12532_v29  ;;  %8652 = vrot.lane.b32.xlu1 %v12862_v14, %s10976_s12  ;;  %v5303_v32 = vsel %vm5059_vm6, %v5254_v20, 0  ;;  %v12899_v29 = vcombine.high %v12886_v5, %v12886_v5 }
 0x3be   : > { %v5255_v21 = vsel %vm352_vm0, %v5237_v1, %v5239_v49  ;;  %8654 = vrot.lane.b32.xlu0 %v12871_v58, %s10976_s12 }
 0x3bf   : > { %10612 = vmatmul.mubr.msk.bf16.vlgmr.msra.gmra.mrb[172].mxu1 %vm5256_vm10, %v12793_v18  ;;  %10613 = vmatprep.subr.msk.bf16.mxu0 %vm5059_vm6, %v5255_v21  ;;  %v12895_v34 = vpop.permute.xlu0 %6102 }
 0x3c0   : > { %5596 = vmatpush1.bf16.msra.mxu0 %v5303_v32  ;;  %5688 = vmatpush1.bf16.msra.mxu1 %v5640_v3 }
 0x3c1   : > { %5719 = vmatprep.mubr.bf16.mxu1 %v10975_v0  ;;  %10617 = vmatprep.subr.msk.bf16.mxu0 %vm5059_vm6, %v12545_v42  ;;  %v12906_v24 = vpop.permute.xlu1 %6104  ;;  %v12928_v42 = vld [vmem:[%s14030_s3] sm:$0x3] }
 0x3c2   : > { %10619 = vmatprep.subr.msk.bf16.mxu1 %vm5059_vm6, %v12573_v45  ;;  %8656 = vrot.lane.b32.xlu1 %v12886_v5, %s10976_s12  ;;  %v5652_v45 = vsel %vm5059_vm6, %v12561_v7, 0  ;;  %v8562_v7 = vld [vmem:[#allocation2 + $0x1c] sm:$0xff]  ;;  %v6136_v49 = vsel %vm1265_vm3, %v12895_v34, %v12906_v24 }
 0x3c3   : > { %10614 = vmatmul.mubr.msk.bf16.vlgmr.msra.gmra.mrb[176].mxu0 %vm5256_vm10, %v12793_v18  ;;  %v12917_v10 = vpop.permute.xlu0 %6106  ;;  %8658 = vrot.lane.b32.xlu0 %v12899_v29, %s10976_s12  ;;  %v12936_v18 = vrot.slane %v8603_v9, %v12441_v55  ;;  %v12960_v11 = vrot.slane %v8562_v7, %v12441_v55  ;;  %v8620_v52 = vcombine.high %v8562_v7, %v8562_v7 }
 0x3c4   : > { %5729 = vmatpush1.bf16.msra.mxu0 %v5646_v44  ;;  %5760 = vmatprep.mubr.bf16.mxu0 %v10975_v0 }
 0x3c5   : > { %10621 = vmatprep.subr.msk.bf16.mxu0 %vm5059_vm6, %v12588_v28  ;;  %v12938_v60 = vpop.permute.xlu1 %6108  ;;  %v12950_v28 = vcombine.high %v12936_v18, %v12936_v18  ;;  %v12993_v48 = vrot.slane %v8620_v52, %v12441_v55  ;;  %v5676_v55 = vsel %vm5059_vm6, %v12617_v36, 0 }
 0x3c6   : > { %8660 = vrot.lane.b32.xlu1 %v12909_v59, %s10976_s12  ;;  %v6138_v35 = vsel %vm1265_vm3, %v12917_v10, %v12938_v60 }
 0x3c7   : > { %10616 = vmatmul.mubr.msk.bf16.vlgmr.msra.gmra.mrb[176].mxu1 %vm5256_vm10, %v12928_v42  ;;  %v12944_v26 = vpop.permute.xlu0 %6110  ;;  %8662 = vrot.lane.b32.xlu0 %v12923_v63, %s10976_s12  ;;  %v13003_v20 = vcombine.high %v12993_v48, %v12993_v48  ;;  %v6162_v44 = vsel %vm5059_vm6, %v6138_v35, 0 }
 0x3c8   : > { %5770 = vmatpush1.bf16.msra.mxu1 %v5652_v45  ;;  %5801 = vmatprep.mubr.bf16.mxu1 %v10975_v0  ;;  %v6139_v3 = vsel %vm1265_vm3, %v12938_v60, %v12944_v26  ;;  %v13067_v45 = vld [vmem:[%s14030_s3 + $0x4] sm:$0x3] }
 0x3c9   : > { %10623 = vmatprep.subr.msk.bf16.mxu1 %vm5059_vm6, %v12603_v33  ;;  %v6113_v39 = vpop.permute.xlu1 %6112  ;;  %v5664_v33 = vsel %vm5059_vm6, %v12597_v51, 0  ;;  %v12985_v51 = vcombine.high %v12960_v11, %v12960_v11 }
 0x3ca   : > { %8664 = vrot.lane.b32.xlu1 %v12936_v18, %s10976_s12  ;;  %v6140_v9 = vsel %vm1265_vm3, %v12944_v26, %v6113_v39 }
 0x3cb   : > { %10618 = vmatmul.mubr.msk.bf16.vlgmr.msra.gmra.mrb[180].mxu0 %vm5256_vm10, %v12928_v42  ;;  %v12964_v22 = vpop.permute.xlu0 %6114  ;;  %8666 = vrot.lane.b32.xlu0 %v12950_v28, %s10976_s12  ;;  %v6168_v26 = vsel %vm5059_vm6, %v6140_v9, 0  ;;  %v6641_v9 = vsel %vm5059_vm6, %v12695_v62, 0 }
 0x3cc   : > { %5811 = vmatpush1.bf16.msra.mxu0 %v5658_v15  ;;  %5842 = vmatprep.mubr.bf16.mxu0 %v10975_v0  ;;  %v6141_v32 = vsel %vm1265_vm3, %v6113_v39, %v12964_v22 }
 0x3cd   : > { %10625 = vmatprep.subr.msk.bf16.mxu0 %vm5059_vm6, %v12614_v46  ;;  %v5670_v46 = vsel %vm5059_vm6, %v12606_v47, 0  ;;  %v6117_v1 = vpop.permute.xlu1 %6116 }
 0x3ce   : > { %8668 = vrot.lane.b32.xlu1 %v12960_v11, %s10976_s12  ;;  %v6142_v7 = vsel %vm1265_vm3, %v12964_v22, %v6117_v1 }
 0x3cf   : > { %10620 = vmatmul.mubr.msk.bf16.vlgmr.msra.gmra.mrb[180].mxu1 %vm5256_vm10, %v12928_v42  ;;  %v12977_v53 = vpop.permute.xlu0 %6118  ;;  %9176 = vrot.lane.b32.xlu0 %v12825_v16, %s10977_s13  ;;  %v6174_v39 = vsel %vm5059_vm6, %v6142_v7, 0 }
 0x3d0   : > { %5852 = vmatpush1.bf16.msra.mxu1 %v5664_v33  ;;  %5883 = vmatprep.mubr.bf16.mxu1 %v10975_v0 }
 0x3d1   : > { %10627 = vmatprep.subr.msk.bf16.mxu1 %vm5059_vm6, %v12625_v23  ;;  %v6137_v23 = vsel %vm1265_vm3, %v12906_v24, %v12917_v10  ;;  %v6121_v36 = vpop.permute.xlu1 %6120  ;;  %v6143_v10 = vsel %vm1265_vm3, %v6117_v1, %v12977_v53 }
 0x3d2   : > { %8676 = vrot.lane.b32.xlu1 %v12979_v43, %s10976_s12  ;;  %v6144_v22 = vsel %vm1265_vm3, %v12977_v53, %v6121_v36 }
 0x3d3   : > { %10622 = vmatmul.mubr.msk.bf16.vlgmr.msra.gmra.mrb[184].mxu0 %vm5256_vm10, %v12928_v42  ;;  %8670 = vrot.lane.b32.xlu0 %v12985_v51, %s10976_s12  ;;  %v13010_v47 = vpop.permute.xlu0 %6122  ;;  %v6180_v1 = vsel %vm5059_vm6, %v6144_v22, 0 }
 0x3d4   : > { %5893 = vmatpush1.bf16.msra.mxu0 %v5670_v46  ;;  %5924 = vmatprep.mubr.bf16.mxu0 %v10975_v0 }
 0x3d5   : > { %10629 = vmatprep.subr.msk.bf16.mxu0 %vm5059_vm6, %v12636_v19  ;;  %v5682_v19 = vsel %vm5059_vm6, %v12628_v2, 0  ;;  %v6156_v2 = vsel %vm5059_vm6, %v6136_v49, 0  ;;  %v6125_v34 = vpop.permute.xlu1 %6124 }
 0x3d6   : > { %8672 = vrot.lane.b32.xlu1 %v12993_v48, %s10976_s12  ;;  %v6146_v53 = vsel %vm1265_vm3, %v13010_v47, %v6125_v34 }
 0x3d7   : > { %10624 = vmatmul.mubr.msk.bf16.vlgmr.msra.gmra.mrb[184].mxu1 %vm5256_vm10, %v12928_v42  ;;  %8674 = vrot.lane.b32.xlu0 %v13003_v20, %s10976_s12  ;;  %v6127_v21 = vpop.permute.xlu0 %6126 }
 0x3d8   : > { %5934 = vmatpush1.bf16.msra.mxu1 %v5676_v55  ;;  %5965 = vmatprep.mubr.bf16.mxu1 %v10975_v0  ;;  %v6147_v33 = vsel %vm1265_vm3, %v6125_v34, %v6127_v21 }
 0x3d9   : > { %10633 = vmatprep.subr.msk.bf16.mxu1 %vm5059_vm6, %v6137_v23  ;;  %v6129_v60 = vpop.permute.xlu1 %6128 }
 0x3da   : > { %9178 = vrot.lane.b32.xlu1 %v12834_v61, %s10977_s13 }
 0x3db   : > { %10626 = vmatmul.mubr.msk.bf16.vlgmr.msra.gmra.mrb[188].mxu0 %vm5256_vm10, %v12928_v42  ;;  %9180 = vrot.lane.b32.xlu0 %v12842_v38, %s10977_s13  ;;  %v6131_v24 = vpop.permute.xlu0 %6130 }
 0x3dc   : > { %5975 = vmatpush1.bf16.msra.mxu0 %v5682_v19  ;;  %6006 = vmatprep.mubr.bf16.mxu0 %v10975_v0  ;;  %v6149_v55 = vsel %vm1265_vm3, %v6129_v60, %v6131_v24  ;;  %v6148_v19 = vsel %vm1265_vm3, %v6127_v21, %v6129_v60 }
 0x3dd   : > { %10635 = vmatprep.subr.msk.bf16.mxu0 %vm5059_vm6, %v6139_v3  ;;  %v6133_v52 = vpop.permute.xlu1 %6132 }
 0x3de   : > { %9182 = vrot.lane.b32.xlu1 %v12852_v30, %s10977_s13  ;;  %v6150_v21 = vsel %vm1265_vm3, %v6131_v24, %v6133_v52  ;;  %v6635_v24 = vsel %vm5059_vm6, %v12684_v25, 0 }
 0x3df   : > { %10628 = vmatmul.mubr.msk.bf16.vlgmr.msra.gmra.mrb[188].mxu1 %vm5256_vm10, %v12928_v42  ;;  %9184 = vrot.lane.b32.xlu0 %v12862_v14, %s10977_s13  ;;  %v6135_v15 = vpop.permute.xlu0 %6134 }
 0x3e0   : > { %6204 = vmatpush1.bf16.msra.mxu1 %v6156_v2  ;;  %6235 = vmatprep.mubr.bf16.mxu1 %v10975_v0  ;;  %v6151_v49 = vsel %vm1265_vm3, %v6133_v52, %v6135_v15  ;;  %v6192_v2 = vsel %vm5059_vm6, %v6148_v19, 0 }
 0x3e1   : > { %10637 = vmatprep.subr.msk.bf16.mxu1 %vm5059_vm6, %v6141_v32  ;;  %v13102_v23 = vpop.permute.xlu1 %7107  ;;  %v6198_v32 = vsel %vm5059_vm6, %v6150_v21, 0 }
 0x3e2   : > { %9186 = vrot.lane.b32.xlu1 %v12871_v58, %s10977_s13 }
 0x3e3   : > { %10630 = vmatmul.mubr.msk.bf16.vlgmr.msra.gmra.mrb[192].mxu0 %vm5256_vm10, %v12928_v42  ;;  %9188 = vrot.lane.b32.xlu0 %v12886_v5, %s10977_s13  ;;  %v6145_v42 = vsel %vm1265_vm3, %v6121_v36, %v13010_v47  ;;  %v13092_v46 = vpop.permute.xlu0 %7109  ;;  %v6186_v36 = vsel %vm5059_vm6, %v6146_v53, 0 }
 0x3e4   : > { %6245 = vmatpush1.bf16.msra.mxu0 %v6162_v44  ;;  %6276 = vmatprep.mubr.bf16.mxu0 %v10975_v0  ;;  %v6629_v44 = vsel %vm5059_vm6, %v12674_v56, 0 }
 0x3e5   : > { %10639 = vmatprep.subr.msk.bf16.mxu0 %vm5059_vm6, %v6143_v10  ;;  %v13124_v3 = vpop.permute.xlu1 %7111 }
 0x3e6   : > { %9190 = vrot.lane.b32.xlu1 %v12899_v29, %s10977_s13 }
 0x3e7   : > { %10634 = vmatmul.mubr.msk.bf16.vlgmr.msra.gmra.mrb[192].mxu1 %vm5256_vm10, %v13067_v45  ;;  %9192 = vrot.lane.b32.xlu0 %v12909_v59, %s10977_s13  ;;  %v13113_v47 = vpop.permute.xlu0 %7113 }
 0x3e8   : > { %6286 = vmatpush1.bf16.msra.mxu1 %v6168_v26  ;;  %6317 = vmatprep.mubr.bf16.mxu1 %v10975_v0 }
 0x3e9   : > { %10641 = vmatprep.subr.msk.bf16.mxu1 %vm5059_vm6, %v6145_v42  ;;  %v13141_v34 = vpop.permute.xlu1 %7115 }
 0x3ea   : > { %9194 = vrot.lane.b32.xlu1 %v12923_v63, %s10977_s13  ;;  %v7144_v60 = vsel %vm352_vm0, %v13113_v47, %v13141_v34 }
 0x3eb   : > { %10636 = vmatmul.mubr.msk.bf16.vlgmr.msra.gmra.mrb[196].mxu0 %vm5256_vm10, %v13067_v45  ;;  %9196 = vrot.lane.b32.xlu0 %v12936_v18, %s10977_s13  ;;  %v13133_v35 = vpop.permute.xlu0 %7117 }
 0x3ec   : > { %6327 = vmatpush1.bf16.msra.mxu0 %v6174_v39  ;;  %6358 = vmatprep.mubr.bf16.mxu0 %v10975_v0 }
 0x3ed   : > { %10643 = vmatprep.subr.msk.bf16.mxu0 %vm5059_vm6, %v6147_v33  ;;  %v7145_v33 = vsel %vm352_vm0, %v13141_v34, %v13133_v35 }
 0x3ee   : > { %9198 = vrot.lane.b32.xlu1 %v12950_v28, %s10977_s13  ;;  %v7173_v53 = vsel %vm5059_vm6, %v7145_v33, 0 }
 0x3ef   : > { %10638 = vmatmul.mubr.msk.bf16.vlgmr.msra.gmra.mrb[196].mxu1 %vm5256_vm10, %v13067_v45  ;;  %9200 = vrot.lane.b32.xlu0 %v12960_v11, %s10977_s13 }
 0x3f0   : > { %6368 = vmatpush1.bf16.msra.mxu1 %v6180_v1  ;;  %6399 = vmatprep.mubr.bf16.mxu1 %v10975_v0 }
 0x3f1   : > { %10645 = vmatprep.subr.msk.bf16.mxu1 %vm5059_vm6, %v6149_v55 }
 0x3f2   : > { %9202 = vrot.lane.b32.xlu1 %v12985_v51, %s10977_s13 }
 0x3f3   : > { %10640 = vmatmul.mubr.msk.bf16.vlgmr.msra.gmra.mrb[200].mxu0 %vm5256_vm10, %v13067_v45  ;;  %9204 = vrot.lane.b32.xlu0 %v12993_v48, %s10977_s13 }
 0x3f4   : > { %6409 = vmatpush1.bf16.msra.mxu0 %v6186_v36  ;;  %6440 = vmatprep.mubr.bf16.mxu0 %v10975_v0 }
 0x3f5   : > { %10647 = vmatprep.subr.msk.bf16.mxu0 %vm5059_vm6, %v6151_v49 }
 0x3f6   : > { %9206 = vrot.lane.b32.xlu1 %v13003_v20, %s10977_s13 }
 0x3f7   : > { %10642 = vmatmul.mubr.msk.bf16.vlgmr.msra.gmra.mrb[200].mxu1 %vm5256_vm10, %v13067_v45  ;;  %9208 = vrot.lane.b32.xlu0 %v12979_v43, %s10977_s13  ;;  %v13150_v43 = vpop.permute.xlu0 %7121  ;;  %s10323_s13 = sshll.u32 %s239_s14, 6 }
 0x3f8   : > { %6450 = vmatpush1.bf16.msra.mxu1 %v6192_v2  ;;  %6481 = vmatprep.mubr.bf16.mxu1 %v10975_v0  ;;  %s13770_s15 = scalar_lea.vmem [#allocation3], %s10323_s13 }
 0x3f9   : > { %10650 = vmatprep.subr.msk.bf16.mxu1 %vm5059_vm6, %v12681_v6  ;;  %v13155_v6 = vpop.permute.xlu1 %7119  ;;  %s10236_s16 = sshll.u32 %s13770_s15, 4  ;;  %s13971_s16 = int_to_ptr.vmem [resolvable:$true] %s10236_s16 }
 0x3fa   : > { %v7146_v42 = vsel %vm352_vm0, %v13133_v35, %v13155_v6  ;;  %v7147_v55 = vsel %vm352_vm0, %v13155_v6, %v13150_v43  ;;  %s10895_s27 = scalar_lea.vmem %s13971_s16, 1024  ;;  %p10902_p1 = scmp.lt.s32.totalorder %s13971_s16, %s10900_s7 }
 0x3fb   : > { %10644 = vmatmul.mubr.msk.bf16.vlgmr.msra.gmra.mrb[204].mxu0 %vm5256_vm10, %v13067_v45  ;;  %v13163_v56 = vpop.permute.xlu0 %7125  ;;  %v7179_v19 = vsel %vm5059_vm6, %v7147_v55, 0  ;;  %p10896_p12 = scmp.ne.s32.totalorder %s13971_s16, %s10895_s27  ;;  %p10903_p2 = scmp.lt.s32.totalorder %s10901_s8, %s10895_s27 }
 0x3fc   : > { %6491 = vmatpush1.bf16.msra.mxu0 %v6198_v32  ;;  %6522 = vmatprep.mubr.bf16.mxu0 %v10975_v0 }
 0x3fd   : > { %10652 = vmatprep.subr.msk.bf16.mxu0 %vm5059_vm6, %v12692_v50  ;;  %v10649_v50 = vld [vmem:[%s14030_s3 + $0x6] sm:$0x3]  ;;  %v13173_v25 = vpop.permute.xlu1 %7123  ;;  %p10897_p13 = pnand %p10896_p12, %p11054_p4  ;;  %p10904_p3 = por %p10903_p2, %p10902_p1 }
 0x3fe   : > { %v7148_v52 = vsel %vm352_vm0, %v13150_v43, %v13173_v25  ;;  %v7149_v49 = vsel %vm352_vm0, %v13173_v25, %v13163_v56 }
 0x3ff   : > { %10646 = vmatmul.mubr.msk.bf16.vlgmr.msra.gmra.mrb[204].mxu1 %vm5256_vm10, %v13067_v45  ;;  %v13181_v10 = vpop.permute.xlu0 %7129  ;;  %v7185_v2 = vsel %vm5059_vm6, %v7149_v49, 0  ;;  %p10898_p0 = pneg %p10897_p13 }
 0x400   : > { %6677 = vmatpush1.bf16.msra.mxu1 %v6629_v44  ;;  %6708 = vmatprep.mubr.bf16.mxu1 %v10975_v0 }
 0x401   : > { %10654 = vmatprep.subr.msk.bf16.mxu1 %vm5059_vm6, %v12703_v8  ;;  %v6647_v8 = vsel %vm5059_vm6, %v12706_v54, 0  ;;  %v13185_v62 = vpop.permute.xlu1 %7127  ;;  %p10905_p5 = pnand %p10904_p3, %p10898_p0 }
 0x402   : > { %v7151_v35 = vsel %vm352_vm0, %v13185_v62, %v13181_v10 }
 0x403   : > { %10648 = vmatmul.mubr.msk.bf16.vlgmr.msra.gmra.mrb[208].mxu0 %vm5256_vm10, %v13067_v45  ;;  %v13192_v54 = vpop.permute.xlu0 %7133  ;;  %v7191_v44 = vsel %vm5059_vm6, %v7151_v35, 0 }
 0x404   : > { %6718 = vmatpush1.bf16.msra.mxu0 %v6635_v24  ;;  %6749 = vmatprep.mubr.bf16.mxu0 %v10975_v0 }
 0x405   : > { %10656 = vmatprep.subr.msk.bf16.mxu0 %vm5059_vm6, %v12714_v57  ;;  %v6653_v57 = vsel %vm5059_vm6, %v12717_v27, 0  ;;  %v13199_v45 = vpop.permute.xlu1 %7131  ;;  %v6665_v27 = vsel %vm5059_vm6, %v12739_v37, 0  ;;  %v6671_v37 = vsel %vm5059_vm6, %v12752_v4, 0  ;;  %v7143_v4 = vsel %vm352_vm0, %v13124_v3, %v13113_v47 }
 0x406   : > { %v7167_v39 = vsel %vm5059_vm6, %v7143_v4, 0  ;;  %v7153_v43 = vsel %vm352_vm0, %v13199_v45, %v13192_v54 }
 0x407   : > { %10651 = vmatmul.mubr.msk.bf16.vlgmr.msra.gmra.mrb[208].mxu1 %vm5256_vm10, %v10649_v50 }
 0x408   : > { %6759 = vmatpush1.bf16.msra.mxu1 %v6641_v9  ;;  %6790 = vmatprep.mubr.bf16.mxu1 %v10975_v0 }
 0x409   : > { %10658 = vmatprep.subr.msk.bf16.mxu1 %vm5059_vm6, %v12725_v17  ;;  %v6659_v17 = vsel %vm5059_vm6, %v12728_v31, 0  ;;  %v7142_v31 = vsel %vm352_vm0, %v13092_v46, %v13124_v3  ;;  %v7152_v3 = vsel %vm352_vm0, %v13181_v10, %v13199_v45 }
 0x40b   : > { %10653 = vmatmul.mubr.msk.bf16.vlgmr.msra.gmra.mrb[212].mxu0 %vm5256_vm10, %v10649_v50 }
 0x40c   : > { %6800 = vmatpush1.bf16.msra.mxu0 %v6647_v8  ;;  %6831 = vmatprep.mubr.bf16.mxu0 %v10975_v0 }
 0x40d   : > { %10660 = vmatprep.subr.msk.bf16.mxu0 %vm5059_vm6, %v12736_v41  ;;  %v13207_v41 = vpop.permute.xlu0 %7639 }
 0x40f   : > { %10655 = vmatmul.mubr.msk.bf16.vlgmr.msra.gmra.mrb[212].mxu1 %vm5256_vm10, %v10649_v50 }
 0x410   : > { %6841 = vmatpush1.bf16.msra.mxu1 %v6653_v57  ;;  %6872 = vmatprep.mubr.bf16.mxu1 %v10975_v0 }
 0x411   : > { %10662 = vmatprep.subr.msk.bf16.mxu1 %vm5059_vm6, %v12747_v13  ;;  %v13214_v13 = vpop.permute.xlu1 %7135  ;;  %v7138_v26 = vpop.permute.xlu0 %7137 }
 0x412   : > { %v7154_v32 = vsel %vm352_vm0, %v13192_v54, %v13214_v13  ;;  %v7155_v9 = vsel %vm352_vm0, %v13214_v13, %v7138_v26 }
 0x413   : > { %10657 = vmatmul.mubr.msk.bf16.vlgmr.msra.gmra.mrb[216].mxu0 %vm5256_vm10, %v10649_v50  ;;  %v7203_v8 = vsel %vm5059_vm6, %v7155_v9, 0 }
 0x414   : > { %6882 = vmatpush1.bf16.msra.mxu0 %v6659_v17  ;;  %6913 = vmatprep.mubr.bf16.mxu0 %v10975_v0 }
 0x415   : > { %10664 = vmatprep.subr.msk.bf16.mxu0 %vm5059_vm6, %v12762_v40  ;;  %v7141_v40 = vsel %vm352_vm0, %v13102_v23, %v13092_v46  ;;  %v7140_v15 = vpop.permute.xlu1 %7139  ;;  %v7644_v22 = vpop.permute.xlu0 %7643  ;;  %v13249_v46 = vld [vmem:[%s14030_s3 + $0x8] sm:$0x3]  ;;  %v7150_v23 = vsel %vm352_vm0, %v13163_v56, %v13185_v62 }
 0x416   : > { %v7161_v7 = vsel %vm5059_vm6, %v7141_v40, 0  ;;  %v7156_v6 = vsel %vm352_vm0, %v7138_v26, %v7140_v15 }
 0x417   : > { %10659 = vmatmul.mubr.msk.bf16.vlgmr.msra.gmra.mrb[216].mxu1 %vm5256_vm10, %v10649_v50 }
 0x418   : > { %6923 = vmatpush1.bf16.msra.mxu1 %v6665_v27  ;;  %6954 = vmatprep.mubr.bf16.mxu1 %v10975_v0 }
 0x419   : > { %10668 = vmatprep.subr.msk.bf16.mxu1 %vm5059_vm6, %v7142_v31  ;;  %v7642_v1 = vpop.permute.xlu1 %7641  ;;  %v7648_v36 = vpop.permute.xlu0 %7647 }
 0x41a   : > { %v7674_v25 = vsel %vm1265_vm3, %v7642_v1, %v7644_v22  ;;  %v7673_v54 = vsel %vm1265_vm3, %v13207_v41, %v7642_v1 }
 0x41b   : > { %10661 = vmatmul.mubr.msk.bf16.vlgmr.msra.gmra.mrb[220].mxu0 %vm5256_vm10, %v10649_v50  ;;  %v7693_v27 = vsel %vm5059_vm6, %v7673_v54, 0 }
 0x41c   : > { %6964 = vmatpush1.bf16.msra.mxu0 %v6671_v37  ;;  %6995 = vmatprep.mubr.bf16.mxu0 %v10975_v0 }
 0x41d   : > { %10670 = vmatprep.subr.msk.bf16.mxu0 %vm5059_vm6, %v7144_v60  ;;  %v7646_v47 = vpop.permute.xlu1 %7645  ;;  %v7652_v21 = vpop.permute.xlu0 %7651  ;;  %v10684_v60 = vld [vmem:[%s14030_s3 + $0xa] sm:$0x3] }
 0x41e   : > { %v7676_v62 = vsel %vm1265_vm3, %v7646_v47, %v7648_v36  ;;  %v7675_v17 = vsel %vm1265_vm3, %v7644_v22, %v7646_v47 }
 0x41f   : > { %10663 = vmatmul.mubr.msk.bf16.vlgmr.msra.gmra.mrb[220].mxu1 %vm5256_vm10, %v10649_v50  ;;  %v7699_v41 = vsel %vm5059_vm6, %v7675_v17, 0 }
 0x420   : > { %7209 = vmatpush1.bf16.msra.mxu1 %v7161_v7  ;;  %7240 = vmatprep.mubr.bf16.mxu1 %v10975_v0 }
 0x421   : > { %10672 = vmatprep.subr.msk.bf16.mxu1 %vm5059_vm6, %v7146_v42  ;;  %v7650_v34 = vpop.permute.xlu1 %7649  ;;  %v7656_v24 = vpop.permute.xlu0 %7655 }
 0x422   : > { %v7678_v45 = vsel %vm1265_vm3, %v7650_v34, %v7652_v21  ;;  %v7677_v37 = vsel %vm1265_vm3, %v7648_v36, %v7650_v34 }
 0x423   : > { %10665 = vmatmul.mubr.msk.bf16.vlgmr.msra.gmra.mrb[224].mxu0 %vm5256_vm10, %v10649_v50  ;;  %v7197_v50 = vsel %vm5059_vm6, %v7153_v43, 0  ;;  %v7705_v26 = vsel %vm5059_vm6, %v7677_v37, 0  ;;  %v8166_v43 = vsel %vm5059_vm6, %v12825_v16, 0  ;;  %v13391_v16 = vld [vmem:[%s14030_s3 + $0xc] sm:$0x3] }
 0x424   : > { %7250 = vmatpush1.bf16.msra.mxu0 %v7167_v39  ;;  %7281 = vmatprep.mubr.bf16.mxu0 %v10975_v0 }
 0x425   : > { %10674 = vmatprep.subr.msk.bf16.mxu0 %vm5059_vm6, %v7148_v52  ;;  %v7654_v56 = vpop.permute.xlu1 %7653  ;;  %v7660_v10 = vpop.permute.xlu0 %7659 }
 0x426   : > { %v7680_v40 = vsel %vm1265_vm3, %v7654_v56, %v7656_v24  ;;  %v7679_v4 = vsel %vm1265_vm3, %v7652_v21, %v7654_v56  ;;  %v8184_v56 = vsel %vm5059_vm6, %v12886_v5, 0  ;;  %v8196_v5 = vsel %vm5059_vm6, %v12936_v18, 0 }
 0x427   : > { %10669 = vmatmul.mubr.msk.bf16.vlgmr.msra.gmra.mrb[224].mxu1 %vm5256_vm10, %v13249_v46  ;;  %v7711_v39 = vsel %vm5059_vm6, %v7679_v4, 0 }
 0x428   : > { %7291 = vmatpush1.bf16.msra.mxu1 %v7173_v53  ;;  %7322 = vmatprep.mubr.bf16.mxu1 %v10975_v0 }
 0x429   : > { %10676 = vmatprep.subr.msk.bf16.mxu1 %vm5059_vm6, %v7150_v23  ;;  %v7658_v57 = vpop.permute.xlu1 %7657  ;;  %v7664_v31 = vpop.permute.xlu0 %7663 }
 0x42a   : > { %v7682_v42 = vsel %vm1265_vm3, %v7658_v57, %v7660_v10  ;;  %v7681_v22 = vsel %vm1265_vm3, %v7656_v24, %v7658_v57 }
 0x42b   : > { %10671 = vmatmul.mubr.msk.bf16.vlgmr.msra.gmra.mrb[228].mxu0 %vm5256_vm10, %v13249_v46  ;;  %v7717_v1 = vsel %vm5059_vm6, %v7681_v22, 0 }
 0x42c   : > { %7332 = vmatpush1.bf16.msra.mxu0 %v7179_v19  ;;  %7363 = vmatprep.mubr.bf16.mxu0 %v10975_v0 }
 0x42d   : > { %10678 = vmatprep.subr.msk.bf16.mxu0 %vm5059_vm6, %v7152_v3  ;;  %v7662_v13 = vpop.permute.xlu1 %7661  ;;  %v7668_v7 = vpop.permute.xlu0 %7667 }
 0x42e   : > { %v7684_v33 = vsel %vm1265_vm3, %v7662_v13, %v7664_v31  ;;  %v7683_v53 = vsel %vm1265_vm3, %v7660_v10, %v7662_v13 }
 0x42f   : > { %10673 = vmatmul.mubr.msk.bf16.vlgmr.msra.gmra.mrb[228].mxu1 %vm5256_vm10, %v13249_v46  ;;  %v7723_v47 = vsel %vm5059_vm6, %v7683_v53, 0 }
 0x430   : > { %7373 = vmatpush1.bf16.msra.mxu1 %v7185_v2  ;;  %7404 = vmatprep.mubr.bf16.mxu1 %v10975_v0 }
 0x431   : > { %10680 = vmatprep.subr.msk.bf16.mxu1 %vm5059_vm6, %v7154_v32  ;;  %v7666_v15 = vpop.permute.xlu1 %7665  ;;  %v7672_v52 = vpop.permute.xlu0 %7671 }
 0x432   : > { %v7686_v55 = vsel %vm1265_vm3, %v7666_v15, %v7668_v7  ;;  %v7685_v19 = vsel %vm1265_vm3, %v7664_v31, %v7666_v15  ;;  %v13503_v15 = vld [vmem:[%s14030_s3 + $0xe] sm:$0x3] }
 0x433   : > { %10675 = vmatmul.mubr.msk.bf16.vlgmr.msra.gmra.mrb[232].mxu0 %vm5256_vm10, %v13249_v46  ;;  %v7729_v3 = vsel %vm5059_vm6, %v7685_v19, 0 }
 0x434   : > { %7414 = vmatpush1.bf16.msra.mxu0 %v7191_v44  ;;  %7445 = vmatprep.mubr.bf16.mxu0 %v10975_v0 }
 0x435   : > { %10682 = vmatprep.subr.msk.bf16.mxu0 %vm5059_vm6, %v7156_v6  ;;  %v13344_v23 = vpop.permute.xlu0 %8646 }
 0x437   : > { %10677 = vmatmul.mubr.msk.bf16.vlgmr.msra.gmra.mrb[232].mxu1 %vm5256_vm10, %v13249_v46 }
 0x438   : > { %7455 = vmatpush1.bf16.msra.mxu1 %v7197_v50  ;;  %7486 = vmatprep.mubr.bf16.mxu1 %v10975_v0 }
 0x439   : > { %10686 = vmatprep.subr.msk.bf16.mxu1 %vm5059_vm6, %v7674_v25  ;;  %v13357_v2 = vpop.permute.xlu0 %8650 }
 0x43b   : > { %10679 = vmatmul.mubr.msk.bf16.vlgmr.msra.gmra.mrb[236].mxu0 %vm5256_vm10, %v13249_v46 }
 0x43c   : > { %7496 = vmatpush1.bf16.msra.mxu0 %v7203_v8  ;;  %7527 = vmatprep.mubr.bf16.mxu0 %v10975_v0 }
 0x43d   : > { %10688 = vmatprep.subr.msk.bf16.mxu0 %vm5059_vm6, %v7676_v62  ;;  %v13368_v34 = vpop.permute.xlu0 %8654  ;;  %v9621_v62 = vld [vmem:[%s14031_s4] sm:$0xf] }
 0x43e   : > { %9624 = vperm.xlu1 %10826, %v9621_v62  }
 0x43f   : > { %10681 = vmatmul.mubr.msk.bf16.vlgmr.msra.gmra.mrb[236].mxu1 %vm5256_vm10, %v13249_v46 }
 0x440   : > { %7741 = vmatpush1.bf16.msra.mxu1 %v7693_v27  ;;  %7772 = vmatprep.mubr.bf16.mxu1 %v10975_v0 }
 0x441   : > { %10690 = vmatprep.subr.msk.bf16.mxu1 %vm5059_vm6, %v7678_v45  ;;  %v13383_v6 = vpop.permute.xlu0 %8658 }
 0x443   : > { %10683 = vmatmul.mubr.msk.bf16.vlgmr.msra.gmra.mrb[240].mxu0 %vm5256_vm10, %v13249_v46  ;;  %v7670_v46 = vpop.permute.xlu1 %7669 }
 0x444   : > { %7782 = vmatpush1.bf16.msra.mxu0 %v7699_v41  ;;  %7813 = vmatprep.mubr.bf16.mxu0 %v10975_v0  ;;  %v7688_v49 = vsel %vm1265_vm3, %v7670_v46, %v7672_v52  ;;  %v7687_v21 = vsel %vm1265_vm3, %v7668_v7, %v7670_v46 }
 0x445   : > { %10692 = vmatprep.subr.msk.bf16.mxu0 %vm5059_vm6, %v7680_v40  ;;  %v7735_v32 = vsel %vm5059_vm6, %v7687_v21, 0 }
 0x447   : > { %10687 = vmatmul.mubr.msk.bf16.vlgmr.msra.gmra.mrb[240].mxu1 %vm5256_vm10, %v10684_v60  ;;  %v13347_v36 = vpop.permute.xlu1 %8644 }
 0x448   : > { %7823 = vmatpush1.bf16.msra.mxu1 %v7705_v26  ;;  %7854 = vmatprep.mubr.bf16.mxu1 %v10975_v0 }
 0x449   : > { %10694 = vmatprep.subr.msk.bf16.mxu1 %vm5059_vm6, %v7682_v42 }
 0x44b   : > { %10689 = vmatmul.mubr.msk.bf16.vlgmr.msra.gmra.mrb[244].mxu0 %vm5256_vm10, %v10684_v60  ;;  %v13360_v35 = vpop.permute.xlu1 %8648 }
 0x44c   : > { %7864 = vmatpush1.bf16.msra.mxu0 %v7711_v39  ;;  %7895 = vmatprep.mubr.bf16.mxu0 %v10975_v0  ;;  %v8679_v18 = vsel %vm352_vm0, %v13344_v23, %v13360_v35  ;;  %v8680_v17 = vsel %vm352_vm0, %v13360_v35, %v13357_v2 }
 0x44d   : > { %10696 = vmatprep.subr.msk.bf16.mxu0 %vm5059_vm6, %v7684_v33  ;;  %v8704_v40 = vsel %vm5059_vm6, %v8680_v17, 0 }
 0x44f   : > { %10691 = vmatmul.mubr.msk.bf16.vlgmr.msra.gmra.mrb[244].mxu1 %vm5256_vm10, %v10684_v60  ;;  %v13371_v44 = vpop.permute.xlu1 %8652 }
 0x450   : > { %7905 = vmatpush1.bf16.msra.mxu1 %v7717_v1  ;;  %7936 = vmatprep.mubr.bf16.mxu1 %v10975_v0  ;;  %v8682_v26 = vsel %vm352_vm0, %v13371_v44, %v13368_v34 }
 0x451   : > { %10698 = vmatprep.subr.msk.bf16.mxu1 %vm5059_vm6, %v7686_v55  ;;  %v8710_v22 = vsel %vm5059_vm6, %v8682_v26, 0 }
 0x453   : > { %10693 = vmatmul.mubr.msk.bf16.vlgmr.msra.gmra.mrb[248].mxu0 %vm5256_vm10, %v10684_v60  ;;  %v13385_v24 = vpop.permute.xlu1 %8656 }
 0x454   : > { %7946 = vmatpush1.bf16.msra.mxu0 %v7723_v47  ;;  %7977 = vmatprep.mubr.bf16.mxu0 %v10975_v0  ;;  %v8683_v45 = vsel %vm352_vm0, %v13368_v34, %v13385_v24  ;;  %v8684_v46 = vsel %vm352_vm0, %v13385_v24, %v13383_v6 }
 0x455   : > { %10700 = vmatprep.subr.msk.bf16.mxu0 %vm5059_vm6, %v7688_v49  ;;  %v8716_v47 = vsel %vm5059_vm6, %v8684_v46, 0 }
 0x457   : > { %10695 = vmatmul.mubr.msk.bf16.vlgmr.msra.gmra.mrb[248].mxu1 %vm5256_vm10, %v10684_v60 }
 0x458   : > { %7987 = vmatpush1.bf16.msra.mxu1 %v7729_v3  ;;  %8018 = vmatprep.mubr.bf16.mxu1 %v10975_v0 }
 0x459   : > { %10703 = vmatprep.subr.msk.bf16.mxu1 %vm5059_vm6, %v12834_v61  ;;  %v8172_v61 = vsel %vm5059_vm6, %v12842_v38, 0  ;;  %v8178_v38 = vsel %vm5059_vm6, %v12862_v14, 0  ;;  %v8190_v14 = vsel %vm5059_vm6, %v12909_v59, 0 }
 0x45b   : > { %10697 = vmatmul.mubr.msk.bf16.vlgmr.msra.gmra.mrb[252].mxu0 %vm5256_vm10, %v10684_v60 }
 0x45c   : > { %8028 = vmatpush1.bf16.msra.mxu0 %v7735_v32  ;;  %8059 = vmatprep.mubr.bf16.mxu0 %v10975_v0 }
 0x45d   : > { %10705 = vmatprep.subr.msk.bf16.mxu0 %vm5059_vm6, %v12852_v30  ;;  %v13400_v30 = vpop.permute.xlu0 %8662 }
 0x45f   : > { %10699 = vmatmul.mubr.msk.bf16.vlgmr.msra.gmra.mrb[252].mxu1 %vm5256_vm10, %v10684_v60 }
 0x460   : > { %8214 = vmatpush1.bf16.msra.mxu1 %v8166_v43  ;;  %8245 = vmatprep.mubr.bf16.mxu1 %v10975_v0 }
 0x461   : > { %10707 = vmatprep.subr.msk.bf16.mxu1 %vm5059_vm6, %v12871_v58  ;;  %v13403_v58 = vpop.permute.xlu1 %8660 }
 0x462   : > { %v8685_v7 = vsel %vm352_vm0, %v13383_v6, %v13403_v58  ;;  %v8686_v49 = vsel %vm352_vm0, %v13403_v58, %v13400_v30 }
 0x463   : > { %10701 = vmatmul.mubr.msk.bf16.vlgmr.msra.gmra.mrb[0].mxu0 %vm5256_vm10, %v10684_v60 }
 0x464   : > { %8255 = vmatpush1.bf16.msra.mxu0 %v8172_v61  ;;  %8286 = vmatprep.mubr.bf16.mxu0 %v10975_v0 }
 0x465   : > { %10709 = vmatprep.subr.msk.bf16.mxu0 %vm5059_vm6, %v12899_v29  ;;  %v13416_v29 = vpop.permute.xlu0 %8666  ;;  %v13418_v50 = vpop.permute.xlu1 %8664 }
 0x466   : > { %v8687_v1 = vsel %vm352_vm0, %v13400_v30, %v13418_v50  ;;  %v8688_v61 = vsel %vm352_vm0, %v13418_v50, %v13416_v29 }
 0x467   : > { %10704 = vmatmul.mubr.msk.bf16.vlgmr.msra.gmra.mrb[0].mxu1 %vm5256_vm10, %v13391_v16  ;;  %v8728_v58 = vsel %vm5059_vm6, %v8688_v61, 0 }
 0x468   : > { %8296 = vmatpush1.bf16.msra.mxu1 %v8178_v38  ;;  %8327 = vmatprep.mubr.bf16.mxu1 %v10975_v0 }
 0x469   : > { %10711 = vmatprep.subr.msk.bf16.mxu1 %vm5059_vm6, %v12923_v63  ;;  %v13429_v59 = vpop.permute.xlu0 %9176  ;;  %v13432_v63 = vpop.permute.xlu1 %8668 }
 0x46a   : > { %v8689_v3 = vsel %vm352_vm0, %v13416_v29, %v13432_v63 }
 0x46b   : > { %10706 = vmatmul.mubr.msk.bf16.vlgmr.msra.gmra.mrb[4].mxu0 %vm5256_vm10, %v13391_v16 }
 0x46c   : > { %8337 = vmatpush1.bf16.msra.mxu0 %v8184_v56  ;;  %8368 = vmatprep.mubr.bf16.mxu0 %v10975_v0 }
 0x46d   : > { %10713 = vmatprep.subr.msk.bf16.mxu0 %vm5059_vm6, %v12950_v28  ;;  %v8202_v28 = vsel %vm5059_vm6, %v12960_v11, 0  ;;  %v13447_v9 = vpop.permute.xlu0 %8670  ;;  %v8678_v11 = vsel %vm352_vm0, %v13347_v36, %v13344_v23  ;;  %v13457_v8 = vpop.permute.xlu1 %8676 }
 0x46e   : > { %v8698_v57 = vsel %vm5059_vm6, %v8678_v11, 0  ;;  %v8690_v29 = vsel %vm352_vm0, %v13432_v63, %v13447_v9 }
 0x46f   : > { %10708 = vmatmul.mubr.msk.bf16.vlgmr.msra.gmra.mrb[4].mxu1 %vm5256_vm10, %v13391_v16 }
 0x470   : > { %8378 = vmatpush1.bf16.msra.mxu1 %v8190_v14  ;;  %8409 = vmatprep.mubr.bf16.mxu1 %v10975_v0 }
 0x471   : > { %10715 = vmatprep.subr.msk.bf16.mxu1 %vm5059_vm6, %v12985_v51  ;;  %v8208_v51 = vsel %vm5059_vm6, %v12993_v48, 0  ;;  %v13481_v13 = vpop.permute.xlu0 %8674  ;;  %v13484_v37 = vpop.permute.xlu1 %8672 }
 0x472   : > { %v8691_v24 = vsel %vm352_vm0, %v13447_v9, %v13484_v37  ;;  %v8692_v63 = vsel %vm352_vm0, %v13484_v37, %v13481_v13 }
 0x473   : > { %10710 = vmatmul.mubr.msk.bf16.vlgmr.msra.gmra.mrb[8].mxu0 %vm5256_vm10, %v13391_v16 }
 0x474   : > { %8419 = vmatpush1.bf16.msra.mxu0 %v8196_v5  ;;  %8450 = vmatprep.mubr.bf16.mxu0 %v10975_v0  ;;  %v8693_v5 = vsel %vm352_vm0, %v13481_v13, %v13457_v8 }
 0x475   : > { %10717 = vmatprep.subr.msk.bf16.mxu0 %vm5059_vm6, %v13003_v20  ;;  %v8681_v20 = vsel %vm352_vm0, %v13357_v2, %v13371_v44  ;;  %v13508_v52 = vpop.permute.xlu0 %9180  ;;  %v13518_v55 = vpop.permute.xlu1 %9178  ;;  %v8722_v44 = vsel %vm5059_vm6, %v8686_v49, 0 }
 0x477   : > { %10712 = vmatmul.mubr.msk.bf16.vlgmr.msra.gmra.mrb[8].mxu1 %vm5256_vm10, %v13391_v16 }
 0x478   : > { %8460 = vmatpush1.bf16.msra.mxu1 %v8202_v28  ;;  %8491 = vmatprep.mubr.bf16.mxu1 %v10975_v0 }
 0x479   : > { %10721 = vmatprep.subr.msk.bf16.mxu1 %vm5059_vm6, %v8679_v18  ;;  %v13535_v21 = vpop.permute.xlu1 %9182  ;;  %v13541_v32 = vpop.permute.xlu0 %9184 }
 0x47a   : > { %v13455_v25 = vpop.f32.mrb[160].mxu1  ;;  %v9213_v13 = vsel %vm1265_vm3, %v13535_v21, %v13541_v32 }
 0x47b   : > { %10714 = vmatmul.mubr.msk.bf16.vlgmr.msra.gmra.mrb[12].mxu0 %vm5256_vm10, %v13391_v16  ;;  %v13461_v10 = vpop.f32.mrb[161].mxu1 }
 0x47c   : > { %8501 = vmatpush1.bf16.msra.mxu0 %v8208_v51  ;;  %v5346_v48 = vpop.f32.mrb[162].mxu1  ;;  %8532 = vmatprep.mubr.bf16.mxu0 %v10975_v0  ;;  %v8734_v51 = vsel %vm5059_vm6, %v8690_v29, 0 }
 0x47d   : > { %v5347_v54 = vpop.f32.mrb[163].mxu1  ;;  %10723 = vmatprep.subr.msk.bf16.mxu0 %vm5059_vm6, %v8681_v20  ;;  %v9187_v30 = vpop.permute.xlu1 %9186  ;;  %v9211_v20 = vsel %vm1265_vm3, %v13518_v55, %v13508_v52 }
 0x47e   : > { %v13475_v27 = vpop.f32.mrb[164].mxu0  ;;  %v13561_v14 = vpop.permute.xlu0 %9188  ;;  %v8740_v54 = vsel %vm5059_vm6, %v8692_v63, 0 }
 0x47f   : > { %10716 = vmatmul.mubr.msk.bf16.vlgmr.msra.gmra.mrb[12].mxu1 %vm5256_vm10, %v13391_v16  ;;  %v13479_v31 = vpop.f32.mrb[165].mxu0 }
 0x480   : > { %8746 = vmatpush1.bf16.msra.mxu1 %v8698_v57  ;;  %v5387_v41 = vpop.f32.mrb[166].mxu0  ;;  %8777 = vmatprep.mubr.bf16.mxu1 %v10975_v0 }
 0x481   : > { %v5388_v60 = vpop.f32.mrb[167].mxu0  ;;  %10725 = vmatprep.subr.msk.bf16.mxu1 %vm5059_vm6, %v8683_v45  ;;  %v9191_v8 = vpop.permute.xlu1 %9190 }
 0x482   : > { %v13494_v4 = vpop.f32.mrb[164].mxu1  ;;  %v13590_v62 = vpop.permute.xlu0 %9192 }
 0x483   : > { %10718 = vmatmul.mubr.msk.bf16.vlgmr.msra.gmra.mrb[16].mxu0 %vm5256_vm10, %v13391_v16  ;;  %v13498_v42 = vpop.f32.mrb[165].mxu1  ;;  %v9217_v49 = vsel %vm1265_vm3, %v9191_v8, %v13590_v62 }
 0x484   : > { %8787 = vmatpush1.bf16.msra.mxu0 %v8704_v40  ;;  %v5428_v39 = vpop.f32.mrb[166].mxu1  ;;  %8818 = vmatprep.mubr.bf16.mxu0 %v10975_v0  ;;  %v9210_v40 = vsel %vm1265_vm3, %v13429_v59, %v13518_v55  ;;  %v9215_v59 = vsel %vm1265_vm3, %v9187_v30, %v13561_v14 }
 0x485   : > { %v5429_v33 = vpop.f32.mrb[167].mxu1  ;;  %10727 = vmatprep.subr.msk.bf16.mxu0 %vm5059_vm6, %v8685_v7  ;;  %v9195_v7 = vpop.permute.xlu1 %9194 }
 0x486   : > { %v13516_v53 = vpop.f32.mrb[168].mxu0  ;;  %v9212_v33 = vsel %vm1265_vm3, %v13508_v52, %v13535_v21 }
 0x487   : > { %10722 = vmatmul.mubr.msk.bf16.vlgmr.msra.gmra.mrb[16].mxu1 %vm5256_vm10, %v13503_v15  ;;  %v13522_v23 = vpop.f32.mrb[169].mxu0  ;;  %v9236_v52 = vsel %vm5059_vm6, %v9212_v33, 0 }
 0x488   : > { %8828 = vmatpush1.bf16.msra.mxu1 %v8710_v22  ;;  %v5469_v36 = vpop.f32.mrb[170].mxu0  ;;  %8859 = vmatprep.mubr.bf16.mxu1 %v10975_v0 }
 0x489   : > { %v5470_v19 = vpop.f32.mrb[171].mxu0  ;;  %10729 = vmatprep.subr.msk.bf16.mxu1 %vm5059_vm6, %v8687_v1 }
 0x48a   : > { %v13533_v2 = vpop.f32.mrb[168].mxu1 }
 0x48b   : > { %10724 = vmatmul.mubr.msk.bf16.vlgmr.msra.gmra.mrb[20].mxu0 %vm5256_vm10, %v13503_v15  ;;  %v13539_v35 = vpop.f32.mrb[169].mxu1 }
 0x48c   : > { %8869 = vmatpush1.bf16.msra.mxu0 %v8716_v47  ;;  %v5510_v34 = vpop.f32.mrb[170].mxu1  ;;  %8900 = vmatprep.mubr.bf16.mxu0 %v10975_v0 }
 0x48d   : > { %v5511_v43 = vpop.f32.mrb[171].mxu1  ;;  %10731 = vmatprep.subr.msk.bf16.mxu0 %vm5059_vm6, %v8689_v3  ;;  %v9199_v3 = vpop.permute.xlu1 %9198 }
 0x48e   : > { %v13549_v6 = vpop.f32.mrb[172].mxu0 }
 0x48f   : > { %10726 = vmatmul.mubr.msk.bf16.vlgmr.msra.gmra.mrb[20].mxu1 %vm5256_vm10, %v13503_v15  ;;  %v13556_v16 = vpop.f32.mrb[173].mxu0 }
 0x490   : > { %8910 = vmatpush1.bf16.msra.mxu1 %v8722_v44  ;;  %v5551_v38 = vpop.f32.mrb[174].mxu0  ;;  %8941 = vmatprep.mubr.bf16.mxu1 %v10975_v0 }
 0x491   : > { %v5552_v56 = vpop.f32.mrb[175].mxu0  ;;  %10733 = vmatprep.subr.msk.bf16.mxu1 %vm5059_vm6, %v8691_v24  ;;  %v9203_v29 = vpop.permute.xlu1 %9202 }
 0x492   : > { %v13566_v50 = vpop.f32.mrb[172].mxu1 }
 0x493   : > { %10728 = vmatmul.mubr.msk.bf16.vlgmr.msra.gmra.mrb[24].mxu0 %vm5256_vm10, %v13503_v15  ;;  %v13573_v28 = vpop.f32.mrb[173].mxu1 }
 0x494   : > { %8951 = vmatpush1.bf16.msra.mxu0 %v8728_v58  ;;  %v5592_v18 = vpop.f32.mrb[174].mxu1  ;;  %8982 = vmatprep.mubr.bf16.mxu0 %v10975_v0 }
 0x495   : > { %v5593_v11 = vpop.f32.mrb[175].mxu1  ;;  %10735 = vmatprep.subr.msk.bf16.mxu0 %vm5059_vm6, %v8693_v5 }
 0x496   : > { %v13581_v9 = vpop.f32.mrb[176].mxu0 }
 0x497   : > { %10730 = vmatmul.mubr.msk.bf16.vlgmr.msra.gmra.mrb[24].mxu1 %vm5256_vm10, %v13503_v15  ;;  %v13588_v48 = vpop.f32.mrb[177].mxu0 }
 0x498   : > { %8992 = vmatpush1.bf16.msra.mxu1 %v8734_v51  ;;  %v5633_v57 = vpop.f32.mrb[178].mxu0  ;;  %9023 = vmatprep.mubr.bf16.mxu1 %v10975_v0  ;;  %v9218_v51 = vsel %vm1265_vm3, %v13590_v62, %v9195_v7 }
 0x499   : > { %v5634_v17 = vpop.f32.mrb[179].mxu0  ;;  %10739 = vmatprep.subr.msk.bf16.mxu1 %vm5059_vm6, %v9211_v20  ;;  %v9254_v57 = vsel %vm5059_vm6, %v9218_v51, 0 }
 0x49a   : > { %v5721_v45 = vpop.f32.mrb[176].mxu1 }
 0x49b   : > { %v13599_v41 = vadd.f32 %v5721_v45, %v13455_v25  ;;  %v5723_v37 = vpop.f32.mrb[177].mxu1  ;;  %10732 = vmatmul.mubr.msk.bf16.vlgmr.msra.gmra.mrb[28].mxu0 %vm5256_vm10, %v13503_v15  ;;  %v9197_v25 = vpop.permute.xlu0 %9196 }
 0x49c   : > { %v13607_v60 = vadd.f32 %v5723_v37, %v13461_v10  ;;  %v5725_v26 = vpop.f32.mrb[178].mxu1  ;;  %9033 = vmatpush1.bf16.msra.mxu0 %v8740_v54  ;;  %9064 = vmatprep.mubr.bf16.mxu0 %v10975_v0  ;;  %v9230_v10 = vsel %vm5059_vm6, %v9210_v40, 0  ;;  %v9207_v45 = vpop.permute.xlu1 %9206 }
 0x49d   : > { %v5726_v39 = vpop.f32.mrb[179].mxu1  ;;  %10741 = vmatprep.subr.msk.bf16.mxu0 %vm5059_vm6, %v9213_v13 }
 0x49e   : > { %v5762_v22 = vpop.f32.mrb[180].mxu0 }
 0x49f   : > { %v13618_v46 = vadd.f32 %v5762_v22, %v13475_v27  ;;  %v5764_v1 = vpop.f32.mrb[181].mxu0  ;;  %10734 = vmatmul.mubr.msk.bf16.vlgmr.msra.gmra.mrb[28].mxu1 %vm5256_vm10, %v13503_v15  ;;  %v9214_v27 = vsel %vm1265_vm3, %v13541_v32, %v9187_v30  ;;  %v9201_v34 = vpop.permute.xlu0 %9200  ;;  %v13643_v32 = vld [vmem:[%s14030_s3 + $0x10] sm:$0x3] }
 0x4a0   : > { %v13623_v55 = vadd.f32 %v5764_v1, %v13479_v31  ;;  %9278 = vmatpush1.bf16.msra.mxu1 %v9230_v10  ;;  %v5766_v36 = vpop.f32.mrb[182].mxu0  ;;  %9309 = vmatprep.mubr.bf16.mxu1 %v10975_v0  ;;  %v9221_v11 = vsel %vm1265_vm3, %v9199_v3, %v9201_v34 }
 0x4a1   : > { %v5767_v47 = vpop.f32.mrb[183].mxu0  ;;  %10743 = vmatprep.subr.msk.bf16.mxu1 %vm5059_vm6, %v9215_v59 }
 0x4a2   : > { %v5803_v19 = vpop.f32.mrb[180].mxu1 }
 0x4a3   : > { %v13633_v31 = vadd.f32 %v5803_v19, %v13494_v4  ;;  %v5805_v21 = vpop.f32.mrb[181].mxu1  ;;  %10736 = vmatmul.mubr.msk.bf16.vlgmr.msra.gmra.mrb[32].mxu0 %vm5256_vm10, %v13503_v15  ;;  %v9242_v4 = vsel %vm5059_vm6, %v9214_v27, 0  ;;  %v9216_v15 = vsel %vm1265_vm3, %v13561_v14, %v9191_v8  ;;  %v9205_v18 = vpop.permute.xlu0 %9204 }
 0x4a4   : > { %v13638_v44 = vadd.f32 %v5805_v21, %v13498_v42  ;;  %9319 = vmatpush1.bf16.msra.mxu0 %v9236_v52  ;;  %v5807_v43 = vpop.f32.mrb[182].mxu1  ;;  %9350 = vmatprep.mubr.bf16.mxu0 %v10975_v0  ;;  %v9219_v42 = vsel %vm1265_vm3, %v9195_v7, %v9197_v25  ;;  %v9248_v5 = vsel %vm5059_vm6, %v9216_v15, 0  ;;  %v9223_v17 = vsel %vm1265_vm3, %v9203_v29, %v9205_v18 }
 0x4a5   : > { %v5808_v61 = vpop.f32.mrb[183].mxu1  ;;  %10745 = vmatprep.subr.msk.bf16.mxu0 %vm5059_vm6, %v9217_v49  ;;  %v9224_v47 = vsel %vm1265_vm3, %v9205_v18, %v9207_v45 }
 0x4a6   : > { %v5844_v24 = vpop.f32.mrb[184].mxu0  ;;  %v9272_v49 = vsel %vm5059_vm6, %v9224_v47, 0 }
 0x4a7   : > { %v13652_v38 = vadd.f32 %v5844_v24, %v13516_v53  ;;  %v5846_v30 = vpop.f32.mrb[185].mxu0  ;;  %10740 = vmatmul.mubr.msk.bf16.vlgmr.msra.gmra.mrb[32].mxu1 %vm5256_vm10, %v13643_v32  ;;  %v9209_v37 = vpop.permute.xlu0 %9208 }
 0x4a8   : > { %v13657_v58 = vadd.f32 %v5846_v30, %v13522_v23  ;;  %9360 = vmatpush1.bf16.msra.mxu1 %v9242_v4  ;;  %v5848_v56 = vpop.f32.mrb[186].mxu0  ;;  %9391 = vmatprep.mubr.bf16.mxu1 %v10975_v0  ;;  %v9225_v22 = vsel %vm1265_vm3, %v9207_v45, %v9209_v37 }
 0x4a9   : > { %v5849_v14 = vpop.f32.mrb[187].mxu0  ;;  %10747 = vmatprep.subr.msk.bf16.mxu1 %vm5059_vm6, %v9219_v42 }
 0x4aa   : > { %v5885_v53 = vpop.f32.mrb[184].mxu1 }
 0x4ab   : > { %v13666_v23 = vadd.f32 %v5885_v53, %v13533_v2  ;;  %v5887_v63 = vpop.f32.mrb[185].mxu1  ;;  %10742 = vmatmul.mubr.msk.bf16.vlgmr.msra.gmra.mrb[36].mxu0 %vm5256_vm10, %v13643_v32  ;;  %v9220_v2 = vsel %vm1265_vm3, %v9197_v25, %v9199_v3 }
 0x4ac   : > { %v13671_v20 = vadd.f32 %v5887_v63, %v13539_v35  ;;  %9401 = vmatpush1.bf16.msra.mxu0 %v9248_v5  ;;  %v5889_v8 = vpop.f32.mrb[186].mxu1  ;;  %9432 = vmatprep.mubr.bf16.mxu0 %v10975_v0  ;;  %v9260_v7 = vsel %vm5059_vm6, %v9220_v2, 0 }
 0x4ad   : > { %v5890_v54 = vpop.f32.mrb[187].mxu1  ;;  %10749 = vmatprep.subr.msk.bf16.mxu0 %vm5059_vm6, %v9221_v11 }
 0x4ae   : > { %v5926_v62 = vpop.f32.mrb[188].mxu0 }
 0x4af   : > { %v13679_v13 = vadd.f32 %v5926_v62, %v13549_v6  ;;  %v5928_v35 = vpop.f32.mrb[189].mxu0  ;;  %10744 = vmatmul.mubr.msk.bf16.vlgmr.msra.gmra.mrb[36].mxu1 %vm5256_vm10, %v13643_v32  ;;  %v9222_v6 = vsel %vm1265_vm3, %v9201_v34, %v9203_v29 }
 0x4b0   : > { %v13684_v40 = vadd.f32 %v5928_v35, %v13556_v16  ;;  %9442 = vmatpush1.bf16.msra.mxu1 %v9254_v57  ;;  %v5930_v26 = vpop.f32.mrb[190].mxu0  ;;  %9473 = vmatprep.mubr.bf16.mxu1 %v10975_v0  ;;  %v9266_v1 = vsel %vm5059_vm6, %v9222_v6, 0 }
 0x4b1   : > { %v5931_v39 = vpop.f32.mrb[191].mxu0  ;;  %10751 = vmatprep.subr.msk.bf16.mxu1 %vm5059_vm6, %v9223_v17 }
 0x4b2   : > { %v5967_v25 = vpop.f32.mrb[188].mxu1 }
 0x4b3   : > { %v13692_v33 = vadd.f32 %v5967_v25, %v13566_v50  ;;  %v5969_v59 = vpop.f32.mrb[189].mxu1  ;;  %10746 = vmatmul.mubr.msk.bf16.vlgmr.msra.gmra.mrb[40].mxu0 %vm5256_vm10, %v13643_v32 }
 0x4b4   : > { %v5970_v16 = vadd.f32 %v5969_v59, %v13573_v28  ;;  %9483 = vmatpush1.bf16.msra.mxu0 %v9260_v7  ;;  %v5971_v10 = vpop.f32.mrb[190].mxu1  ;;  %9514 = vmatprep.mubr.bf16.mxu0 %v10975_v0 }
 0x4b5   : > { %v5972_v36 = vpop.f32.mrb[191].mxu1  ;;  %10753 = vmatprep.subr.msk.bf16.mxu0 %vm5059_vm6, %v9225_v22 }
 0x4b6   : > { %v6008_v52 = vpop.f32.mrb[192].mxu0 }
 0x4b7   : > { %v6009_v50 = vadd.f32 %v6008_v52, %v13581_v9  ;;  %v6010_v19 = vpop.f32.mrb[193].mxu0  ;;  %10748 = vmatmul.mubr.msk.bf16.vlgmr.msra.gmra.mrb[40].mxu1 %vm5256_vm10, %v13643_v32 }
 0x4b8   : > { %v6011_v28 = vadd.f32 %v6010_v19, %v13588_v48  ;;  %9524 = vmatpush1.bf16.msra.mxu1 %v9266_v1  ;;  %v6012_v27 = vpop.f32.mrb[194].mxu0  ;;  %9555 = vmatprep.mubr.bf16.mxu1 %v10975_v0 }
 0x4b9   : > { %v6013_v3 = vpop.f32.mrb[195].mxu0 }
 0x4ba   : > { %v6237_v21 = vpop.f32.mrb[192].mxu1 }
 0x4bb   : > { %v6531_v34 = vadd.f32 %v6237_v21, %v13599_v41  ;;  %v6239_v43 = vpop.f32.mrb[193].mxu1  ;;  %10750 = vmatmul.mubr.msk.bf16.vlgmr.msra.gmra.mrb[44].mxu0 %vm5256_vm10, %v13643_v32 }
 0x4bc   : > { %v6532_v9 = vadd.f32 %v6239_v43, %v13607_v60  ;;  %9565 = vmatpush1.bf16.msra.mxu0 %v9272_v49  ;;  %v6241_v4 = vpop.f32.mrb[194].mxu1  ;;  %9596 = vmatprep.mubr.bf16.mxu0 %v10975_v0 }
 0x4bd   : > { %v6242_v48 = vpop.f32.mrb[195].mxu1 }
 0x4be   : > { %v6278_v61 = vpop.f32.mrb[196].mxu0 }
 0x4bf   : > { %v6533_v24 = vadd.f32 %v6278_v61, %v13618_v46  ;;  %v6280_v15 = vpop.f32.mrb[197].mxu0  ;;  %10752 = vmatmul.mubr.msk.bf16.vlgmr.msra.gmra.mrb[44].mxu1 %vm5256_vm10, %v13643_v32 }
 0x4c0   : > { %v6534_v41 = vadd.f32 %v6280_v15, %v13623_v55  ;;  %v6282_v42 = vpop.f32.mrb[198].mxu0 }
 0x4c1   : > { %v6283_v30 = vpop.f32.mrb[199].mxu0 }
 0x4c2   : > { %v6319_v56 = vpop.f32.mrb[196].mxu1 }
 0x4c3   : > { %v6535_v29 = vadd.f32 %v6319_v56, %v13633_v31  ;;  %v6321_v60 = vpop.f32.mrb[197].mxu1  ;;  %10754 = vmatmul.mubr.msk.bf16.vlgmr.msra.gmra.mrb[48].mxu0 %vm5256_vm10, %v13643_v32 }
 0x4c4   : > { %v6536_v0 = vadd.f32 %v6321_v60, %v13638_v44  ;;  %v6323_v5 = vpop.f32.mrb[198].mxu1 }
 0x4c5   : > { %v6324_v14 = vpop.f32.mrb[199].mxu1 }
 0x4c6   : > { %v6360_v46 = vpop.f32.mrb[200].mxu0 }
 0x4c7   : > { %v6537_v18 = vadd.f32 %v6360_v46, %v13652_v38  ;;  %v6362_v53 = vpop.f32.mrb[201].mxu0 }
 0x4c8   : > { %v6538_v51 = vadd.f32 %v6362_v53, %v13657_v58  ;;  %v6364_v55 = vpop.f32.mrb[202].mxu0 }
 0x4c9   : > { %v6365_v11 = vpop.f32.mrb[203].mxu0 }
 0x4ca   : > { %v6401_v63 = vpop.f32.mrb[200].mxu1 }
 0x4cb   : > { %v6539_v8 = vadd.f32 %v6401_v63, %v13666_v23  ;;  %v6403_v31 = vpop.f32.mrb[201].mxu1 }
 0x4cc   : > { %v6540_v57 = vadd.f32 %v6403_v31, %v13671_v20  ;;  %v6405_v54 = vpop.f32.mrb[202].mxu1 }
 0x4cd   : > { %v6406_v32 = vpop.f32.mrb[203].mxu1 }
 0x4ce   : > { %v6442_v62 = vpop.f32.mrb[204].mxu0 }
 0x4cf   : > { %v6541_v44 = vadd.f32 %v6442_v62, %v13679_v13  ;;  %v6444_v2 = vpop.f32.mrb[205].mxu0 }
 0x4d0   : > { %v6542_v17 = vadd.f32 %v6444_v2, %v13684_v40  ;;  %v6446_v38 = vpop.f32.mrb[206].mxu0 }
 0x4d1   : > { %v6447_v45 = vpop.f32.mrb[207].mxu0 }
 0x4d2   : > { %v6483_v35 = vpop.f32.mrb[204].mxu1 }
 0x4d3   : > { %v6543_v58 = vadd.f32 %v6483_v35, %v13692_v33  ;;  %v6485_v37 = vpop.f32.mrb[205].mxu1 }
 0x4d4   : > { %v6544_v26 = vadd.f32 %v6485_v37, %v5970_v16  ;;  %v6487_v7 = vpop.f32.mrb[206].mxu1 }
 0x4d5   : > { %v6488_v23 = vpop.f32.mrb[207].mxu1 }
 0x4d6   : > { %v6524_v39 = vpop.f32.mrb[208].mxu0 }
 0x4d7   : > { %v6545_v25 = vadd.f32 %v6524_v39, %v6009_v50  ;;  %v6526_v20 = vpop.f32.mrb[209].mxu0 }
 0x4d8   : > { %v6546_v6 = vadd.f32 %v6526_v20, %v6011_v28  ;;  %v6528_v22 = vpop.f32.mrb[210].mxu0 }
 0x4d9   : > { %v6529_v59 = vpop.f32.mrb[211].mxu0 }
 0x4da   : > { %v6710_v10 = vpop.f32.mrb[208].mxu1 }
 0x4db   : > { %v7004_v13 = vadd.f32 %v6710_v10, %v6531_v34  ;;  %v6712_v1 = vpop.f32.mrb[209].mxu1 }
 0x4dc   : > { %v7005_v36 = vadd.f32 %v6712_v1, %v6532_v9  ;;  %v6714_v40 = vpop.f32.mrb[210].mxu1 }
 0x4dd   : > { %v6715_v52 = vpop.f32.mrb[211].mxu1 }
 0x4de   : > { %v6751_v47 = vpop.f32.mrb[212].mxu0 }
 0x4df   : > { %v7006_v19 = vadd.f32 %v6751_v47, %v6533_v24  ;;  %v6753_v27 = vpop.f32.mrb[213].mxu0 }
 0x4e0   : > { %v7007_v33 = vadd.f32 %v6753_v27, %v6534_v41  ;;  %v6755_v49 = vpop.f32.mrb[214].mxu0 }
 0x4e1   : > { %v6756_v16 = vpop.f32.mrb[215].mxu0 }
 0x4e2   : > { %v6792_v3 = vpop.f32.mrb[212].mxu1 }
 0x4e3   : > { %v7008_v21 = vadd.f32 %v6792_v3, %v6535_v29  ;;  %v6794_v43 = vpop.f32.mrb[213].mxu1 }
 0x4e4   : > { %v7009_v50 = vadd.f32 %v6794_v43, %v6536_v0  ;;  %v6796_v4 = vpop.f32.mrb[214].mxu1 }
 0x4e5   : > { %v6797_v28 = vpop.f32.mrb[215].mxu1 }
 0x4e6   : > { %v6833_v48 = vpop.f32.mrb[216].mxu0 }
 0x4e7   : > { %v7010_v61 = vadd.f32 %v6833_v48, %v6537_v18  ;;  %v6835_v15 = vpop.f32.mrb[217].mxu0 }
 0x4e8   : > { %v7011_v34 = vadd.f32 %v6835_v15, %v6538_v51  ;;  %v6837_v42 = vpop.f32.mrb[218].mxu0 }
 0x4e9   : > { %v6838_v9 = vpop.f32.mrb[219].mxu0 }
 0x4ea   : > { %v6874_v30 = vpop.f32.mrb[216].mxu1 }
 0x4eb   : > { %v7012_v56 = vadd.f32 %v6874_v30, %v6539_v8  ;;  %v6876_v60 = vpop.f32.mrb[217].mxu1 }
 0x4ec   : > { %v7013_v24 = vadd.f32 %v6876_v60, %v6540_v57  ;;  %v6878_v5 = vpop.f32.mrb[218].mxu1 }
 0x4ed   : > { %v6879_v41 = vpop.f32.mrb[219].mxu1 }
 0x4ee   : > { %v6915_v14 = vpop.f32.mrb[220].mxu0 }
 0x4ef   : > { %v7014_v46 = vadd.f32 %v6915_v14, %v6541_v44  ;;  %v6917_v53 = vpop.f32.mrb[221].mxu0 }
 0x4f0   : > { %v7015_v29 = vadd.f32 %v6917_v53, %v6542_v17  ;;  %v6919_v55 = vpop.f32.mrb[222].mxu0 }
 0x4f1   : > { %v6920_v0 = vpop.f32.mrb[223].mxu0 }
 0x4f2   : > { %v6956_v11 = vpop.f32.mrb[220].mxu1 }
 0x4f3   : > { %v7016_v63 = vadd.f32 %v6956_v11, %v6543_v58  ;;  %v6958_v31 = vpop.f32.mrb[221].mxu1 }
 0x4f4   : > { %v7017_v18 = vadd.f32 %v6958_v31, %v6544_v26  ;;  %v6960_v54 = vpop.f32.mrb[222].mxu1 }
 0x4f5   : > { %v6961_v51 = vpop.f32.mrb[223].mxu1 }
 0x4f6   : > { %v6997_v32 = vpop.f32.mrb[224].mxu0 }
 0x4f7   : > { %v7018_v62 = vadd.f32 %v6997_v32, %v6545_v25  ;;  %v6999_v2 = vpop.f32.mrb[225].mxu0 }
 0x4f8   : > { %v7019_v8 = vadd.f32 %v6999_v2, %v6546_v6  ;;  %v7001_v38 = vpop.f32.mrb[226].mxu0 }
 0x4f9   : > { %v7002_v57 = vpop.f32.mrb[227].mxu0 }
 0x4fa   : > { %v7242_v45 = vpop.f32.mrb[224].mxu1 }
 0x4fb   : > { %v7536_v35 = vadd.f32 %v7242_v45, %v7004_v13  ;;  %v7244_v37 = vpop.f32.mrb[225].mxu1 }
 0x4fc   : > { %v7537_v44 = vadd.f32 %v7244_v37, %v7005_v36  ;;  %v7246_v7 = vpop.f32.mrb[226].mxu1 }
 0x4fd   : > { %v7247_v17 = vpop.f32.mrb[227].mxu1 }
 0x4fe   : > { %v7283_v23 = vpop.f32.mrb[228].mxu0 }
 0x4ff   : > { %v7538_v39 = vadd.f32 %v7283_v23, %v7006_v19  ;;  %v7285_v20 = vpop.f32.mrb[229].mxu0 }
 0x500   : > { %v7539_v58 = vadd.f32 %v7285_v20, %v7007_v33  ;;  %v7287_v22 = vpop.f32.mrb[230].mxu0 }
 0x501   : > { %v7288_v26 = vpop.f32.mrb[231].mxu0 }
 0x502   : > { %v7324_v59 = vpop.f32.mrb[228].mxu1 }
 0x503   : > { %v7540_v10 = vadd.f32 %v7324_v59, %v7008_v21  ;;  %v7326_v1 = vpop.f32.mrb[229].mxu1 }
 0x504   : > { %v7541_v25 = vadd.f32 %v7326_v1, %v7009_v50  ;;  %v7328_v40 = vpop.f32.mrb[230].mxu1 }
 0x505   : > { %v7329_v6 = vpop.f32.mrb[231].mxu1 }
 0x506   : > { %v7365_v52 = vpop.f32.mrb[232].mxu0 }
 0x507   : > { %v7542_v47 = vadd.f32 %v7365_v52, %v7010_v61  ;;  %v7367_v27 = vpop.f32.mrb[233].mxu0 }
 0x508   : > { %v7543_v13 = vadd.f32 %v7367_v27, %v7011_v34  ;;  %v7369_v49 = vpop.f32.mrb[234].mxu0 }
 0x509   : > { %v7370_v36 = vpop.f32.mrb[235].mxu0 }
 0x50a   : > { %v7406_v16 = vpop.f32.mrb[232].mxu1 }
 0x50b   : > { %v7544_v3 = vadd.f32 %v7406_v16, %v7012_v56  ;;  %v7408_v43 = vpop.f32.mrb[233].mxu1 }
 0x50c   : > { %v7545_v19 = vadd.f32 %v7408_v43, %v7013_v24  ;;  %v7410_v4 = vpop.f32.mrb[234].mxu1 }
 0x50d   : > { %v7411_v33 = vpop.f32.mrb[235].mxu1 }
 0x50e   : > { %v7447_v28 = vpop.f32.mrb[236].mxu0 }
 0x50f   : > { %v7546_v48 = vadd.f32 %v7447_v28, %v7014_v46  ;;  %v7449_v15 = vpop.f32.mrb[237].mxu0 }
 0x510   : > { %v7547_v21 = vadd.f32 %v7449_v15, %v7015_v29  ;;  %v7451_v42 = vpop.f32.mrb[238].mxu0 }
 0x511   : > { %v7452_v50 = vpop.f32.mrb[239].mxu0 }
 0x512   : > { %v7488_v9 = vpop.f32.mrb[236].mxu1 }
 0x513   : > { %v7548_v30 = vadd.f32 %v7488_v9, %v7016_v63  ;;  %v7490_v60 = vpop.f32.mrb[237].mxu1 }
 0x514   : > { %v7549_v61 = vadd.f32 %v7490_v60, %v7017_v18  ;;  %v7492_v5 = vpop.f32.mrb[238].mxu1 }
 0x515   : > { %v7493_v34 = vpop.f32.mrb[239].mxu1 }
 0x516   : > { %v7529_v41 = vpop.f32.mrb[240].mxu0 }
 0x517   : > { %v7550_v14 = vadd.f32 %v7529_v41, %v7018_v62  ;;  %v7531_v53 = vpop.f32.mrb[241].mxu0 }
 0x518   : > { %v7551_v56 = vadd.f32 %v7531_v53, %v7019_v8  ;;  %v7533_v55 = vpop.f32.mrb[242].mxu0 }
 0x519   : > { %v7534_v24 = vpop.f32.mrb[243].mxu0 }
 0x51a   : > { %v7774_v0 = vpop.f32.mrb[240].mxu1 }
 0x51b   : > { %v8068_v11 = vadd.f32 %v7774_v0, %v7536_v35  ;;  %v7776_v31 = vpop.f32.mrb[241].mxu1 }
 0x51c   : > { %v8069_v46 = vadd.f32 %v7776_v31, %v7537_v44  ;;  %v7778_v54 = vpop.f32.mrb[242].mxu1 }
 0x51d   : > { %v7779_v29 = vpop.f32.mrb[243].mxu1 }
 0x51e   : > { %v7815_v51 = vpop.f32.mrb[244].mxu0 }
 0x51f   : > { %v8070_v32 = vadd.f32 %v7815_v51, %v7538_v39  ;;  %v7817_v2 = vpop.f32.mrb[245].mxu0 }
 0x520   : > { %v8071_v63 = vadd.f32 %v7817_v2, %v7539_v58  ;;  %v7819_v38 = vpop.f32.mrb[246].mxu0 }
 0x521   : > { %v7820_v18 = vpop.f32.mrb[247].mxu0 }
 0x522   : > { %v7856_v57 = vpop.f32.mrb[244].mxu1 }
 0x523   : > { %v8072_v45 = vadd.f32 %v7856_v57, %v7540_v10  ;;  %v7858_v37 = vpop.f32.mrb[245].mxu1 }
 0x524   : > { %v8073_v62 = vadd.f32 %v7858_v37, %v7541_v25  ;;  %v7860_v7 = vpop.f32.mrb[246].mxu1 }
 0x525   : > { %v7861_v8 = vpop.f32.mrb[247].mxu1 }
 0x526   : > { %v7897_v17 = vpop.f32.mrb[248].mxu0 }
 0x527   : > { %v8074_v23 = vadd.f32 %v7897_v17, %v7542_v47  ;;  %v7899_v20 = vpop.f32.mrb[249].mxu0 }
 0x528   : > { %v8075_v35 = vadd.f32 %v7899_v20, %v7543_v13  ;;  %v7901_v22 = vpop.f32.mrb[250].mxu0 }
 0x529   : > { %v7902_v44 = vpop.f32.mrb[251].mxu0 }
 0x52a   : > { %v7938_v26 = vpop.f32.mrb[248].mxu1 }
 0x52b   : > { %v8076_v59 = vadd.f32 %v7938_v26, %v7544_v3  ;;  %v7940_v1 = vpop.f32.mrb[249].mxu1 }
 0x52c   : > { %v8077_v39 = vadd.f32 %v7940_v1, %v7545_v19  ;;  %v7942_v40 = vpop.f32.mrb[250].mxu1 }
 0x52d   : > { %v7943_v58 = vpop.f32.mrb[251].mxu1 }
 0x52e   : > { %v7979_v6 = vpop.f32.mrb[252].mxu0 }
 0x52f   : > { %v8078_v52 = vadd.f32 %v7979_v6, %v7546_v48  ;;  %v7981_v27 = vpop.f32.mrb[253].mxu0 }
 0x530   : > { %v8079_v10 = vadd.f32 %v7981_v27, %v7547_v21  ;;  %v7983_v49 = vpop.f32.mrb[254].mxu0 }
 0x531   : > { %v7984_v25 = vpop.f32.mrb[255].mxu0 }
 0x532   : > { %v8020_v36 = vpop.f32.mrb[252].mxu1 }
 0x533   : > { %v8080_v16 = vadd.f32 %v8020_v36, %v7548_v30  ;;  %v8022_v43 = vpop.f32.mrb[253].mxu1 }
 0x534   : > { %v8081_v47 = vadd.f32 %v8022_v43, %v7549_v61  ;;  %v8024_v4 = vpop.f32.mrb[254].mxu1 }
 0x535   : > { %v8025_v13 = vpop.f32.mrb[255].mxu1 }
 0x536   : > { %v8061_v33 = vpop.f32.mrb[0].mxu0 }
 0x537   : > { %v8082_v28 = vadd.f32 %v8061_v33, %v7550_v14  ;;  %v8063_v15 = vpop.f32.mrb[1].mxu0 }
 0x538   : > { %v8083_v3 = vadd.f32 %v8063_v15, %v7551_v56  ;;  %v8065_v42 = vpop.f32.mrb[2].mxu0 }
 0x539   : > { %v8066_v19 = vpop.f32.mrb[3].mxu0 }
 0x53a   : > { %v8247_v50 = vpop.f32.mrb[0].mxu1 }
 0x53b   : > { %v8541_v9 = vadd.f32 %v8247_v50, %v8068_v11  ;;  %v8249_v60 = vpop.f32.mrb[1].mxu1 }
 0x53c   : > { %v8542_v48 = vadd.f32 %v8249_v60, %v8069_v46  ;;  %v8251_v5 = vpop.f32.mrb[2].mxu1 }
 0x53d   : > { %v8252_v21 = vpop.f32.mrb[3].mxu1 }
 0x53e   : > { %v8288_v34 = vpop.f32.mrb[4].mxu0 }
 0x53f   : > { %v8543_v41 = vadd.f32 %v8288_v34, %v8070_v32  ;;  %v8290_v53 = vpop.f32.mrb[5].mxu0 }
 0x540   : > { %v8544_v30 = vadd.f32 %v8290_v53, %v8071_v63  ;;  %v8292_v55 = vpop.f32.mrb[6].mxu0 }
 0x541   : > { %v8293_v61 = vpop.f32.mrb[7].mxu0 }
 0x542   : > { %v8329_v24 = vpop.f32.mrb[4].mxu1 }
 0x543   : > { %v8545_v0 = vadd.f32 %v8329_v24, %v8072_v45  ;;  %v8331_v31 = vpop.f32.mrb[5].mxu1 }
 0x544   : > { %v8546_v14 = vadd.f32 %v8331_v31, %v8073_v62  ;;  %v8333_v54 = vpop.f32.mrb[6].mxu1 }
 0x545   : > { %v8334_v56 = vpop.f32.mrb[7].mxu1 }
 0x546   : > { %v8370_v29 = vpop.f32.mrb[8].mxu0 }
 0x547   : > { %v8547_v51 = vadd.f32 %v8370_v29, %v8074_v23  ;;  %v8372_v2 = vpop.f32.mrb[9].mxu0 }
 0x548   : > { %v8548_v11 = vadd.f32 %v8372_v2, %v8075_v35  ;;  %v8374_v38 = vpop.f32.mrb[10].mxu0 }
 0x549   : > { %v8375_v46 = vpop.f32.mrb[11].mxu0 }
 0x54a   : > { %v8411_v18 = vpop.f32.mrb[8].mxu1 }
 0x54b   : > { %v8549_v57 = vadd.f32 %v8411_v18, %v8076_v59  ;;  %v8413_v37 = vpop.f32.mrb[9].mxu1 }
 0x54c   : > { %v8550_v32 = vadd.f32 %v8413_v37, %v8077_v39  ;;  %v8415_v7 = vpop.f32.mrb[10].mxu1 }
 0x54d   : > { %v8416_v63 = vpop.f32.mrb[11].mxu1  ;;  %v10980_v7 = vmov 1966171168  }
 0x54e   : > { %v8452_v8 = vpop.f32.mrb[12].mxu0  ;;  %v9693_v63 = vunpack.c.l.s4 %v10980_v7 }
 0x54f   : > { %v8551_v17 = vadd.f32 %v8452_v8, %v8078_v52  ;;  %v8454_v20 = vpop.f32.mrb[13].mxu0 }
 0x550   : > { %v8552_v45 = vadd.f32 %v8454_v20, %v8079_v10  ;;  %v8456_v22 = vpop.f32.mrb[14].mxu0 }
 0x551   : > { %v8457_v62 = vpop.f32.mrb[15].mxu0 }
 0x552   : > { %v8493_v44 = vpop.f32.mrb[12].mxu1 }
 0x553   : > { %v8553_v26 = vadd.f32 %v8493_v44, %v8080_v16  ;;  %v8495_v1 = vpop.f32.mrb[13].mxu1  ;;  %v9694_v44 = vunpack.c.0.s8 %v9693_v63 }
 0x554   : > { %v8554_v23 = vadd.f32 %v8495_v1, %v8081_v47  ;;  %v8497_v40 = vpop.f32.mrb[14].mxu1 }
 0x555   : > { %v8498_v35 = vpop.f32.mrb[15].mxu1 }
 0x556   : > { %v8534_v58 = vpop.f32.mrb[16].mxu0 }
 0x557   : > { %v8555_v6 = vadd.f32 %v8534_v58, %v8082_v28  ;;  %v8536_v27 = vpop.f32.mrb[17].mxu0 }
 0x558   : > { %v8556_v59 = vadd.f32 %v8536_v27, %v8083_v3  ;;  %v8538_v49 = vpop.f32.mrb[18].mxu0 }
 0x559   : > { %v8539_v39 = vpop.f32.mrb[19].mxu0 }
 0x55a   : > { %v8779_v25 = vpop.f32.mrb[16].mxu1 }
 0x55b   : > { %v9073_v36 = vadd.f32 %v8779_v25, %v8541_v9  ;;  %v8781_v43 = vpop.f32.mrb[17].mxu1 }
 0x55c   : > { %v9074_v52 = vadd.f32 %v8781_v43, %v8542_v48  ;;  %v8783_v4 = vpop.f32.mrb[18].mxu1 }
 0x55d   : > { %v8784_v10 = vpop.f32.mrb[19].mxu1 }
 0x55e   : > { %v8820_v13 = vpop.f32.mrb[20].mxu0 }
 0x55f   : > { %v9075_v33 = vadd.f32 %v8820_v13, %v8543_v41  ;;  %v8822_v15 = vpop.f32.mrb[21].mxu0 }
 0x560   : > { %v9076_v16 = vadd.f32 %v8822_v15, %v8544_v30  ;;  %v8824_v42 = vpop.f32.mrb[22].mxu0 }
 0x561   : > { %v8825_v47 = vpop.f32.mrb[23].mxu0 }
 0x562   : > { %v8861_v19 = vpop.f32.mrb[20].mxu1 }
 0x563   : > { %v13727_v50 = vadd.f32 %v8861_v19, %v8545_v0  ;;  %v8863_v28 = vpop.f32.mrb[21].mxu1 }
 0x564   : > { %v13729_v60 = vadd.f32 %v8863_v28, %v8546_v14  ;;  %v8865_v3 = vpop.f32.mrb[22].mxu1 }
 0x565   : > { %v8866_v5 = vpop.f32.mrb[23].mxu1 }
 0x566   : > { %v8902_v21 = vpop.f32.mrb[24].mxu0 }
 0x567   : > { %v13731_v9 = vadd.f32 %v8902_v21, %v8547_v51  ;;  %v8904_v48 = vpop.f32.mrb[25].mxu0 }
 0x568   : > { %v13733_v34 = vadd.f32 %v8904_v48, %v8548_v11  ;;  %v8906_v53 = vpop.f32.mrb[26].mxu0 }
 0x569   : > { %v8907_v41 = vpop.f32.mrb[27].mxu0 }
 0x56a   : > { %v8943_v55 = vpop.f32.mrb[24].mxu1 }
 0x56b   : > { %v13735_v30 = vadd.f32 %v8943_v55, %v8549_v57  ;;  %v8945_v61 = vpop.f32.mrb[25].mxu1 }
 0x56c   : > { %v13737_v24 = vadd.f32 %v8945_v61, %v8550_v32  ;;  %v8947_v0 = vpop.f32.mrb[26].mxu1 }
 0x56d   : > { %v8948_v31 = vpop.f32.mrb[27].mxu1 }
 0x56e   : > { %v8984_v14 = vpop.f32.mrb[28].mxu0 }
 0x56f   : > { %v13739_v54 = vadd.f32 %v8984_v14, %v8551_v17  ;;  %v8986_v56 = vpop.f32.mrb[29].mxu0 }
 0x570   : > { %v13741_v29 = vadd.f32 %v8986_v56, %v8552_v45  ;;  %v8988_v51 = vpop.f32.mrb[30].mxu0 }
 0x571   : > { %v8989_v2 = vpop.f32.mrb[31].mxu0 }
 0x572   : > { %v9025_v11 = vpop.f32.mrb[28].mxu1 }
 0x573   : > { %v13743_v38 = vadd.f32 %v9025_v11, %v8553_v26  ;;  %v9027_v46 = vpop.f32.mrb[29].mxu1  ;;  %v13751_v26 = vpop.permute.xlu1 %9624 }
 0x574   : > { %v13745_v18 = vadd.f32 %v9027_v46, %v8554_v23  ;;  %v9029_v57 = vpop.f32.mrb[30].mxu1 }
 0x575   : > { %v9030_v37 = vpop.f32.mrb[31].mxu1 }
 0x576   : > { %v9066_v32 = vpop.f32.mrb[32].mxu0 }
 0x577   : > { %v13747_v8 = vadd.f32 %v9066_v32, %v8555_v6  ;;  %v9068_v17 = vpop.f32.mrb[33].mxu0  ;;  %v13756_v6 = vsub.s32 %v9694_v44, %v12434_v12 }
 0x578   : > { %v13749_v20 = vadd.f32 %v9068_v17, %v8556_v59  ;;  %v9070_v45 = vpop.f32.mrb[34].mxu0 }
 0x579   : > { %v9071_v22 = vpop.f32.mrb[35].mxu0 }
 0x57a   : > { %v9311_v62 = vpop.f32.mrb[32].mxu1 }
 0x57b   : > { %v9605_v1 = vadd.f32 %v9311_v62, %v9073_v36  ;;  %v9313_v23 = vpop.f32.mrb[33].mxu1 }
 0x57c   : > { %v9606_v40 = vadd.f32 %v9313_v23, %v9074_v52  ;;  %v9315_v35 = vpop.f32.mrb[34].mxu1 }
 0x57d   : > { %v9627_v58 = vadd.f32 %v13751_v26, %v9605_v1  ;;  %v9316_v27 = vpop.f32.mrb[35].mxu1 }
 0x57e   : > { %v9628_v59 = vadd.f32 %v13751_v26, %v9606_v40  ;;  %v9352_v49 = vpop.f32.mrb[36].mxu0 }
 0x57f   : > { %vm9643_vm0 = vcmp.ge.f32.partialorder %v9627_v58, 0.0  ;;  %v9659_v39 = vmul.f32 0.8, %v9627_v58  ;;  %v9607_v25 = vadd.f32 %v9352_v49, %v9075_v33  ;;  %v9354_v43 = vpop.f32.mrb[37].mxu0 }
 0x580   : > { %vm9644_vm3 = vcmp.ge.f32.partialorder %v9628_v59, 0.0  ;;  %v9660_v36 = vmul.f32 0.8, %v9628_v59  ;;  %v9608_v52 = vadd.f32 %v9354_v43, %v9076_v16  ;;  %v9356_v4 = vpop.f32.mrb[38].mxu0 }
 0x581   : > { %v9675_v10 = vsel %vm9643_vm0, %v9627_v58, %v9659_v39  ;;  %v9629_v13 = vadd.f32 %v13751_v26, %v9607_v25  ;;  %v9357_v15 = vpop.f32.mrb[39].mxu0 }
 0x582   : > { %v9676_v12 = vsel %vm9644_vm3, %v9628_v59, %v9660_v36  ;;  %v9698_v42 = vrot.slane %v9675_v10, %v13756_v6  ;;  %v9630_v47 = vadd.f32 %v13751_v26, %v9608_v52  ;;  %v9393_v19 = vpop.f32.mrb[36].mxu1 }
 0x583   : > { %v9732_v33 = vrot.slane %v9676_v12, %v13756_v6  ;;  %vm9645_vm12 = vcmp.ge.f32.partialorder %v9629_v13, 0.0  ;;  %v9661_v28 = vmul.f32 0.8, %v9629_v13  ;;  %v9609_v3 = vadd.f32 %v9393_v19, %v13727_v50  ;;  %v9395_v5 = vpop.f32.mrb[37].mxu1 }
 0x584   : > { %v9699_v16 = vcombine.high %v9698_v42, %v9698_v42  ;;  %v9706_v21 = vrot.slane %v9698_v42, %v13756_v6  ;;  %vm9646_vm13 = vcmp.ge.f32.partialorder %v9630_v47, 0.0  ;;  %v9662_v48 = vmul.f32 0.8, %v9630_v47  ;;  %v9397_v53 = vpop.f32.mrb[38].mxu1 }
 0x585   : > { %v9733_v41 = vcombine.high %v9732_v33, %v9732_v33  ;;  %v9740_v55 = vrot.slane %v9732_v33, %v13756_v6  ;;  %v9677_v61 = vsel %vm9645_vm12, %v9629_v13, %v9661_v28  ;;  %v9631_v0 = vadd.f32 %v13751_v26, %v9609_v3  ;;  %v9398_v31 = vpop.f32.mrb[39].mxu1 }
 0x586   : > { %v9713_v14 = vrot.slane %v9699_v16, %v13756_v6  ;;  %v9714_v56 = vcombine.high %v9706_v21, %v9706_v21  ;;  %9721 = vst.msk [vmem:[%s13770_s15] sm:$0x1] %vm9720_vm11, %v9706_v21  ;;  %v9765_v50 = vrot.slane %v9677_v61, %v13756_v6  ;;  %v9678_v51 = vsel %vm9646_vm13, %v9630_v47, %v9662_v48  ;;  %v9434_v2 = vpop.f32.mrb[40].mxu0 }
 0x587   : > { %v9747_v11 = vrot.slane %v9733_v41, %v13756_v6  ;;  %v9748_v46 = vcombine.high %v9740_v55, %v9740_v55  ;;  %9754 = vst.msk [vmem:[%s13770_s15 + $0x1] sm:$0x1] %vm9720_vm11, %v9740_v55  ;;  %v9798_v57 = vrot.slane %v9678_v51, %v13756_v6  ;;  %vm9647_vm14 = vcmp.ge.f32.partialorder %v9631_v0, 0.0  ;;  %v9436_v37 = vpop.f32.mrb[41].mxu0 }
 0x588   : > { %v9715_v32 = vcombine.high %v9713_v14, %v9713_v14  ;;  %9722 = vst.msk [vmem:[%s13770_s15 + $0x10] sm:$0x1] %vm9720_vm11, %v9713_v14  ;;  %9723 = vst.msk [vmem:[%s13770_s15 + $0x20] sm:$0x1] %vm9720_vm11, %v9714_v56  ;;  %v9766_v7 = vcombine.high %v9765_v50, %v9765_v50  ;;  %v9773_v63 = vrot.slane %v9765_v50, %v13756_v6  ;;  %v9663_v17 = vmul.f32 0.8, %v9631_v0 }
 0x589   : > { %v9438_v45 = vpop.f32.mrb[42].mxu0  ;;  %v9749_v22 = vcombine.high %v9747_v11, %v9747_v11  ;;  %9755 = vst.msk [vmem:[%s13770_s15 + $0x11] sm:$0x1] %vm9720_vm11, %v9747_v11  ;;  %9756 = vst.msk [vmem:[%s13770_s15 + $0x21] sm:$0x1] %vm9720_vm11, %v9748_v46  ;;  %v9799_v62 = vcombine.high %v9798_v57, %v9798_v57  ;;  %v9806_v44 = vrot.slane %v9798_v57, %v13756_v6 }
 0x58a   : > { %v9610_v1 = vadd.f32 %v9395_v5, %v13729_v60  ;;  %v9439_v23 = vpop.f32.mrb[43].mxu0  ;;  %9724 = vst.msk [vmem:[%s13770_s15 + $0x30] sm:$0x1] %vm9720_vm11, %v9715_v32  ;;  %v9780_v40 = vrot.slane %v9766_v7, %v13756_v6  ;;  %v9781_v35 = vcombine.high %v9773_v63, %v9773_v63  ;;  %9787 = vst.msk [vmem:[%s13770_s15 + $0x2] sm:$0x1] %vm9720_vm11, %v9773_v63  ;;  %v9475_v59 = vpop.f32.mrb[40].mxu1 }
 0x58b   : > { %v9679_v58 = vsel %vm9647_vm14, %v9631_v0, %v9663_v17  ;;  %v9611_v27 = vadd.f32 %v9434_v2, %v13731_v9  ;;  %9757 = vst.msk [vmem:[%s13770_s15 + $0x31] sm:$0x1] %vm9720_vm11, %v9749_v22  ;;  %v9813_v60 = vrot.slane %v9799_v62, %v13756_v6  ;;  %v9814_v49 = vcombine.high %v9806_v44, %v9806_v44  ;;  %v9477_v43 = vpop.f32.mrb[41].mxu1 }
 0x58c   : > { %9820 = vst.msk [vmem:[%s13770_s15 + $0x3] sm:$0x1] %vm9720_vm11, %v9806_v44  ;;  %v9831_v39 = vrot.slane %v9679_v58, %v13756_v6  ;;  %v9632_v25 = vadd.f32 %v13751_v26, %v9610_v1  ;;  %v9782_v36 = vcombine.high %v9780_v40, %v9780_v40  ;;  %9788 = vst.msk [vmem:[%s13770_s15 + $0x12] sm:$0x1] %vm9720_vm11, %v9780_v40  ;;  %v9479_v10 = vpop.f32.mrb[42].mxu1 }
 0x58d   : > { %9789 = vst.msk [vmem:[%s13770_s15 + $0x22] sm:$0x1] %vm9720_vm11, %v9781_v35  ;;  %v9633_v9 = vadd.f32 %v13751_v26, %v9611_v27  ;;  %v9612_v52 = vadd.f32 %v9436_v37, %v13733_v34  ;;  %v9613_v4 = vadd.f32 %v9475_v59, %v13735_v30  ;;  %v9815_v13 = vcombine.high %v9813_v60, %v9813_v60  ;;  %v9480_v42 = vpop.f32.mrb[43].mxu1 }
 0x58e   : > { %9821 = vst.msk [vmem:[%s13770_s15 + $0x13] sm:$0x1] %vm9720_vm11, %v9813_v60  ;;  %9822 = vst.msk [vmem:[%s13770_s15 + $0x23] sm:$0x1] %vm9720_vm11, %v9814_v49  ;;  %v9832_v15 = vcombine.high %v9831_v39, %v9831_v39  ;;  %v9839_v12 = vrot.slane %v9831_v39, %v13756_v6  ;;  %vm9648_vm15 = vcmp.ge.f32.partialorder %v9632_v25, 0.0  ;;  %v9516_v19 = vpop.f32.mrb[44].mxu0  ;;  %v9614_v5 = vadd.f32 %v9477_v43, %v13737_v24 }
 0x58f   : > { %9790 = vst.msk [vmem:[%s13770_s15 + $0x32] sm:$0x1] %vm9720_vm11, %v9782_v36  ;;  %v9664_v47 = vmul.f32 0.8, %v9632_v25  ;;  %vm9649_vm1 = vcmp.ge.f32.partialorder %v9633_v9, 0.0  ;;  %v9634_v30 = vadd.f32 %v13751_v26, %v9612_v52  ;;  %v9635_v3 = vadd.f32 %v13751_v26, %v9613_v4  ;;  %v13826_v16 = vpop.f32.mrb[45].mxu0 }
 0x590   : > { %v9665_v34 = vmul.f32 0.8, %v9633_v9  ;;  %9823 = vst.msk [vmem:[%s13770_s15 + $0x33] sm:$0x1] %vm9720_vm11, %v9815_v13  ;;  %v9846_v33 = vrot.slane %v9832_v15, %v13756_v6  ;;  %v9847_v28 = vcombine.high %v9839_v12, %v9839_v12  ;;  %9853 = vst.msk [vmem:[%s13770_s15 + $0x4] sm:$0x1] %vm9720_vm11, %v9839_v12  ;;  %v9636_v56 = vadd.f32 %v13751_v26, %v9614_v5 }
 0x591   : > { %v9680_v21 = vsel %vm9648_vm15, %v9632_v25, %v9664_v47  ;;  %vm9650_vm2 = vcmp.ge.f32.partialorder %v9634_v30, 0.0  ;;  %v9666_v53 = vmul.f32 0.8, %v9634_v30  ;;  %v9520_v41 = vpop.f32.mrb[46].mxu0  ;;  %vm9651_vm4 = vcmp.ge.f32.partialorder %v9635_v3, 0.0 }
 0x592   : > { %v9681_v48 = vsel %vm9649_vm1, %v9633_v9, %v9665_v34  ;;  %v9848_v55 = vcombine.high %v9846_v33, %v9846_v33  ;;  %9854 = vst.msk [vmem:[%s13770_s15 + $0x14] sm:$0x1] %vm9720_vm11, %v9846_v33  ;;  %9855 = vst.msk [vmem:[%s13770_s15 + $0x24] sm:$0x1] %vm9720_vm11, %v9847_v28  ;;  %v9864_v61 = vrot.slane %v9680_v21, %v13756_v6  ;;  %v9521_v31 = vpop.f32.mrb[47].mxu0  ;;  %v9557_v51 = vpop.f32.mrb[44].mxu1 }
 0x593   : > { %v9897_v0 = vrot.slane %v9681_v48, %v13756_v6  ;;  %v9682_v24 = vsel %vm9650_vm2, %v9634_v30, %v9666_v53  ;;  %v9667_v14 = vmul.f32 0.8, %v9635_v3  ;;  %v9615_v50 = vadd.f32 %v9516_v19, %v13739_v54  ;;  %v9559_v37 = vpop.f32.mrb[45].mxu1 }
 0x594   : > { %9856 = vst.msk [vmem:[%s13770_s15 + $0x34] sm:$0x1] %vm9720_vm11, %v9848_v55  ;;  %v9865_v2 = vcombine.high %v9864_v61, %v9864_v61  ;;  %v9872_v11 = vrot.slane %v9864_v61, %v13756_v6  ;;  %v9930_v32 = vrot.slane %v9682_v24, %v13756_v6  ;;  %vm9652_vm5 = vcmp.ge.f32.partialorder %v9636_v56, 0.0  ;;  %v9561_v17 = vpop.f32.mrb[46].mxu1 }
 0x595   : > { %v9898_v46 = vcombine.high %v9897_v0, %v9897_v0  ;;  %v9905_v57 = vrot.slane %v9897_v0, %v13756_v6  ;;  %v9683_v7 = vsel %vm9651_vm4, %v9635_v3, %v9667_v14  ;;  %v9668_v63 = vmul.f32 0.8, %v9636_v56  ;;  %v9562_v44 = vpop.f32.mrb[47].mxu1 }
 0x596   : > { %v9879_v54 = vrot.slane %v9865_v2, %v13756_v6  ;;  %v9880_v45 = vcombine.high %v9872_v11, %v9872_v11  ;;  %9886 = vst.msk [vmem:[%s13770_s15 + $0x5] sm:$0x1] %vm9720_vm11, %v9872_v11  ;;  %v9931_v1 = vcombine.high %v9930_v32, %v9930_v32  ;;  %v9938_v23 = vrot.slane %v9930_v32, %v13756_v6  ;;  %v9598_v58 = vpop.f32.mrb[48].mxu0 }
 0x597   : > { %v9912_v22 = vrot.slane %v9898_v46, %v13756_v6  ;;  %v9913_v62 = vcombine.high %v9905_v57, %v9905_v57  ;;  %9919 = vst.msk [vmem:[%s13770_s15 + $0x6] sm:$0x1] %vm9720_vm11, %v9905_v57  ;;  %v9963_v40 = vrot.slane %v9683_v7, %v13756_v6  ;;  %v9684_v35 = vsel %vm9652_vm5, %v9636_v56, %v9668_v63  ;;  %v9600_v39 = vpop.f32.mrb[49].mxu0 }
 0x598   : > { %v9881_v27 = vcombine.high %v9879_v54, %v9879_v54  ;;  %9887 = vst.msk [vmem:[%s13770_s15 + $0x15] sm:$0x1] %vm9720_vm11, %v9879_v54  ;;  %9888 = vst.msk [vmem:[%s13770_s15 + $0x25] sm:$0x1] %vm9720_vm11, %v9880_v45  ;;  %v9996_v60 = vrot.slane %v9684_v35, %v13756_v6  ;;  %v9637_v49 = vadd.f32 %v13751_v26, %v9615_v50  ;;  %v9602_v52 = vpop.f32.mrb[50].mxu0 }
 0x599   : > { %v9914_v59 = vcombine.high %v9912_v22, %v9912_v22  ;;  %9920 = vst.msk [vmem:[%s13770_s15 + $0x16] sm:$0x1] %vm9720_vm11, %v9912_v22  ;;  %9921 = vst.msk [vmem:[%s13770_s15 + $0x26] sm:$0x1] %vm9720_vm11, %v9913_v62  ;;  %v9945_v25 = vrot.slane %v9931_v1, %v13756_v6  ;;  %v9946_v43 = vcombine.high %v9938_v23, %v9938_v23  ;;  %v9603_v15 = vpop.f32.mrb[51].mxu0 }
 0x59a   : > { %9952 = vst.msk [vmem:[%s13770_s15 + $0x7] sm:$0x1] %vm9720_vm11, %v9938_v23  ;;  %v9964_v36 = vcombine.high %v9963_v40, %v9963_v40  ;;  %v9971_v9 = vrot.slane %v9963_v40, %v13756_v6  ;;  %9889 = vst.msk [vmem:[%s13770_s15 + $0x35] sm:$0x1] %vm9720_vm11, %v9881_v27  ;;  %v9997_v4 = vcombine.high %v9996_v60, %v9996_v60  ;;  %vm9653_vm6 = vcmp.ge.f32.partialorder %v9637_v49, 0.0 }
 0x59b   : > { %9922 = vst.msk [vmem:[%s13770_s15 + $0x36] sm:$0x1] %vm9720_vm11, %v9914_v59  ;;  %v10004_v10 = vrot.slane %v9996_v60, %v13756_v6  ;;  %v9669_v13 = vmul.f32 0.8, %v9637_v49  ;;  %v9947_v12 = vcombine.high %v9945_v25, %v9945_v25  ;;  %9953 = vst.msk [vmem:[%s13770_s15 + $0x17] sm:$0x1] %vm9720_vm11, %v9945_v25  ;;  %v9616_v34 = vadd.f32 %v13826_v16, %v13741_v29 }
 0x59c   : > { %9954 = vst.msk [vmem:[%s13770_s15 + $0x27] sm:$0x1] %vm9720_vm11, %v9946_v43  ;;  %v9978_v42 = vrot.slane %v9964_v36, %v13756_v6  ;;  %v9979_v47 = vcombine.high %v9971_v9, %v9971_v9  ;;  %9985 = vst.msk [vmem:[%s13770_s15 + $0x8] sm:$0x1] %vm9720_vm11, %v9971_v9  ;;  %v10011_v30 = vrot.slane %v9997_v4, %v13756_v6 }
 0x59d   : > { %v10012_v19 = vcombine.high %v10004_v10, %v10004_v10  ;;  %10018 = vst.msk [vmem:[%s13770_s15 + $0x9] sm:$0x1] %vm9720_vm11, %v10004_v10  ;;  %v9685_v33 = vsel %vm9653_vm6, %v9637_v49, %v9669_v13  ;;  %v9617_v28 = vadd.f32 %v9557_v51, %v13743_v38  ;;  %9955 = vst.msk [vmem:[%s13770_s15 + $0x37] sm:$0x1] %vm9720_vm11, %v9947_v12 }
 0x59e   : > { %v9980_v3 = vcombine.high %v9978_v42, %v9978_v42  ;;  %9986 = vst.msk [vmem:[%s13770_s15 + $0x18] sm:$0x1] %vm9720_vm11, %v9978_v42  ;;  %9987 = vst.msk [vmem:[%s13770_s15 + $0x28] sm:$0x1] %vm9720_vm11, %v9979_v47  ;;  %v10029_v5 = vrot.slane %v9685_v33, %v13756_v6  ;;  %v9638_v29 = vadd.f32 %v13751_v26, %v9616_v34 }
 0x59f   : > { %v9618_v16 = vadd.f32 %v9559_v37, %v13745_v18  ;;  %v10013_v21 = vcombine.high %v10011_v30, %v10011_v30  ;;  %10019 = vst.msk [vmem:[%s13770_s15 + $0x19] sm:$0x1] %vm9720_vm11, %v10011_v30  ;;  %10020 = vst.msk [vmem:[%s13770_s15 + $0x29] sm:$0x1] %vm9720_vm11, %v10012_v19  ;;  %v9639_v38 = vadd.f32 %v13751_v26, %v9617_v28 }
 0x5a0   : > { %v9619_v48 = vadd.f32 %v9598_v58, %v13747_v8  ;;  %v9620_v53 = vadd.f32 %v9600_v39, %v13749_v20  ;;  %9988 = vst.msk [vmem:[%s13770_s15 + $0x38] sm:$0x1] %vm9720_vm11, %v9980_v3  ;;  %v10030_v41 = vcombine.high %v10029_v5, %v10029_v5  ;;  %v10037_v55 = vrot.slane %v10029_v5, %v13756_v6 }
 0x5a1   : > { %vm9654_vm7 = vcmp.ge.f32.partialorder %v9638_v29, 0.0  ;;  %v9670_v61 = vmul.f32 0.8, %v9638_v29  ;;  %10021 = vst.msk [vmem:[%s13770_s15 + $0x39] sm:$0x1] %vm9720_vm11, %v10013_v21  ;;  %vm9655_vm8 = vcmp.ge.f32.partialorder %v9639_v38, 0.0  ;;  %v9640_v0 = vadd.f32 %v13751_v26, %v9618_v16 }
 0x5a2   : > { %v9671_v18 = vmul.f32 0.8, %v9639_v38  ;;  %v9641_v31 = vadd.f32 %v13751_v26, %v9619_v48  ;;  %v10044_v8 = vrot.slane %v10030_v41, %v13756_v6  ;;  %v10045_v20 = vcombine.high %v10037_v55, %v10037_v55  ;;  %10051 = vst.msk [vmem:[%s13770_s15 + $0xa] sm:$0x1] %vm9720_vm11, %v10037_v55 }
 0x5a3   : > { %v9686_v24 = vsel %vm9654_vm7, %v9638_v29, %v9670_v61  ;;  %v9642_v14 = vadd.f32 %v13751_v26, %v9620_v53  ;;  %vm9656_vm9 = vcmp.ge.f32.partialorder %v9640_v0, 0.0  ;;  %v9672_v51 = vmul.f32 0.8, %v9640_v0 }
 0x5a4   : > { %v10062_v56 = vrot.slane %v9686_v24, %v13756_v6  ;;  %v9687_v50 = vsel %vm9655_vm8, %v9639_v38, %v9671_v18  ;;  %v10046_v2 = vcombine.high %v10044_v8, %v10044_v8  ;;  %10052 = vst.msk [vmem:[%s13770_s15 + $0x1a] sm:$0x1] %vm9720_vm11, %v10044_v8  ;;  %10053 = vst.msk [vmem:[%s13770_s15 + $0x2a] sm:$0x1] %vm9720_vm11, %v10045_v20  ;;  %vm9657_vm10 = vcmp.ge.f32.partialorder %v9641_v31, 0.0 }
 0x5a5   : > { %v10095_v11 = vrot.slane %v9687_v50, %v13756_v6  ;;  %v9673_v46 = vmul.f32 0.8, %v9641_v31  ;;  %v9688_v26 = vsel %vm9656_vm9, %v9640_v0, %v9672_v51  ;;  %vm9658_vm0 = vcmp.ge.f32.partialorder %v9642_v14, 0.0 }
 0x5a6   : > { %v10063_v57 = vcombine.high %v10062_v56, %v10062_v56  ;;  %v10070_v37 = vrot.slane %v10062_v56, %v13756_v6  ;;  %10054 = vst.msk [vmem:[%s13770_s15 + $0x3a] sm:$0x1] %vm9720_vm11, %v10046_v2  ;;  %v10128_v63 = vrot.slane %v9688_v26, %v13756_v6  ;;  %v9674_v62 = vmul.f32 0.8, %v9642_v14 }
 0x5a7   : > { %v10096_v32 = vcombine.high %v10095_v11, %v10095_v11  ;;  %v10103_v7 = vrot.slane %v10095_v11, %v13756_v6  ;;  %v9689_v17 = vsel %vm9657_vm10, %v9641_v31, %v9673_v46 }
 0x5a8   : > { %v10077_v54 = vrot.slane %v10063_v57, %v13756_v6  ;;  %v10078_v45 = vcombine.high %v10070_v37, %v10070_v37  ;;  %10084 = vst.msk [vmem:[%s13770_s15 + $0xb] sm:$0x1] %vm9720_vm11, %v10070_v37  ;;  %v10161_v22 = vrot.slane %v9689_v17, %v13756_v6  ;;  %v10129_v23 = vcombine.high %v10128_v63, %v10128_v63 }
 0x5a9   : > { %v10110_v44 = vrot.slane %v10096_v32, %v13756_v6  ;;  %v10111_v1 = vcombine.high %v10103_v7, %v10103_v7  ;;  %10117 = vst.msk [vmem:[%s13770_s15 + $0xc] sm:$0x1] %vm9720_vm11, %v10103_v7  ;;  %v10136_v40 = vrot.slane %v10128_v63, %v13756_v6  ;;  %v9690_v59 = vsel %vm9658_vm0, %v9642_v14, %v9674_v62 }
 0x5aa   : > { %v10079_v35 = vcombine.high %v10077_v54, %v10077_v54  ;;  %10085 = vst.msk [vmem:[%s13770_s15 + $0x1b] sm:$0x1] %vm9720_vm11, %v10077_v54  ;;  %10086 = vst.msk [vmem:[%s13770_s15 + $0x2b] sm:$0x1] %vm9720_vm11, %v10078_v45  ;;  %v10162_v58 = vcombine.high %v10161_v22, %v10161_v22  ;;  %v10169_v27 = vrot.slane %v10161_v22, %v13756_v6 }
 0x5ab   : > { %v10112_v60 = vcombine.high %v10110_v44, %v10110_v44  ;;  %10118 = vst.msk [vmem:[%s13770_s15 + $0x1c] sm:$0x1] %vm9720_vm11, %v10110_v44  ;;  %10119 = vst.msk [vmem:[%s13770_s15 + $0x2c] sm:$0x1] %vm9720_vm11, %v10111_v1  ;;  %v10143_v49 = vrot.slane %v10129_v23, %v13756_v6  ;;  %v10144_v39 = vcombine.high %v10136_v40, %v10136_v40 }
 0x5ac   : > { %10150 = vst.msk [vmem:[%s13770_s15 + $0xd] sm:$0x1] %vm9720_vm11, %v10136_v40  ;;  %v10194_v25 = vrot.slane %v9690_v59, %v13756_v6  ;;  %10087 = vst.msk [vmem:[%s13770_s15 + $0x3b] sm:$0x1] %vm9720_vm11, %v10079_v35  ;;  %v10176_v43 = vrot.slane %v10162_v58, %v13756_v6  ;;  %v10177_v36 = vcombine.high %v10169_v27, %v10169_v27 }
 0x5ad   : > { %10183 = vst.msk [vmem:[%s13770_s15 + $0xe] sm:$0x1] %vm9720_vm11, %v10169_v27  ;;  %10120 = vst.msk [vmem:[%s13770_s15 + $0x3c] sm:$0x1] %vm9720_vm11, %v10112_v60  ;;  %v10145_v9 = vcombine.high %v10143_v49, %v10143_v49 }
 0x5ae   : > { %10151 = vst.msk [vmem:[%s13770_s15 + $0x1d] sm:$0x1] %vm9720_vm11, %v10143_v49  ;;  %10152 = vst.msk [vmem:[%s13770_s15 + $0x2d] sm:$0x1] %vm9720_vm11, %v10144_v39  ;;  %v10195_v52 = vcombine.high %v10194_v25, %v10194_v25  ;;  %v10202_v4 = vrot.slane %v10194_v25, %v13756_v6  ;;  %v10178_v10 = vcombine.high %v10176_v43, %v10176_v43 }
 0x5af   : > { %10184 = vst.msk [vmem:[%s13770_s15 + $0x1e] sm:$0x1] %vm9720_vm11, %v10176_v43  ;;  %10185 = vst.msk [vmem:[%s13770_s15 + $0x2e] sm:$0x1] %vm9720_vm11, %v10177_v36 }
 0x5b0   : > { %10153 = vst.msk [vmem:[%s13770_s15 + $0x3d] sm:$0x1] %vm9720_vm11, %v10145_v9  ;;  %v10209_v13 = vrot.slane %v10195_v52, %v13756_v6  ;;  %v10210_v15 = vcombine.high %v10202_v4, %v10202_v4  ;;  %10216 = vst.msk [vmem:[%s13770_s15 + $0xf] sm:$0x1] %vm9720_vm11, %v10202_v4 }
 0x5b1   : > { %10186 = vst.msk [vmem:[%s13770_s15 + $0x3e] sm:$0x1] %vm9720_vm11, %v10178_v10 }
 0x5b2   : > { %v10211_v12 = vcombine.high %v10209_v13, %v10209_v13  ;;  %10217 = vst.msk [vmem:[%s13770_s15 + $0x1f] sm:$0x1] %vm9720_vm11, %v10209_v13  ;;  %10218 = vst.msk [vmem:[%s13770_s15 + $0x2f] sm:$0x1] %vm9720_vm11, %v10210_v15 }
 0x5b4   : > { %10219 = vst.msk [vmem:[%s13770_s15 + $0x3f] sm:$0x1] %vm9720_vm11, %v10211_v12 }
 0x5b5   : > { %10908 = shalt.err (!%p10905_p5)
}
 0x5b6   : > { %s10909_s9 = scalar_lea.hbm %s13969_s21, 1024  ;;  %s10913_s14 = scalar_lea.hbm %s14032_s5, 2048 }
 0x5b7   : > { %p10910_p6 = scmp.ne.s32.totalorder %s13969_s21, %s10909_s9  ;;  %p10914_p10 = scmp.lt.u32.totalorder %s13969_s21, %s14032_s5 }
 0x5b8   : > { %p10915_p11 = scmp.lt.u32.totalorder %s10913_s14, %s10909_s9  ;;  %p10917_p13 = scmp.lt.u32.totalorder %s10909_s9, %s13969_s21 }
 0x5b9   : > { %p10911_p7 = pnand %p10910_p6, %p11054_p4 }
 0x5ba   : > { %p10916_p12 = por %p10915_p11, %p10914_p10 }
 0x5bb   : > { %p10912_p9 = pneg %p10911_p7 }
 0x5bc   : > { %p10918_p0 = por %p10917_p13, %p10916_p12 }
 0x5be   : > { %p10919_p1 = pnand %p10918_p0, %p10912_p9 }
 0x5c0   : > { %10922 = shalt.err (!%p10919_p1)
}
 0x5c1   : > { %s10982_s11 = smov 128   ;;  %s10983_s17 = smov 8  }
 0x5c2   : > { %10762 = dma.vmem_to_hbm [thread:$0]  (%p11054_p4), %s13971_s16, 1024, %s13969_s21, %s13981_s25, %s10982_s11, %s10982_s11, %s10983_s17  }
 0x5c3 PF: > { %p10768_p2 = scmp.ge.s32.totalorder %s10973_s23, 2  ;;  %s10251_s24 = sand.u32 1, %s10953_s18  }
 0x5c4   : > { %s10252_s27 = scalar_lea.sflag [#allocation4], %s10251_s24 }
 0x5c5   : > { %p10765_p3 = pnand %p10768_p2, %p11061_p8 }
 0x5c7   : > { %10948 = dma.done.wait (!%p10765_p3), %s10252_s27, 1024  }
 0x5c8   : > { %10950 = vsyncadd (!%p10765_p3), %s10252_s27, 4294966272  ;;  %s18_s23 = sadd.s32 1, %s10973_s23   ;;  %s14037_s18 = smov %s10957_s19 }
 0x5c9   : > { %p15_p5 = scmp.ge.s32.totalorder %s18_s23, 4   ;;  %s14038_s19 = smov %s10961_s20 }
 0x5ca   : > { %s14039_s20 = smov %s11067_s6  ;;  %s14040_s21 = smov %s10969_s22 }
 0x5cb   : > { %s14041_s22 = smov %s14043_s26  ;;  %17 = sbr.rel (!%p15_p5) target bundleno = 4 (0x4), region = 95 }
 0x5d2   :  { %10257 = vsyncpa [#allocation4], 1 }
 0x5d3   :  { %10259 = vsyncpa [#allocation4 + $0x1], 1 }

</bundles_post_ra>
